<compile_context>
chip_gen: v5e
topology: v5e:2x2
jax: 0.10.0
libtpu: 0.0.40
codegen_flags: <defaults>
</compile_context>

<pallas_src>
import functools

import jax
import jax.numpy as jnp
from jax.experimental import pallas as pl
from jax.experimental.pallas import tpu as pltpu


def _round_up(x, m):
    return (x + m - 1) // m * m


# ---------------------------------------------------------------------------
# Tiled matmul + bias: o = x @ w + b   (f32 accumulation, optional bf16 ops)
# ---------------------------------------------------------------------------
def _matmul_bias_kernel(x_ref, w_ref, b_ref, o_ref, acc_ref):
    @pl.when(pl.program_id(2) == 0)
    def _():
        acc_ref[...] = jnp.zeros_like(acc_ref)

    acc_ref[...] += jnp.dot(
        x_ref[...], w_ref[...], preferred_element_type=jnp.float32
    )

    @pl.when(pl.program_id(2) == pl.num_programs(2) - 1)
    def _():
        o_ref[...] = (acc_ref[...] + b_ref[...]).astype(o_ref.dtype)


def pallas_linear(x, w, b, *, tm=256, tn=256, tk=512,
                  matmul_dtype=jnp.float32, out_dtype=jnp.float32):
    """x: (M, K), w: (K, N), b: (1, N) float32 -> (M, N) out_dtype."""
    M, K = x.shape
    Kw, N = w.shape
    assert K == Kw and b.shape == (1, N)

    # Pad to hardware tiles, then to tile multiples.
    Mp = _round_up(M, 8)
    Np = _round_up(N, 128)
    Kp = _round_up(K, 128)
    tm = min(tm, Mp)
    tn = min(tn, Np)
    tk = min(tk, Kp)
    Mp = _round_up(Mp, tm)
    Np = _round_up(Np, tn)
    Kp = _round_up(Kp, tk)

    xp = x if (Mp, Kp) == (M, K) else jnp.pad(x, ((0, Mp - M), (0, Kp - K)))
    wp = w if (Kp, Np) == (K, N) else jnp.pad(w, ((0, Kp - K), (0, Np - N)))
    bp = b if Np == N else jnp.pad(b, ((0, 0), (0, Np - N)))

    xp = xp.astype(matmul_dtype)
    wp = wp.astype(matmul_dtype)

    grid = (Mp // tm, Np // tn, Kp // tk)
    out = pl.pallas_call(
        _matmul_bias_kernel,
        out_shape=jax.ShapeDtypeStruct((Mp, Np), out_dtype),
        grid_spec=pltpu.PrefetchScalarGridSpec(
            num_scalar_prefetch=0,
            grid=grid,
            in_specs=[
                pl.BlockSpec((tm, tk), lambda i, j, k: (i, k)),
                pl.BlockSpec((tk, tn), lambda i, j, k: (k, j)),
                pl.BlockSpec((1, tn), lambda i, j, k: (0, j)),
            ],
            out_specs=pl.BlockSpec((tm, tn), lambda i, j, k: (i, j)),
            scratch_shapes=[pltpu.VMEM((tm, tn), jnp.float32)],
        ),
        compiler_params=pltpu.CompilerParams(
            dimension_semantics=("parallel", "parallel", "arbitrary"),
        ),
    )(xp, wp, bp)
    if (Mp, Np) != (M, N):
        out = out[:M, :N]
    return out


# ---------------------------------------------------------------------------
# GRU recurrence kernel: gi is precomputed (x @ W_ih^T + folded biases);
# only h @ W_hh^T remains on the sequential critical path.  Grid is
# (batch blocks [parallel], time chunks [arbitrary]); the hidden state is
# carried across time chunks in a VMEM scratch.
# ---------------------------------------------------------------------------
def _gru_kernel(gi_ref, whh_ref, bhn_ref, h_all_ref, h_carry):
    """gi_ref:   (Tc, Bblk, 3*Hp)  precomputed gates (lane-aligned per gate)
       whh_ref:  (Hp, 3*Hp)        hidden-to-hidden weights (pre-transposed)
       bhn_ref:  (1, Hp)           b_hn (the only bias left inside the loop)
       h_all_ref:(Tc, Bblk, Hp)    hidden states of this time chunk
       h_carry:  (Bblk, Hp) f32    VMEM scratch carrying h across chunks."""
    Tc, Bblk, _ = gi_ref.shape
    Hp = h_all_ref.shape[-1]

    @pl.when(pl.program_id(1) == 0)
    def _():
        h_carry[...] = jnp.zeros_like(h_carry)

    whh = whh_ref[...]                                     # hoisted load
    bhn = jnp.broadcast_to(bhn_ref[...], (Bblk, Hp))       # hoisted broadcast

    def step(t, h):
        gi = gi_ref[t]                                     # (Bblk, 3Hp)
        gh = jnp.dot(h.astype(whh.dtype), whh,
                     preferred_element_type=jnp.float32)   # (Bblk, 3Hp)
        # Lane-aligned gate views (Hp is a multiple of 128).
        r = jax.nn.sigmoid(gi[:, :Hp] + gh[:, :Hp])
        z = jax.nn.sigmoid(gi[:, Hp:2 * Hp] + gh[:, Hp:2 * Hp])
        n = jnp.tanh(gi[:, 2 * Hp:] + r * (gh[:, 2 * Hp:] + bhn))
        h_new = (1.0 - z) * n + z * h
        h_all_ref[t] = h_new.astype(h_all_ref.dtype)
        return h_new

    h_final = jax.lax.fori_loop(0, Tc, step, h_carry[...],
                                unroll=bool(Tc <= 16))
    h_carry[...] = h_final


def pallas_gru(gi_tbh, whh_t_pad, bhn, *, matmul_dtype=jnp.float32,
               out_dtype=jnp.float32, vmem_budget_bytes=16 << 20):
    """gi_tbh: (T, Bp, 3Hp), whh_t_pad: (Hp, 3Hp), bhn: (1, Hp) f32.
    Returns all hidden states (T, Bp, Hp) out_dtype."""
    T, Bp, threeHp = gi_tbh.shape
    Hp = threeHp // 3

    # Independent batch blocks -> "parallel" grid axis (megacore on v7x).
    bb = min(Bp, 32)
    while Bp % bb:
        bb -= 8
    bb = max(bb, 8)

    # Time chunk sized to a VMEM budget (gi chunk + output chunk, dbl-buffered).
    gi_isz = jnp.dtype(gi_tbh.dtype).itemsize
    out_isz = jnp.dtype(out_dtype).itemsize
    bytes_per_step = 2 * bb * (threeHp * gi_isz + Hp * out_isz)
    tc = max(1, min(T, vmem_budget_bytes // max(bytes_per_step, 1)))
    Tp = _round_up(T, tc)
    if Tp != T:
        # Zero-padded tail timesteps; their (garbage) hidden states are
        # sliced away below and never feed back into real timesteps.
        gi_tbh = jnp.pad(gi_tbh, ((0, Tp - T), (0, 0), (0, 0)))

    grid = (Bp // bb, Tp // tc)
    out = pl.pallas_call(
        _gru_kernel,
        out_shape=jax.ShapeDtypeStruct((Tp, Bp, Hp), out_dtype),
        grid_spec=pltpu.PrefetchScalarGridSpec(
            num_scalar_prefetch=0,
            grid=grid,
            in_specs=[
                pl.BlockSpec((tc, bb, threeHp), lambda b, t: (t, b, 0)),
                pl.BlockSpec((Hp, threeHp), lambda b, t: (0, 0)),
                pl.BlockSpec((1, Hp), lambda b, t: (0, 0)),
            ],
            out_specs=pl.BlockSpec((tc, bb, Hp), lambda b, t: (t, b, 0)),
            scratch_shapes=[pltpu.VMEM((bb, Hp), jnp.float32)],
        ),
        compiler_params=pltpu.CompilerParams(
            dimension_semantics=("parallel", "arbitrary"),
        ),
    )(gi_tbh, whh_t_pad.astype(matmul_dtype), bhn)
    if Tp != T:
        out = out[:T]
    return out


# ---------------------------------------------------------------------------
# Weight preparation: gate-wise lane padding + bias folding
# ---------------------------------------------------------------------------
def _prepare_gru_weights(w_ih, w_hh, b_ih, b_hh, H, Hp):
    """PyTorch layout: w_ih (3H, E), w_hh (3H, H), b_* (3H,), gate order r,z,n.
    Returns:
      wih_t_pad (E, 3Hp), whh_t_pad (Hp, 3Hp), bias_comb (1, 3Hp), bhn (1, Hp)
    with each gate occupying a lane-aligned [g*Hp, g*Hp+H) slot (zeros pad).
    bias_comb = [b_ir+b_hr | b_iz+b_hz | b_in]; bhn = b_hn (stays inside r*())."""
    wih_t = w_ih.T        # (E, 3H)
    whh_t = w_hh.T        # (H, 3H)

    def pad_gate_cols(m):  # (rows, 3H) -> (rows, 3Hp)
        parts = [jnp.pad(m[:, g * H:(g + 1) * H], ((0, 0), (0, Hp - H)))
                 for g in range(3)]
        return jnp.concatenate(parts, axis=1)

    def pad_gate_vec(v):   # (3H,) -> (3Hp,)
        parts = [jnp.pad(v[g * H:(g + 1) * H], (0, Hp - H)) for g in range(3)]
        return jnp.concatenate(parts)

    wih_t_pad = pad_gate_cols(wih_t)                                  # (E, 3Hp)
    whh_t_pad = jnp.pad(pad_gate_cols(whh_t), ((0, Hp - H), (0, 0)))  # (Hp,3Hp)

    bih_p = pad_gate_vec(b_ih)
    bhh_p = pad_gate_vec(b_hh)
    bias_comb = bih_p.at[:2 * Hp].add(bhh_p[:2 * Hp]).reshape(1, 3 * Hp)
    bhn = bhh_p[2 * Hp:].reshape(1, Hp)
    return wih_t_pad, whh_t_pad, bias_comb, bhn


# ---------------------------------------------------------------------------
# Full forward pass
# ---------------------------------------------------------------------------
def init_params(key, *, vocab_size, embed_size, hidden_size, image_shape):
    C, Hi, Wi = image_shape
    in_feat = C * Hi * Wi
    ks = jax.random.split(key, 8)
    s = 0.05
    return {
        # TODO(synk): the reference VITEncoder architecture is not defined in
        # the provided source; a linear projection (flattened image ->
        # embed_size) stands in for it.
        "vit_w": jax.random.normal(ks[0], (in_feat, embed_size), jnp.float32) * s,
        "vit_b": jax.random.normal(ks[1], (1, embed_size), jnp.float32) * s,
        "embed": jax.random.normal(ks[2], (vocab_size, embed_size), jnp.float32) * s,
        "w_ih": jax.random.normal(ks[3], (3 * hidden_size, embed_size), jnp.float32) * s,
        "w_hh": jax.random.normal(ks[4], (3 * hidden_size, hidden_size), jnp.float32) * s,
        "b_ih": jax.random.normal(ks[5], (3 * hidden_size,), jnp.float32) * s,
        "b_hh": jax.random.normal(ks[6], (3 * hidden_size,), jnp.float32) * s,
        "fc_w": jax.random.normal(ks[7], (hidden_size, vocab_size), jnp.float32) * s,
        "fc_b": jnp.zeros((1, vocab_size), jnp.float32),
    }


@functools.partial(jax.jit, static_argnames=("matmul_dtype",))
def baseline_gru_forward(params, image, captions, *, matmul_dtype=jnp.float32):
    """image: (B, C, H, W) f32, captions: (B, T) int32 -> (B, T+1, vocab) f32."""
    B = image.shape[0]
    T = captions.shape[1]
    H = params["w_hh"].shape[1]
    V = params["fc_w"].shape[1]

    Hp = _round_up(H, 128)   # lane-aligned hidden size
    Bp = _round_up(B, 8)     # sublane-aligned batch

    # On the bf16 path, store the big intermediates (gate slab, hidden states)
    # in bf16 to halve HBM traffic; all accumulation / gate math stays f32.
    inter_dtype = jnp.float32 if matmul_dtype == jnp.float32 else jnp.bfloat16

    # --- ViT stub: flattened image -> embed_size (tiled Pallas matmul) ------
    img_flat = image.reshape(B, -1)
    image_features = pallas_linear(
        img_flat, params["vit_w"], params["vit_b"], matmul_dtype=matmul_dtype
    )                                                        # (B, E)

    # --- Build the sequence time-major directly (no big transpose) ---------
    # Embedding lookup (gather glue in plain JAX): (T, B, E).
    cap_feat_tbe = jnp.take(params["embed"], captions.T, axis=0)
    seq_tbe = jnp.concatenate([image_features[None], cap_feat_tbe], axis=0)
    seq_tbe = jnp.pad(seq_tbe, ((0, 0), (0, Bp - B), (0, 0)))  # (T+1, Bp, E)
    Tt = T + 1

    # --- Precompute input-to-hidden gates for ALL timesteps at once --------
    wih_t_pad, whh_t_pad, bias_comb, bhn = _prepare_gru_weights(
        params["w_ih"], params["w_hh"], params["b_ih"], params["b_hh"], H, Hp
    )
    E = seq_tbe.shape[-1]
    gi = pallas_linear(
        seq_tbe.reshape(Tt * Bp, E), wih_t_pad, bias_comb,
        matmul_dtype=matmul_dtype, out_dtype=inter_dtype,
    ).reshape(Tt, Bp, 3 * Hp)

    # --- GRU recurrence (only h @ W_hh^T on the serial path) ---------------
    h_all = pallas_gru(gi, whh_t_pad, bhn, matmul_dtype=matmul_dtype,
                       out_dtype=inter_dtype)                  # (Tt, Bp, Hp)

    # --- Output projection over all (T+1)*Bp tokens -------------------------
    fc_w_pad = jnp.pad(params["fc_w"], ((0, Hp - H), (0, 0)))  # zero rows for pad lanes
    logits = pallas_linear(
        h_all.reshape(Tt * Bp, Hp), fc_w_pad, params["fc_b"],
        matmul_dtype=matmul_dtype,
    ).reshape(Tt, Bp, V)[:, :B, :]

    return jnp.transpose(logits, (1, 0, 2))                   # (B, T+1, V)


# ---------------------------------------------------------------------------
# Pure-JAX reference for sanity checking
# ---------------------------------------------------------------------------
def reference_forward(params, image, captions):
    B = image.shape[0]
    img_feat = image.reshape(B, -1) @ params["vit_w"] + params["vit_b"]
    cap_feat = jnp.take(params["embed"], captions, axis=0)
    seq = jnp.concatenate([img_feat[:, None, :], cap_feat], axis=1)
    H = params["w_hh"].shape[1]

    def step(h, x):
        gi = x @ params["w_ih"].T + params["b_ih"]
        gh = h @ params["w_hh"].T + params["b_hh"]
        i_r, i_z, i_n = gi[:, :H], gi[:, H:2 * H], gi[:, 2 * H:]
        h_r, h_z, h_n = gh[:, :H], gh[:, H:2 * H], gh[:, 2 * H:]
        r = jax.nn.sigmoid(i_r + h_r)
        z = jax.nn.sigmoid(i_z + h_z)
        n = jnp.tanh(i_n + r * h_n)
        h_new = (1.0 - z) * n + z * h
        return h_new, h_new

    h0 = jnp.zeros((B, H), jnp.float32)
    _, hs = jax.lax.scan(step, h0, jnp.transpose(seq, (1, 0, 2)))
    out = hs @ params["fc_w"] + params["fc_b"]
    return jnp.transpose(out, (1, 0, 2))


if __name__ == "__main__":
    B, C, HI, WI = 2, 3, 16, 16
    T = 8
    vocab_size, embed_size, hidden_size = 32, 16, 32

    key = jax.random.PRNGKey(0)
    k_params, k_img, k_cap = jax.random.split(key, 3)

    params = init_params(
        k_params,
        vocab_size=vocab_size,
        embed_size=embed_size,
        hidden_size=hidden_size,
        image_shape=(C, HI, WI),
    )
    image = jax.random.normal(k_img, (B, C, HI, WI), jnp.float32)
    captions = jax.random.randint(k_cap, (B, T), 0, vocab_size, dtype=jnp.int32)

    # f32 matmul path: tight check against the pure-JAX reference.
    out = baseline_gru_forward(params, image, captions)
    out = jax.block_until_ready(out)
    assert out.shape == (B, T + 1, vocab_size), out.shape
    ref = reference_forward(params, image, captions)
    assert jnp.allclose(out, ref, atol=1e-4, rtol=1e-4), float(
        jnp.max(jnp.abs(out - ref))
    )

    # bf16 matmul / storage path (f32 accumulation & gate math): loose check.
    out_bf16 = baseline_gru_forward(
        params, image, captions, matmul_dtype=jnp.bfloat16
    )
    out_bf16 = jax.block_until_ready(out_bf16)
    assert out_bf16.shape == (B, T + 1, vocab_size), out_bf16.shape
    assert float(jnp.max(jnp.abs(out_bf16 - ref))) < 0.25

    print("KERNEL_OK")
</pallas_src>

<mosaic_0001>
module attributes {stable_mosaic.version = 11 : i64} {
  func.func @_matmul_bias_kernel(%arg0: i32, %arg1: i32, %arg2: i32, %arg3: memref<8x512xf32, #tpu.memory_space<vmem>>, %arg4: memref<512x128xf32, #tpu.memory_space<vmem>>, %arg5: memref<1x128xf32, #tpu.memory_space<vmem>>, %arg6: memref<8x128xf32, #tpu.memory_space<vmem>>, %arg7: memref<8x128xf32, #tpu.memory_space<vmem>>) attributes {dimension_semantics = [#tpu.dimension_semantics<parallel>, #tpu.dimension_semantics<parallel>, #tpu.dimension_semantics<arbitrary>], iteration_bounds = array<i64: 1, 1, 2>, scalar_prefetch = 0 : i64, scratch_operands = 1 : i64, tpu.core_type = #tpu.core_type<tc>, window_params = [{transform_indices = @transform_0, window_bounds = array<i64: 8, 512>}, {transform_indices = @transform_1, window_bounds = array<i64: 512, 128>}, {transform_indices = @transform_2, window_bounds = array<i64: 1, 128>}, {transform_indices = @transform_3, window_bounds = array<i64: 8, 128>}]} {
    %c0_i32 = arith.constant 0 : i32
    %0 = arith.cmpi eq, %arg2, %c0_i32 : i32
    %1 = arith.extui %0 : i1 to i32
    %c0_i32_0 = arith.constant 0 : i32
    %2 = arith.cmpi ne, %1, %c0_i32_0 : i32
    scf.if %2 {
      %cst_9 = arith.constant 0.000000e+00 : f32
      %12 = vector.broadcast %cst_9 : f32 to vector<8x128xf32>
      %c0_10 = arith.constant 0 : index
      %c0_11 = arith.constant 0 : index
      %13 = vector.load %arg7[%c0_10, %c0_11] : memref<8x128xf32, #tpu.memory_space<vmem>>, vector<8x128xf32>
      tpu.vector_store %arg7[%c0_10, %c0_11], %12 {strides = array<i32>} : memref<8x128xf32, #tpu.memory_space<vmem>>, vector<8x128xf32>,
    } else {
    }
    %c0 = arith.constant 0 : index
    %c0_1 = arith.constant 0 : index
    %3 = vector.load %arg7[%c0, %c0_1] : memref<8x128xf32, #tpu.memory_space<vmem>>, vector<8x128xf32>
    %c0_2 = arith.constant 0 : index
    %c0_3 = arith.constant 0 : index
    %4 = vector.load %arg3[%c0_2, %c0_3] : memref<8x512xf32, #tpu.memory_space<vmem>>, vector<8x512xf32>
    %c0_4 = arith.constant 0 : index
    %c0_5 = arith.constant 0 : index
    %5 = vector.load %arg4[%c0_4, %c0_5] : memref<512x128xf32, #tpu.memory_space<vmem>>, vector<512x128xf32>
    %cst = arith.constant dense<0.000000e+00> : vector<8x128xf32>
    %6 = tpu.matmul %4, %5, %cst {dimension_numbers = #tpu.dot_dimension_numbers<[1], [0], [0], [1], [0, 0, 1, 1], [], []>} : vector<8x512xf32>, vector<512x128xf32>, vector<8x128xf32> -> vector<8x128xf32>
    %7 = arith.addf %3, %6 : vector<8x128xf32>
    %c0_6 = arith.constant 0 : index
    %c0_7 = arith.constant 0 : index
    %8 = vector.load %arg7[%c0_6, %c0_7] : memref<8x128xf32, #tpu.memory_space<vmem>>, vector<8x128xf32>
    tpu.vector_store %arg7[%c0_6, %c0_7], %7 {strides = array<i32>} : memref<8x128xf32, #tpu.memory_space<vmem>>, vector<8x128xf32>,
    %c1_i32 = arith.constant 1 : i32
    %9 = arith.cmpi eq, %arg2, %c1_i32 : i32
    %10 = arith.extui %9 : i1 to i32
    %c0_i32_8 = arith.constant 0 : i32
    %11 = arith.cmpi ne, %10, %c0_i32_8 : i32
    scf.if %11 {
      %c0_9 = arith.constant 0 : index
      %c0_10 = arith.constant 0 : index
      %12 = vector.load %arg7[%c0_9, %c0_10] : memref<8x128xf32, #tpu.memory_space<vmem>>, vector<8x128xf32>
      %c0_11 = arith.constant 0 : index
      %c0_12 = arith.constant 0 : index
      %13 = vector.load %arg5[%c0_11, %c0_12] : memref<1x128xf32, #tpu.memory_space<vmem>>, vector<1x128xf32>
      %14 = vector.broadcast %13 : vector<1x128xf32> to vector<8x128xf32>
      %15 = arith.addf %12, %14 : vector<8x128xf32>
      %c0_13 = arith.constant 0 : index
      %c0_14 = arith.constant 0 : index
      %16 = vector.load %arg6[%c0_13, %c0_14] : memref<8x128xf32, #tpu.memory_space<vmem>>, vector<8x128xf32>
      tpu.vector_store %arg6[%c0_13, %c0_14], %15 {strides = array<i32>} : memref<8x128xf32, #tpu.memory_space<vmem>>, vector<8x128xf32>,
    } else {
    }
    return
  }
  func.func @transform_0(%arg0: i32, %arg1: i32, %arg2: i32) -> (i32, i32) {
    %c0_i32 = arith.constant 0 : i32
    return %arg0, %arg2 : i32, i32
  }
  func.func @transform_1(%arg0: i32, %arg1: i32, %arg2: i32) -> (i32, i32) {
    %c0_i32 = arith.constant 0 : i32
    return %arg2, %arg1 : i32, i32
  }
  func.func @transform_2(%arg0: i32, %arg1: i32, %arg2: i32) -> (i32, i32) {
    %c0_i32 = arith.constant 0 : i32
    %c0_i32_0 = arith.constant 0 : i32
    return %c0_i32, %arg1 : i32, i32
  }
  func.func @transform_3(%arg0: i32, %arg1: i32, %arg2: i32) -> (i32, i32) {
    %c0_i32 = arith.constant 0 : i32
    return %arg0, %arg1 : i32, i32
  }
}

module attributes {stable_mosaic.version = 11 : i64} {
  func.func @_matmul_bias_kernel(%arg0: i32, %arg1: i32, %arg2: i32, %arg3: memref<72x128xf32, #tpu.memory_space<vmem>>, %arg4: memref<128x256xf32, #tpu.memory_space<vmem>>, %arg5: memref<1x256xf32, #tpu.memory_space<vmem>>, %arg6: memref<72x256xf32, #tpu.memory_space<vmem>>, %arg7: memref<72x256xf32, #tpu.memory_space<vmem>>) attributes {dimension_semantics = [#tpu.dimension_semantics<parallel>, #tpu.dimension_semantics<parallel>, #tpu.dimension_semantics<arbitrary>], iteration_bounds = array<i64: 1, 2, 1>, scalar_prefetch = 0 : i64, scratch_operands = 1 : i64, tpu.core_type = #tpu.core_type<tc>, window_params = [{transform_indices = @transform_0, window_bounds = array<i64: 72, 128>}, {transform_indices = @transform_1, window_bounds = array<i64: 128, 256>}, {transform_indices = @transform_2, window_bounds = array<i64: 1, 256>}, {transform_indices = @transform_3, window_bounds = array<i64: 72, 256>}]} {
    %c0_i32 = arith.constant 0 : i32
    %0 = arith.cmpi eq, %arg2, %c0_i32 : i32
    %1 = arith.extui %0 : i1 to i32
    %c0_i32_0 = arith.constant 0 : i32
    %2 = arith.cmpi ne, %1, %c0_i32_0 : i32
    scf.if %2 {
      %cst_10 = arith.constant 0.000000e+00 : f32
      %12 = vector.broadcast %cst_10 : f32 to vector<72x256xf32>
      %c0_11 = arith.constant 0 : index
      %c0_12 = arith.constant 0 : index
      %13 = vector.load %arg7[%c0_11, %c0_12] : memref<72x256xf32, #tpu.memory_space<vmem>>, vector<72x256xf32>
      tpu.vector_store %arg7[%c0_11, %c0_12], %12 {strides = array<i32>} : memref<72x256xf32, #tpu.memory_space<vmem>>, vector<72x256xf32>,
    } else {
    }
    %c0 = arith.constant 0 : index
    %c0_1 = arith.constant 0 : index
    %3 = vector.load %arg7[%c0, %c0_1] : memref<72x256xf32, #tpu.memory_space<vmem>>, vector<72x256xf32>
    %c0_2 = arith.constant 0 : index
    %c0_3 = arith.constant 0 : index
    %4 = vector.load %arg3[%c0_2, %c0_3] : memref<72x128xf32, #tpu.memory_space<vmem>>, vector<72x128xf32>
    %c0_4 = arith.constant 0 : index
    %c0_5 = arith.constant 0 : index
    %5 = vector.load %arg4[%c0_4, %c0_5] : memref<128x256xf32, #tpu.memory_space<vmem>>, vector<128x256xf32>
    %cst = arith.constant dense<0.000000e+00> : vector<72x256xf32>
    %6 = tpu.matmul %4, %5, %cst {dimension_numbers = #tpu.dot_dimension_numbers<[1], [0], [0], [1], [0, 0, 1, 1], [], []>} : vector<72x128xf32>, vector<128x256xf32>, vector<72x256xf32> -> vector<72x256xf32>
    %7 = arith.addf %3, %6 : vector<72x256xf32>
    %c0_6 = arith.constant 0 : index
    %c0_7 = arith.constant 0 : index
    %8 = vector.load %arg7[%c0_6, %c0_7] : memref<72x256xf32, #tpu.memory_space<vmem>>, vector<72x256xf32>
    tpu.vector_store %arg7[%c0_6, %c0_7], %7 {strides = array<i32>} : memref<72x256xf32, #tpu.memory_space<vmem>>, vector<72x256xf32>,
    %c0_i32_8 = arith.constant 0 : i32
    %9 = arith.cmpi eq, %arg2, %c0_i32_8 : i32
    %10 = arith.extui %9 : i1 to i32
    %c0_i32_9 = arith.constant 0 : i32
    %11 = arith.cmpi ne, %10, %c0_i32_9 : i32
    scf.if %11 {
      %c0_10 = arith.constant 0 : index
      %c0_11 = arith.constant 0 : index
      %12 = vector.load %arg7[%c0_10, %c0_11] : memref<72x256xf32, #tpu.memory_space<vmem>>, vector<72x256xf32>
      %c0_12 = arith.constant 0 : index
      %c0_13 = arith.constant 0 : index
      %13 = vector.load %arg5[%c0_12, %c0_13] : memref<1x256xf32, #tpu.memory_space<vmem>>, vector<1x256xf32>
      %14 = vector.broadcast %13 : vector<1x256xf32> to vector<72x256xf32>
      %15 = arith.addf %12, %14 : vector<72x256xf32>
      %c0_14 = arith.constant 0 : index
      %c0_15 = arith.constant 0 : index
      %16 = vector.load %arg6[%c0_14, %c0_15] : memref<72x256xf32, #tpu.memory_space<vmem>>, vector<72x256xf32>
      tpu.vector_store %arg6[%c0_14, %c0_15], %15 {strides = array<i32>} : memref<72x256xf32, #tpu.memory_space<vmem>>, vector<72x256xf32>,
    } else {
    }
    return
  }
  func.func @transform_0(%arg0: i32, %arg1: i32, %arg2: i32) -> (i32, i32) {
    %c0_i32 = arith.constant 0 : i32
    return %arg0, %arg2 : i32, i32
  }
  func.func @transform_1(%arg0: i32, %arg1: i32, %arg2: i32) -> (i32, i32) {
    %c0_i32 = arith.constant 0 : i32
    return %arg2, %arg1 : i32, i32
  }
  func.func @transform_2(%arg0: i32, %arg1: i32, %arg2: i32) -> (i32, i32) {
    %c0_i32 = arith.constant 0 : i32
    %c0_i32_0 = arith.constant 0 : i32
    return %c0_i32, %arg1 : i32, i32
  }
  func.func @transform_3(%arg0: i32, %arg1: i32, %arg2: i32) -> (i32, i32) {
    %c0_i32 = arith.constant 0 : i32
    return %arg0, %arg1 : i32, i32
  }
}

module attributes {stable_mosaic.version = 11 : i64} {
  func.func @_gru_kernel(%arg0: i32, %arg1: i32, %arg2: memref<9x8x384xf32, #tpu.memory_space<vmem>>, %arg3: memref<128x384xf32, #tpu.memory_space<vmem>>, %arg4: memref<1x128xf32, #tpu.memory_space<vmem>>, %arg5: memref<9x8x128xf32, #tpu.memory_space<vmem>>, %arg6: memref<8x128xf32, #tpu.memory_space<vmem>>) attributes {dimension_semantics = [#tpu.dimension_semantics<parallel>, #tpu.dimension_semantics<arbitrary>], iteration_bounds = array<i64: 1, 1>, scalar_prefetch = 0 : i64, scratch_operands = 1 : i64, tpu.core_type = #tpu.core_type<tc>, window_params = [{transform_indices = @transform_0, window_bounds = array<i64: 9, 8, 384>}, {pipeline_mode = #tpu.pipeline_mode<synchronous>, transform_indices = @transform_1, window_bounds = array<i64: 128, 384>}, {pipeline_mode = #tpu.pipeline_mode<synchronous>, transform_indices = @transform_2, window_bounds = array<i64: 1, 128>}, {transform_indices = @transform_3, window_bounds = array<i64: 9, 8, 128>}]} {
    %c0_i32 = arith.constant 0 : i32
    %0 = arith.cmpi eq, %arg1, %c0_i32 : i32
    %1 = arith.extui %0 : i1 to i32
    %c0_i32_0 = arith.constant 0 : i32
    %2 = arith.cmpi ne, %1, %c0_i32_0 : i32
    scf.if %2 {
      %cst_80 = arith.constant 0.000000e+00 : f32
      %324 = vector.broadcast %cst_80 : f32 to vector<8x128xf32>
      %c0_81 = arith.constant 0 : index
      %c0_82 = arith.constant 0 : index
      %325 = vector.load %arg6[%c0_81, %c0_82] : memref<8x128xf32, #tpu.memory_space<vmem>>, vector<8x128xf32>
      tpu.vector_store %arg6[%c0_81, %c0_82], %324 {strides = array<i32>} : memref<8x128xf32, #tpu.memory_space<vmem>>, vector<8x128xf32>,
    } else {
    }
    %c0 = arith.constant 0 : index
    %c0_1 = arith.constant 0 : index
    %3 = vector.load %arg3[%c0, %c0_1] : memref<128x384xf32, #tpu.memory_space<vmem>>, vector<128x384xf32>
    %c0_2 = arith.constant 0 : index
    %c0_3 = arith.constant 0 : index
    %4 = vector.load %arg4[%c0_2, %c0_3] : memref<1x128xf32, #tpu.memory_space<vmem>>, vector<1x128xf32>
    %5 = vector.shape_cast %4 : vector<1x128xf32> to vector<1x128xf32>
    %6 = vector.broadcast %5 : vector<1x128xf32> to vector<8x128xf32>
    %c0_4 = arith.constant 0 : index
    %c0_5 = arith.constant 0 : index
    %7 = vector.load %arg6[%c0_4, %c0_5] : memref<8x128xf32, #tpu.memory_space<vmem>>, vector<8x128xf32>
    %c0_i32_6 = arith.constant 0 : i32
    %8 = arith.index_cast %c0_i32_6 : i32 to index
    %c0_7 = arith.constant 0 : index
    %c0_8 = arith.constant 0 : index
    %9 = vector.load %arg2[%8, %c0_7, %c0_8] : memref<9x8x384xf32, #tpu.memory_space<vmem>>, vector<1x8x384xf32>
    %10 = vector.shape_cast %9 : vector<1x8x384xf32> to vector<8x384xf32>
    %cst = arith.constant dense<0.000000e+00> : vector<8x384xf32>
    %11 = tpu.matmul %7, %3, %cst {dimension_numbers = #tpu.dot_dimension_numbers<[1], [0], [0], [1], [0, 0, 1, 1], [], []>} : vector<8x128xf32>, vector<128x384xf32>, vector<8x384xf32> -> vector<8x384xf32>
    %12 = vector.extract_strided_slice %10 {offsets = [0, 0], sizes = [8, 128], strides = [1, 1]} : vector<8x384xf32> to vector<8x128xf32>
    %13 = vector.extract_strided_slice %11 {offsets = [0, 0], sizes = [8, 128], strides = [1, 1]} : vector<8x384xf32> to vector<8x128xf32>
    %14 = arith.addf %12, %13 : vector<8x128xf32>
    %15 = arith.negf %14 : vector<8x128xf32>
    %16 = math.exp %15 : vector<8x128xf32>
    %cst_9 = arith.constant 1.000000e+00 : f32
    %17 = vector.broadcast %cst_9 : f32 to vector<8x128xf32>
    %18 = arith.addf %17, %16 : vector<8x128xf32>
    %19 = arith.divf %17, %18 : vector<8x128xf32>
    %20 = vector.extract_strided_slice %10 {offsets = [0, 128], sizes = [8, 128], strides = [1, 1]} : vector<8x384xf32> to vector<8x128xf32>
    %21 = vector.extract_strided_slice %11 {offsets = [0, 128], sizes = [8, 128], strides = [1, 1]} : vector<8x384xf32> to vector<8x128xf32>
    %22 = arith.addf %20, %21 : vector<8x128xf32>
    %23 = arith.negf %22 : vector<8x128xf32>
    %24 = math.exp %23 : vector<8x128xf32>
    %cst_10 = arith.constant 1.000000e+00 : f32
    %25 = vector.broadcast %cst_10 : f32 to vector<8x128xf32>
    %26 = arith.addf %25, %24 : vector<8x128xf32>
    %27 = arith.divf %25, %26 : vector<8x128xf32>
    %28 = vector.extract_strided_slice %10 {offsets = [0, 256], sizes = [8, 128], strides = [1, 1]} : vector<8x384xf32> to vector<8x128xf32>
    %29 = vector.extract_strided_slice %11 {offsets = [0, 256], sizes = [8, 128], strides = [1, 1]} : vector<8x384xf32> to vector<8x128xf32>
    %30 = arith.addf %29, %6 : vector<8x128xf32>
    %31 = arith.mulf %19, %30 : vector<8x128xf32>
    %32 = arith.addf %28, %31 : vector<8x128xf32>
    %33 = math.tanh %32 : vector<8x128xf32>
    %cst_11 = arith.constant 1.000000e+00 : f32
    %34 = vector.broadcast %cst_11 : f32 to vector<8x128xf32>
    %35 = arith.subf %34, %27 : vector<8x128xf32>
    %36 = arith.mulf %35, %33 : vector<8x128xf32>
    %37 = arith.mulf %27, %7 : vector<8x128xf32>
    %38 = arith.addf %36, %37 : vector<8x128xf32>
    %39 = arith.index_cast %c0_i32_6 : i32 to index
    %c0_12 = arith.constant 0 : index
    %c0_13 = arith.constant 0 : index
    %40 = vector.load %arg5[%39, %c0_12, %c0_13] : memref<9x8x128xf32, #tpu.memory_space<vmem>>, vector<1x8x128xf32>
    %41 = vector.shape_cast %40 : vector<1x8x128xf32> to vector<8x128xf32>
    %42 = vector.shape_cast %38 : vector<8x128xf32> to vector<1x8x128xf32>
    tpu.vector_store %arg5[%39, %c0_12, %c0_13], %42 {strides = array<i32>} : memref<9x8x128xf32, #tpu.memory_space<vmem>>, vector<1x8x128xf32>,
    %c1_i32 = arith.constant 1 : i32
    %43 = arith.index_cast %c1_i32 : i32 to index
    %c0_14 = arith.constant 0 : index
    %c0_15 = arith.constant 0 : index
    %44 = vector.load %arg2[%43, %c0_14, %c0_15] : memref<9x8x384xf32, #tpu.memory_space<vmem>>, vector<1x8x384xf32>
    %45 = vector.shape_cast %44 : vector<1x8x384xf32> to vector<8x384xf32>
    %cst_16 = arith.constant dense<0.000000e+00> : vector<8x384xf32>
    %46 = tpu.matmul %38, %3, %cst_16 {dimension_numbers = #tpu.dot_dimension_numbers<[1], [0], [0], [1], [0, 0, 1, 1], [], []>} : vector<8x128xf32>, vector<128x384xf32>, vector<8x384xf32> -> vector<8x384xf32>
    %47 = vector.extract_strided_slice %45 {offsets = [0, 0], sizes = [8, 128], strides = [1, 1]} : vector<8x384xf32> to vector<8x128xf32>
    %48 = vector.extract_strided_slice %46 {offsets = [0, 0], sizes = [8, 128], strides = [1, 1]} : vector<8x384xf32> to vector<8x128xf32>
    %49 = arith.addf %47, %48 : vector<8x128xf32>
    %50 = arith.negf %49 : vector<8x128xf32>
    %51 = math.exp %50 : vector<8x128xf32>
    %cst_17 = arith.constant 1.000000e+00 : f32
    %52 = vector.broadcast %cst_17 : f32 to vector<8x128xf32>
    %53 = arith.addf %52, %51 : vector<8x128xf32>
    %54 = arith.divf %52, %53 : vector<8x128xf32>
    %55 = vector.extract_strided_slice %45 {offsets = [0, 128], sizes = [8, 128], strides = [1, 1]} : vector<8x384xf32> to vector<8x128xf32>
    %56 = vector.extract_strided_slice %46 {offsets = [0, 128], sizes = [8, 128], strides = [1, 1]} : vector<8x384xf32> to vector<8x128xf32>
    %57 = arith.addf %55, %56 : vector<8x128xf32>
    %58 = arith.negf %57 : vector<8x128xf32>
    %59 = math.exp %58 : vector<8x128xf32>
    %cst_18 = arith.constant 1.000000e+00 : f32
    %60 = vector.broadcast %cst_18 : f32 to vector<8x128xf32>
    %61 = arith.addf %60, %59 : vector<8x128xf32>
    %62 = arith.divf %60, %61 : vector<8x128xf32>
    %63 = vector.extract_strided_slice %45 {offsets = [0, 256], sizes = [8, 128], strides = [1, 1]} : vector<8x384xf32> to vector<8x128xf32>
    %64 = vector.extract_strided_slice %46 {offsets = [0, 256], sizes = [8, 128], strides = [1, 1]} : vector<8x384xf32> to vector<8x128xf32>
    %65 = arith.addf %64, %6 : vector<8x128xf32>
    %66 = arith.mulf %54, %65 : vector<8x128xf32>
    %67 = arith.addf %63, %66 : vector<8x128xf32>
    %68 = math.tanh %67 : vector<8x128xf32>
    %cst_19 = arith.constant 1.000000e+00 : f32
    %69 = vector.broadcast %cst_19 : f32 to vector<8x128xf32>
    %70 = arith.subf %69, %62 : vector<8x128xf32>
    %71 = arith.mulf %70, %68 : vector<8x128xf32>
    %72 = arith.mulf %62, %38 : vector<8x128xf32>
    %73 = arith.addf %71, %72 : vector<8x128xf32>
    %74 = arith.index_cast %c1_i32 : i32 to index
    %c0_20 = arith.constant 0 : index
    %c0_21 = arith.constant 0 : index
    %75 = vector.load %arg5[%74, %c0_20, %c0_21] : memref<9x8x128xf32, #tpu.memory_space<vmem>>, vector<1x8x128xf32>
    %76 = vector.shape_cast %75 : vector<1x8x128xf32> to vector<8x128xf32>
    %77 = vector.shape_cast %73 : vector<8x128xf32> to vector<1x8x128xf32>
    tpu.vector_store %arg5[%74, %c0_20, %c0_21], %77 {strides = array<i32>} : memref<9x8x128xf32, #tpu.memory_space<vmem>>, vector<1x8x128xf32>,
    %c2_i32 = arith.constant 2 : i32
    %78 = arith.index_cast %c2_i32 : i32 to index
    %c0_22 = arith.constant 0 : index
    %c0_23 = arith.constant 0 : index
    %79 = vector.load %arg2[%78, %c0_22, %c0_23] : memref<9x8x384xf32, #tpu.memory_space<vmem>>, vector<1x8x384xf32>
    %80 = vector.shape_cast %79 : vector<1x8x384xf32> to vector<8x384xf32>
    %cst_24 = arith.constant dense<0.000000e+00> : vector<8x384xf32>
    %81 = tpu.matmul %73, %3, %cst_24 {dimension_numbers = #tpu.dot_dimension_numbers<[1], [0], [0], [1], [0, 0, 1, 1], [], []>} : vector<8x128xf32>, vector<128x384xf32>, vector<8x384xf32> -> vector<8x384xf32>
    %82 = vector.extract_strided_slice %80 {offsets = [0, 0], sizes = [8, 128], strides = [1, 1]} : vector<8x384xf32> to vector<8x128xf32>
    %83 = vector.extract_strided_slice %81 {offsets = [0, 0], sizes = [8, 128], strides = [1, 1]} : vector<8x384xf32> to vector<8x128xf32>
    %84 = arith.addf %82, %83 : vector<8x128xf32>
    %85 = arith.negf %84 : vector<8x128xf32>
    %86 = math.exp %85 : vector<8x128xf32>
    %cst_25 = arith.constant 1.000000e+00 : f32
    %87 = vector.broadcast %cst_25 : f32 to vector<8x128xf32>
    %88 = arith.addf %87, %86 : vector<8x128xf32>
    %89 = arith.divf %87, %88 : vector<8x128xf32>
    %90 = vector.extract_strided_slice %80 {offsets = [0, 128], sizes = [8, 128], strides = [1, 1]} : vector<8x384xf32> to vector<8x128xf32>
    %91 = vector.extract_strided_slice %81 {offsets = [0, 128], sizes = [8, 128], strides = [1, 1]} : vector<8x384xf32> to vector<8x128xf32>
    %92 = arith.addf %90, %91 : vector<8x128xf32>
    %93 = arith.negf %92 : vector<8x128xf32>
    %94 = math.exp %93 : vector<8x128xf32>
    %cst_26 = arith.constant 1.000000e+00 : f32
    %95 = vector.broadcast %cst_26 : f32 to vector<8x128xf32>
    %96 = arith.addf %95, %94 : vector<8x128xf32>
    %97 = arith.divf %95, %96 : vector<8x128xf32>
    %98 = vector.extract_strided_slice %80 {offsets = [0, 256], sizes = [8, 128], strides = [1, 1]} : vector<8x384xf32> to vector<8x128xf32>
    %99 = vector.extract_strided_slice %81 {offsets = [0, 256], sizes = [8, 128], strides = [1, 1]} : vector<8x384xf32> to vector<8x128xf32>
    %100 = arith.addf %99, %6 : vector<8x128xf32>
    %101 = arith.mulf %89, %100 : vector<8x128xf32>
    %102 = arith.addf %98, %101 : vector<8x128xf32>
    %103 = math.tanh %102 : vector<8x128xf32>
    %cst_27 = arith.constant 1.000000e+00 : f32
    %104 = vector.broadcast %cst_27 : f32 to vector<8x128xf32>
    %105 = arith.subf %104, %97 : vector<8x128xf32>
    %106 = arith.mulf %105, %103 : vector<8x128xf32>
    %107 = arith.mulf %97, %73 : vector<8x128xf32>
    %108 = arith.addf %106, %107 : vector<8x128xf32>
    %109 = arith.index_cast %c2_i32 : i32 to index
    %c0_28 = arith.constant 0 : index
    %c0_29 = arith.constant 0 : index
    %110 = vector.load %arg5[%109, %c0_28, %c0_29] : memref<9x8x128xf32, #tpu.memory_space<vmem>>, vector<1x8x128xf32>
    %111 = vector.shape_cast %110 : vector<1x8x128xf32> to vector<8x128xf32>
    %112 = vector.shape_cast %108 : vector<8x128xf32> to vector<1x8x128xf32>
    tpu.vector_store %arg5[%109, %c0_28, %c0_29], %112 {strides = array<i32>} : memref<9x8x128xf32, #tpu.memory_space<vmem>>, vector<1x8x128xf32>,
    %c3_i32 = arith.constant 3 : i32
    %113 = arith.index_cast %c3_i32 : i32 to index
    %c0_30 = arith.constant 0 : index
    %c0_31 = arith.constant 0 : index
    %114 = vector.load %arg2[%113, %c0_30, %c0_31] : memref<9x8x384xf32, #tpu.memory_space<vmem>>, vector<1x8x384xf32>
    %115 = vector.shape_cast %114 : vector<1x8x384xf32> to vector<8x384xf32>
    %cst_32 = arith.constant dense<0.000000e+00> : vector<8x384xf32>
    %116 = tpu.matmul %108, %3, %cst_32 {dimension_numbers = #tpu.dot_dimension_numbers<[1], [0], [0], [1], [0, 0, 1, 1], [], []>} : vector<8x128xf32>, vector<128x384xf32>, vector<8x384xf32> -> vector<8x384xf32>
    %117 = vector.extract_strided_slice %115 {offsets = [0, 0], sizes = [8, 128], strides = [1, 1]} : vector<8x384xf32> to vector<8x128xf32>
    %118 = vector.extract_strided_slice %116 {offsets = [0, 0], sizes = [8, 128], strides = [1, 1]} : vector<8x384xf32> to vector<8x128xf32>
    %119 = arith.addf %117, %118 : vector<8x128xf32>
    %120 = arith.negf %119 : vector<8x128xf32>
    %121 = math.exp %120 : vector<8x128xf32>
    %cst_33 = arith.constant 1.000000e+00 : f32
    %122 = vector.broadcast %cst_33 : f32 to vector<8x128xf32>
    %123 = arith.addf %122, %121 : vector<8x128xf32>
    %124 = arith.divf %122, %123 : vector<8x128xf32>
    %125 = vector.extract_strided_slice %115 {offsets = [0, 128], sizes = [8, 128], strides = [1, 1]} : vector<8x384xf32> to vector<8x128xf32>
    %126 = vector.extract_strided_slice %116 {offsets = [0, 128], sizes = [8, 128], strides = [1, 1]} : vector<8x384xf32> to vector<8x128xf32>
    %127 = arith.addf %125, %126 : vector<8x128xf32>
    %128 = arith.negf %127 : vector<8x128xf32>
    %129 = math.exp %128 : vector<8x128xf32>
    %cst_34 = arith.constant 1.000000e+00 : f32
    %130 = vector.broadcast %cst_34 : f32 to vector<8x128xf32>
    %131 = arith.addf %130, %129 : vector<8x128xf32>
    %132 = arith.divf %130, %131 : vector<8x128xf32>
    %133 = vector.extract_strided_slice %115 {offsets = [0, 256], sizes = [8, 128], strides = [1, 1]} : vector<8x384xf32> to vector<8x128xf32>
    %134 = vector.extract_strided_slice %116 {offsets = [0, 256], sizes = [8, 128], strides = [1, 1]} : vector<8x384xf32> to vector<8x128xf32>
    %135 = arith.addf %134, %6 : vector<8x128xf32>
    %136 = arith.mulf %124, %135 : vector<8x128xf32>
    %137 = arith.addf %133, %136 : vector<8x128xf32>
    %138 = math.tanh %137 : vector<8x128xf32>
    %cst_35 = arith.constant 1.000000e+00 : f32
    %139 = vector.broadcast %cst_35 : f32 to vector<8x128xf32>
    %140 = arith.subf %139, %132 : vector<8x128xf32>
    %141 = arith.mulf %140, %138 : vector<8x128xf32>
    %142 = arith.mulf %132, %108 : vector<8x128xf32>
    %143 = arith.addf %141, %142 : vector<8x128xf32>
    %144 = arith.index_cast %c3_i32 : i32 to index
    %c0_36 = arith.constant 0 : index
    %c0_37 = arith.constant 0 : index
    %145 = vector.load %arg5[%144, %c0_36, %c0_37] : memref<9x8x128xf32, #tpu.memory_space<vmem>>, vector<1x8x128xf32>
    %146 = vector.shape_cast %145 : vector<1x8x128xf32> to vector<8x128xf32>
    %147 = vector.shape_cast %143 : vector<8x128xf32> to vector<1x8x128xf32>
    tpu.vector_store %arg5[%144, %c0_36, %c0_37], %147 {strides = array<i32>} : memref<9x8x128xf32, #tpu.memory_space<vmem>>, vector<1x8x128xf32>,
    %c4_i32 = arith.constant 4 : i32
    %148 = arith.index_cast %c4_i32 : i32 to index
    %c0_38 = arith.constant 0 : index
    %c0_39 = arith.constant 0 : index
    %149 = vector.load %arg2[%148, %c0_38, %c0_39] : memref<9x8x384xf32, #tpu.memory_space<vmem>>, vector<1x8x384xf32>
    %150 = vector.shape_cast %149 : vector<1x8x384xf32> to vector<8x384xf32>
    %cst_40 = arith.constant dense<0.000000e+00> : vector<8x384xf32>
    %151 = tpu.matmul %143, %3, %cst_40 {dimension_numbers = #tpu.dot_dimension_numbers<[1], [0], [0], [1], [0, 0, 1, 1], [], []>} : vector<8x128xf32>, vector<128x384xf32>, vector<8x384xf32> -> vector<8x384xf32>
    %152 = vector.extract_strided_slice %150 {offsets = [0, 0], sizes = [8, 128], strides = [1, 1]} : vector<8x384xf32> to vector<8x128xf32>
    %153 = vector.extract_strided_slice %151 {offsets = [0, 0], sizes = [8, 128], strides = [1, 1]} : vector<8x384xf32> to vector<8x128xf32>
    %154 = arith.addf %152, %153 : vector<8x128xf32>
    %155 = arith.negf %154 : vector<8x128xf32>
    %156 = math.exp %155 : vector<8x128xf32>
    %cst_41 = arith.constant 1.000000e+00 : f32
    %157 = vector.broadcast %cst_41 : f32 to vector<8x128xf32>
    %158 = arith.addf %157, %156 : vector<8x128xf32>
    %159 = arith.divf %157, %158 : vector<8x128xf32>
    %160 = vector.extract_strided_slice %150 {offsets = [0, 128], sizes = [8, 128], strides = [1, 1]} : vector<8x384xf32> to vector<8x128xf32>
    %161 = vector.extract_strided_slice %151 {offsets = [0, 128], sizes = [8, 128], strides = [1, 1]} : vector<8x384xf32> to vector<8x128xf32>
    %162 = arith.addf %160, %161 : vector<8x128xf32>
    %163 = arith.negf %162 : vector<8x128xf32>
    %164 = math.exp %163 : vector<8x128xf32>
    %cst_42 = arith.constant 1.000000e+00 : f32
    %165 = vector.broadcast %cst_42 : f32 to vector<8x128xf32>
    %166 = arith.addf %165, %164 : vector<8x128xf32>
    %167 = arith.divf %165, %166 : vector<8x128xf32>
    %168 = vector.extract_strided_slice %150 {offsets = [0, 256], sizes = [8, 128], strides = [1, 1]} : vector<8x384xf32> to vector<8x128xf32>
    %169 = vector.extract_strided_slice %151 {offsets = [0, 256], sizes = [8, 128], strides = [1, 1]} : vector<8x384xf32> to vector<8x128xf32>
    %170 = arith.addf %169, %6 : vector<8x128xf32>
    %171 = arith.mulf %159, %170 : vector<8x128xf32>
    %172 = arith.addf %168, %171 : vector<8x128xf32>
    %173 = math.tanh %172 : vector<8x128xf32>
    %cst_43 = arith.constant 1.000000e+00 : f32
    %174 = vector.broadcast %cst_43 : f32 to vector<8x128xf32>
    %175 = arith.subf %174, %167 : vector<8x128xf32>
    %176 = arith.mulf %175, %173 : vector<8x128xf32>
    %177 = arith.mulf %167, %143 : vector<8x128xf32>
    %178 = arith.addf %176, %177 : vector<8x128xf32>
    %179 = arith.index_cast %c4_i32 : i32 to index
    %c0_44 = arith.constant 0 : index
    %c0_45 = arith.constant 0 : index
    %180 = vector.load %arg5[%179, %c0_44, %c0_45] : memref<9x8x128xf32, #tpu.memory_space<vmem>>, vector<1x8x128xf32>
    %181 = vector.shape_cast %180 : vector<1x8x128xf32> to vector<8x128xf32>
    %182 = vector.shape_cast %178 : vector<8x128xf32> to vector<1x8x128xf32>
    tpu.vector_store %arg5[%179, %c0_44, %c0_45], %182 {strides = array<i32>} : memref<9x8x128xf32, #tpu.memory_space<vmem>>, vector<1x8x128xf32>,
    %c5_i32 = arith.constant 5 : i32
    %183 = arith.index_cast %c5_i32 : i32 to index
    %c0_46 = arith.constant 0 : index
    %c0_47 = arith.constant 0 : index
    %184 = vector.load %arg2[%183, %c0_46, %c0_47] : memref<9x8x384xf32, #tpu.memory_space<vmem>>, vector<1x8x384xf32>
    %185 = vector.shape_cast %184 : vector<1x8x384xf32> to vector<8x384xf32>
    %cst_48 = arith.constant dense<0.000000e+00> : vector<8x384xf32>
    %186 = tpu.matmul %178, %3, %cst_48 {dimension_numbers = #tpu.dot_dimension_numbers<[1], [0], [0], [1], [0, 0, 1, 1], [], []>} : vector<8x128xf32>, vector<128x384xf32>, vector<8x384xf32> -> vector<8x384xf32>
    %187 = vector.extract_strided_slice %185 {offsets = [0, 0], sizes = [8, 128], strides = [1, 1]} : vector<8x384xf32> to vector<8x128xf32>
    %188 = vector.extract_strided_slice %186 {offsets = [0, 0], sizes = [8, 128], strides = [1, 1]} : vector<8x384xf32> to vector<8x128xf32>
    %189 = arith.addf %187, %188 : vector<8x128xf32>
    %190 = arith.negf %189 : vector<8x128xf32>
    %191 = math.exp %190 : vector<8x128xf32>
    %cst_49 = arith.constant 1.000000e+00 : f32
    %192 = vector.broadcast %cst_49 : f32 to vector<8x128xf32>
    %193 = arith.addf %192, %191 : vector<8x128xf32>
    %194 = arith.divf %192, %193 : vector<8x128xf32>
    %195 = vector.extract_strided_slice %185 {offsets = [0, 128], sizes = [8, 128], strides = [1, 1]} : vector<8x384xf32> to vector<8x128xf32>
    %196 = vector.extract_strided_slice %186 {offsets = [0, 128], sizes = [8, 128], strides = [1, 1]} : vector<8x384xf32> to vector<8x128xf32>
    %197 = arith.addf %195, %196 : vector<8x128xf32>
    %198 = arith.negf %197 : vector<8x128xf32>
    %199 = math.exp %198 : vector<8x128xf32>
    %cst_50 = arith.constant 1.000000e+00 : f32
    %200 = vector.broadcast %cst_50 : f32 to vector<8x128xf32>
    %201 = arith.addf %200, %199 : vector<8x128xf32>
    %202 = arith.divf %200, %201 : vector<8x128xf32>
    %203 = vector.extract_strided_slice %185 {offsets = [0, 256], sizes = [8, 128], strides = [1, 1]} : vector<8x384xf32> to vector<8x128xf32>
    %204 = vector.extract_strided_slice %186 {offsets = [0, 256], sizes = [8, 128], strides = [1, 1]} : vector<8x384xf32> to vector<8x128xf32>
    %205 = arith.addf %204, %6 : vector<8x128xf32>
    %206 = arith.mulf %194, %205 : vector<8x128xf32>
    %207 = arith.addf %203, %206 : vector<8x128xf32>
    %208 = math.tanh %207 : vector<8x128xf32>
    %cst_51 = arith.constant 1.000000e+00 : f32
    %209 = vector.broadcast %cst_51 : f32 to vector<8x128xf32>
    %210 = arith.subf %209, %202 : vector<8x128xf32>
    %211 = arith.mulf %210, %208 : vector<8x128xf32>
    %212 = arith.mulf %202, %178 : vector<8x128xf32>
    %213 = arith.addf %211, %212 : vector<8x128xf32>
    %214 = arith.index_cast %c5_i32 : i32 to index
    %c0_52 = arith.constant 0 : index
    %c0_53 = arith.constant 0 : index
    %215 = vector.load %arg5[%214, %c0_52, %c0_53] : memref<9x8x128xf32, #tpu.memory_space<vmem>>, vector<1x8x128xf32>
    %216 = vector.shape_cast %215 : vector<1x8x128xf32> to vector<8x128xf32>
    %217 = vector.shape_cast %213 : vector<8x128xf32> to vector<1x8x128xf32>
    tpu.vector_store %arg5[%214, %c0_52, %c0_53], %217 {strides = array<i32>} : memref<9x8x128xf32, #tpu.memory_space<vmem>>, vector<1x8x128xf32>,
    %c6_i32 = arith.constant 6 : i32
    %218 = arith.index_cast %c6_i32 : i32 to index
    %c0_54 = arith.constant 0 : index
    %c0_55 = arith.constant 0 : index
    %219 = vector.load %arg2[%218, %c0_54, %c0_55] : memref<9x8x384xf32, #tpu.memory_space<vmem>>, vector<1x8x384xf32>
    %220 = vector.shape_cast %219 : vector<1x8x384xf32> to vector<8x384xf32>
    %cst_56 = arith.constant dense<0.000000e+00> : vector<8x384xf32>
    %221 = tpu.matmul %213, %3, %cst_56 {dimension_numbers = #tpu.dot_dimension_numbers<[1], [0], [0], [1], [0, 0, 1, 1], [], []>} : vector<8x128xf32>, vector<128x384xf32>, vector<8x384xf32> -> vector<8x384xf32>
    %222 = vector.extract_strided_slice %220 {offsets = [0, 0], sizes = [8, 128], strides = [1, 1]} : vector<8x384xf32> to vector<8x128xf32>
    %223 = vector.extract_strided_slice %221 {offsets = [0, 0], sizes = [8, 128], strides = [1, 1]} : vector<8x384xf32> to vector<8x128xf32>
    %224 = arith.addf %222, %223 : vector<8x128xf32>
    %225 = arith.negf %224 : vector<8x128xf32>
    %226 = math.exp %225 : vector<8x128xf32>
    %cst_57 = arith.constant 1.000000e+00 : f32
    %227 = vector.broadcast %cst_57 : f32 to vector<8x128xf32>
    %228 = arith.addf %227, %226 : vector<8x128xf32>
    %229 = arith.divf %227, %228 : vector<8x128xf32>
    %230 = vector.extract_strided_slice %220 {offsets = [0, 128], sizes = [8, 128], strides = [1, 1]} : vector<8x384xf32> to vector<8x128xf32>
    %231 = vector.extract_strided_slice %221 {offsets = [0, 128], sizes = [8, 128], strides = [1, 1]} : vector<8x384xf32> to vector<8x128xf32>
    %232 = arith.addf %230, %231 : vector<8x128xf32>
    %233 = arith.negf %232 : vector<8x128xf32>
    %234 = math.exp %233 : vector<8x128xf32>
    %cst_58 = arith.constant 1.000000e+00 : f32
    %235 = vector.broadcast %cst_58 : f32 to vector<8x128xf32>
    %236 = arith.addf %235, %234 : vector<8x128xf32>
    %237 = arith.divf %235, %236 : vector<8x128xf32>
    %238 = vector.extract_strided_slice %220 {offsets = [0, 256], sizes = [8, 128], strides = [1, 1]} : vector<8x384xf32> to vector<8x128xf32>
    %239 = vector.extract_strided_slice %221 {offsets = [0, 256], sizes = [8, 128], strides = [1, 1]} : vector<8x384xf32> to vector<8x128xf32>
    %240 = arith.addf %239, %6 : vector<8x128xf32>
    %241 = arith.mulf %229, %240 : vector<8x128xf32>
    %242 = arith.addf %238, %241 : vector<8x128xf32>
    %243 = math.tanh %242 : vector<8x128xf32>
    %cst_59 = arith.constant 1.000000e+00 : f32
    %244 = vector.broadcast %cst_59 : f32 to vector<8x128xf32>
    %245 = arith.subf %244, %237 : vector<8x128xf32>
    %246 = arith.mulf %245, %243 : vector<8x128xf32>
    %247 = arith.mulf %237, %213 : vector<8x128xf32>
    %248 = arith.addf %246, %247 : vector<8x128xf32>
    %249 = arith.index_cast %c6_i32 : i32 to index
    %c0_60 = arith.constant 0 : index
    %c0_61 = arith.constant 0 : index
    %250 = vector.load %arg5[%249, %c0_60, %c0_61] : memref<9x8x128xf32, #tpu.memory_space<vmem>>, vector<1x8x128xf32>
    %251 = vector.shape_cast %250 : vector<1x8x128xf32> to vector<8x128xf32>
    %252 = vector.shape_cast %248 : vector<8x128xf32> to vector<1x8x128xf32>
    tpu.vector_store %arg5[%249, %c0_60, %c0_61], %252 {strides = array<i32>} : memref<9x8x128xf32, #tpu.memory_space<vmem>>, vector<1x8x128xf32>,
    %c7_i32 = arith.constant 7 : i32
    %253 = arith.index_cast %c7_i32 : i32 to index
    %c0_62 = arith.constant 0 : index
    %c0_63 = arith.constant 0 : index
    %254 = vector.load %arg2[%253, %c0_62, %c0_63] : memref<9x8x384xf32, #tpu.memory_space<vmem>>, vector<1x8x384xf32>
    %255 = vector.shape_cast %254 : vector<1x8x384xf32> to vector<8x384xf32>
    %cst_64 = arith.constant dense<0.000000e+00> : vector<8x384xf32>
    %256 = tpu.matmul %248, %3, %cst_64 {dimension_numbers = #tpu.dot_dimension_numbers<[1], [0], [0], [1], [0, 0, 1, 1], [], []>} : vector<8x128xf32>, vector<128x384xf32>, vector<8x384xf32> -> vector<8x384xf32>
    %257 = vector.extract_strided_slice %255 {offsets = [0, 0], sizes = [8, 128], strides = [1, 1]} : vector<8x384xf32> to vector<8x128xf32>
    %258 = vector.extract_strided_slice %256 {offsets = [0, 0], sizes = [8, 128], strides = [1, 1]} : vector<8x384xf32> to vector<8x128xf32>
    %259 = arith.addf %257, %258 : vector<8x128xf32>
    %260 = arith.negf %259 : vector<8x128xf32>
    %261 = math.exp %260 : vector<8x128xf32>
    %cst_65 = arith.constant 1.000000e+00 : f32
    %262 = vector.broadcast %cst_65 : f32 to vector<8x128xf32>
    %263 = arith.addf %262, %261 : vector<8x128xf32>
    %264 = arith.divf %262, %263 : vector<8x128xf32>
    %265 = vector.extract_strided_slice %255 {offsets = [0, 128], sizes = [8, 128], strides = [1, 1]} : vector<8x384xf32> to vector<8x128xf32>
    %266 = vector.extract_strided_slice %256 {offsets = [0, 128], sizes = [8, 128], strides = [1, 1]} : vector<8x384xf32> to vector<8x128xf32>
    %267 = arith.addf %265, %266 : vector<8x128xf32>
    %268 = arith.negf %267 : vector<8x128xf32>
    %269 = math.exp %268 : vector<8x128xf32>
    %cst_66 = arith.constant 1.000000e+00 : f32
    %270 = vector.broadcast %cst_66 : f32 to vector<8x128xf32>
    %271 = arith.addf %270, %269 : vector<8x128xf32>
    %272 = arith.divf %270, %271 : vector<8x128xf32>
    %273 = vector.extract_strided_slice %255 {offsets = [0, 256], sizes = [8, 128], strides = [1, 1]} : vector<8x384xf32> to vector<8x128xf32>
    %274 = vector.extract_strided_slice %256 {offsets = [0, 256], sizes = [8, 128], strides = [1, 1]} : vector<8x384xf32> to vector<8x128xf32>
    %275 = arith.addf %274, %6 : vector<8x128xf32>
    %276 = arith.mulf %264, %275 : vector<8x128xf32>
    %277 = arith.addf %273, %276 : vector<8x128xf32>
    %278 = math.tanh %277 : vector<8x128xf32>
    %cst_67 = arith.constant 1.000000e+00 : f32
    %279 = vector.broadcast %cst_67 : f32 to vector<8x128xf32>
    %280 = arith.subf %279, %272 : vector<8x128xf32>
    %281 = arith.mulf %280, %278 : vector<8x128xf32>
    %282 = arith.mulf %272, %248 : vector<8x128xf32>
    %283 = arith.addf %281, %282 : vector<8x128xf32>
    %284 = arith.index_cast %c7_i32 : i32 to index
    %c0_68 = arith.constant 0 : index
    %c0_69 = arith.constant 0 : index
    %285 = vector.load %arg5[%284, %c0_68, %c0_69] : memref<9x8x128xf32, #tpu.memory_space<vmem>>, vector<1x8x128xf32>
    %286 = vector.shape_cast %285 : vector<1x8x128xf32> to vector<8x128xf32>
    %287 = vector.shape_cast %283 : vector<8x128xf32> to vector<1x8x128xf32>
    tpu.vector_store %arg5[%284, %c0_68, %c0_69], %287 {strides = array<i32>} : memref<9x8x128xf32, #tpu.memory_space<vmem>>, vector<1x8x128xf32>,
    %c8_i32 = arith.constant 8 : i32
    %288 = arith.index_cast %c8_i32 : i32 to index
    %c0_70 = arith.constant 0 : index
    %c0_71 = arith.constant 0 : index
    %289 = vector.load %arg2[%288, %c0_70, %c0_71] : memref<9x8x384xf32, #tpu.memory_space<vmem>>, vector<1x8x384xf32>
    %290 = vector.shape_cast %289 : vector<1x8x384xf32> to vector<8x384xf32>
    %cst_72 = arith.constant dense<0.000000e+00> : vector<8x384xf32>
    %291 = tpu.matmul %283, %3, %cst_72 {dimension_numbers = #tpu.dot_dimension_numbers<[1], [0], [0], [1], [0, 0, 1, 1], [], []>} : vector<8x128xf32>, vector<128x384xf32>, vector<8x384xf32> -> vector<8x384xf32>
    %292 = vector.extract_strided_slice %290 {offsets = [0, 0], sizes = [8, 128], strides = [1, 1]} : vector<8x384xf32> to vector<8x128xf32>
    %293 = vector.extract_strided_slice %291 {offsets = [0, 0], sizes = [8, 128], strides = [1, 1]} : vector<8x384xf32> to vector<8x128xf32>
    %294 = arith.addf %292, %293 : vector<8x128xf32>
    %295 = arith.negf %294 : vector<8x128xf32>
    %296 = math.exp %295 : vector<8x128xf32>
    %cst_73 = arith.constant 1.000000e+00 : f32
    %297 = vector.broadcast %cst_73 : f32 to vector<8x128xf32>
    %298 = arith.addf %297, %296 : vector<8x128xf32>
    %299 = arith.divf %297, %298 : vector<8x128xf32>
    %300 = vector.extract_strided_slice %290 {offsets = [0, 128], sizes = [8, 128], strides = [1, 1]} : vector<8x384xf32> to vector<8x128xf32>
    %301 = vector.extract_strided_slice %291 {offsets = [0, 128], sizes = [8, 128], strides = [1, 1]} : vector<8x384xf32> to vector<8x128xf32>
    %302 = arith.addf %300, %301 : vector<8x128xf32>
    %303 = arith.negf %302 : vector<8x128xf32>
    %304 = math.exp %303 : vector<8x128xf32>
    %cst_74 = arith.constant 1.000000e+00 : f32
    %305 = vector.broadcast %cst_74 : f32 to vector<8x128xf32>
    %306 = arith.addf %305, %304 : vector<8x128xf32>
    %307 = arith.divf %305, %306 : vector<8x128xf32>
    %308 = vector.extract_strided_slice %290 {offsets = [0, 256], sizes = [8, 128], strides = [1, 1]} : vector<8x384xf32> to vector<8x128xf32>
    %309 = vector.extract_strided_slice %291 {offsets = [0, 256], sizes = [8, 128], strides = [1, 1]} : vector<8x384xf32> to vector<8x128xf32>
    %310 = arith.addf %309, %6 : vector<8x128xf32>
    %311 = arith.mulf %299, %310 : vector<8x128xf32>
    %312 = arith.addf %308, %311 : vector<8x128xf32>
    %313 = math.tanh %312 : vector<8x128xf32>
    %cst_75 = arith.constant 1.000000e+00 : f32
    %314 = vector.broadcast %cst_75 : f32 to vector<8x128xf32>
    %315 = arith.subf %314, %307 : vector<8x128xf32>
    %316 = arith.mulf %315, %313 : vector<8x128xf32>
    %317 = arith.mulf %307, %283 : vector<8x128xf32>
    %318 = arith.addf %316, %317 : vector<8x128xf32>
    %319 = arith.index_cast %c8_i32 : i32 to index
    %c0_76 = arith.constant 0 : index
    %c0_77 = arith.constant 0 : index
    %320 = vector.load %arg5[%319, %c0_76, %c0_77] : memref<9x8x128xf32, #tpu.memory_space<vmem>>, vector<1x8x128xf32>
    %321 = vector.shape_cast %320 : vector<1x8x128xf32> to vector<8x128xf32>
    %322 = vector.shape_cast %318 : vector<8x128xf32> to vector<1x8x128xf32>
    tpu.vector_store %arg5[%319, %c0_76, %c0_77], %322 {strides = array<i32>} : memref<9x8x128xf32, #tpu.memory_space<vmem>>, vector<1x8x128xf32>,
    %c9_i32 = arith.constant 9 : i32
    %c0_78 = arith.constant 0 : index
    %c0_79 = arith.constant 0 : index
    %323 = vector.load %arg6[%c0_78, %c0_79] : memref<8x128xf32, #tpu.memory_space<vmem>>, vector<8x128xf32>
    tpu.vector_store %arg6[%c0_78, %c0_79], %318 {strides = array<i32>} : memref<8x128xf32, #tpu.memory_space<vmem>>, vector<8x128xf32>,
    return
  }
  func.func @transform_0(%arg0: i32, %arg1: i32) -> (i32, i32, i32) {
    %c0_i32 = arith.constant 0 : i32
    %c0_i32_0 = arith.constant 0 : i32
    return %arg1, %arg0, %c0_i32 : i32, i32, i32
  }
  func.func @transform_1(%arg0: i32, %arg1: i32) -> (i32, i32) {
    %c0_i32 = arith.constant 0 : i32
    %c0_i32_0 = arith.constant 0 : i32
    %c0_i32_1 = arith.constant 0 : i32
    return %c0_i32, %c0_i32_0 : i32, i32
  }
  func.func @transform_2(%arg0: i32, %arg1: i32) -> (i32, i32) {
    %c0_i32 = arith.constant 0 : i32
    %c0_i32_0 = arith.constant 0 : i32
    %c0_i32_1 = arith.constant 0 : i32
    return %c0_i32, %c0_i32_0 : i32, i32
  }
  func.func @transform_3(%arg0: i32, %arg1: i32) -> (i32, i32, i32) {
    %c0_i32 = arith.constant 0 : i32
    %c0_i32_0 = arith.constant 0 : i32
    return %arg1, %arg0, %c0_i32 : i32, i32, i32
  }
}

module attributes {stable_mosaic.version = 11 : i64} {
  func.func @_matmul_bias_kernel(%arg0: i32, %arg1: i32, %arg2: i32, %arg3: memref<72x128xf32, #tpu.memory_space<vmem>>, %arg4: memref<128x128xf32, #tpu.memory_space<vmem>>, %arg5: memref<1x128xf32, #tpu.memory_space<vmem>>, %arg6: memref<72x128xf32, #tpu.memory_space<vmem>>, %arg7: memref<72x128xf32, #tpu.memory_space<vmem>>) attributes {dimension_semantics = [#tpu.dimension_semantics<parallel>, #tpu.dimension_semantics<parallel>, #tpu.dimension_semantics<arbitrary>], iteration_bounds = array<i64: 1, 1, 1>, scalar_prefetch = 0 : i64, scratch_operands = 1 : i64, tpu.core_type = #tpu.core_type<tc>, window_params = [{transform_indices = @transform_0, window_bounds = array<i64: 72, 128>}, {transform_indices = @transform_1, window_bounds = array<i64: 128, 128>}, {transform_indices = @transform_2, window_bounds = array<i64: 1, 128>}, {transform_indices = @transform_3, window_bounds = array<i64: 72, 128>}]} {
    %c0_i32 = arith.constant 0 : i32
    %0 = arith.cmpi eq, %arg2, %c0_i32 : i32
    %1 = arith.extui %0 : i1 to i32
    %c0_i32_0 = arith.constant 0 : i32
    %2 = arith.cmpi ne, %1, %c0_i32_0 : i32
    scf.if %2 {
      %cst_10 = arith.constant 0.000000e+00 : f32
      %12 = vector.broadcast %cst_10 : f32 to vector<72x128xf32>
      %c0_11 = arith.constant 0 : index
      %c0_12 = arith.constant 0 : index
      %13 = vector.load %arg7[%c0_11, %c0_12] : memref<72x128xf32, #tpu.memory_space<vmem>>, vector<72x128xf32>
      tpu.vector_store %arg7[%c0_11, %c0_12], %12 {strides = array<i32>} : memref<72x128xf32, #tpu.memory_space<vmem>>, vector<72x128xf32>,
    } else {
    }
    %c0 = arith.constant 0 : index
    %c0_1 = arith.constant 0 : index
    %3 = vector.load %arg7[%c0, %c0_1] : memref<72x128xf32, #tpu.memory_space<vmem>>, vector<72x128xf32>
    %c0_2 = arith.constant 0 : index
    %c0_3 = arith.constant 0 : index
    %4 = vector.load %arg3[%c0_2, %c0_3] : memref<72x128xf32, #tpu.memory_space<vmem>>, vector<72x128xf32>
    %c0_4 = arith.constant 0 : index
    %c0_5 = arith.constant 0 : index
    %5 = vector.load %arg4[%c0_4, %c0_5] : memref<128x128xf32, #tpu.memory_space<vmem>>, vector<128x128xf32>
    %cst = arith.constant dense<0.000000e+00> : vector<72x128xf32>
    %6 = tpu.matmul %4, %5, %cst {dimension_numbers = #tpu.dot_dimension_numbers<[1], [0], [0], [1], [0, 0, 1, 1], [], []>} : vector<72x128xf32>, vector<128x128xf32>, vector<72x128xf32> -> vector<72x128xf32>
    %7 = arith.addf %3, %6 : vector<72x128xf32>
    %c0_6 = arith.constant 0 : index
    %c0_7 = arith.constant 0 : index
    %8 = vector.load %arg7[%c0_6, %c0_7] : memref<72x128xf32, #tpu.memory_space<vmem>>, vector<72x128xf32>
    tpu.vector_store %arg7[%c0_6, %c0_7], %7 {strides = array<i32>} : memref<72x128xf32, #tpu.memory_space<vmem>>, vector<72x128xf32>,
    %c0_i32_8 = arith.constant 0 : i32
    %9 = arith.cmpi eq, %arg2, %c0_i32_8 : i32
    %10 = arith.extui %9 : i1 to i32
    %c0_i32_9 = arith.constant 0 : i32
    %11 = arith.cmpi ne, %10, %c0_i32_9 : i32
    scf.if %11 {
      %c0_10 = arith.constant 0 : index
      %c0_11 = arith.constant 0 : index
      %12 = vector.load %arg7[%c0_10, %c0_11] : memref<72x128xf32, #tpu.memory_space<vmem>>, vector<72x128xf32>
      %c0_12 = arith.constant 0 : index
      %c0_13 = arith.constant 0 : index
      %13 = vector.load %arg5[%c0_12, %c0_13] : memref<1x128xf32, #tpu.memory_space<vmem>>, vector<1x128xf32>
      %14 = vector.broadcast %13 : vector<1x128xf32> to vector<72x128xf32>
      %15 = arith.addf %12, %14 : vector<72x128xf32>
      %c0_14 = arith.constant 0 : index
      %c0_15 = arith.constant 0 : index
      %16 = vector.load %arg6[%c0_14, %c0_15] : memref<72x128xf32, #tpu.memory_space<vmem>>, vector<72x128xf32>
      tpu.vector_store %arg6[%c0_14, %c0_15], %15 {strides = array<i32>} : memref<72x128xf32, #tpu.memory_space<vmem>>, vector<72x128xf32>,
    } else {
    }
    return
  }
  func.func @transform_0(%arg0: i32, %arg1: i32, %arg2: i32) -> (i32, i32) {
    %c0_i32 = arith.constant 0 : i32
    return %arg0, %arg2 : i32, i32
  }
  func.func @transform_1(%arg0: i32, %arg1: i32, %arg2: i32) -> (i32, i32) {
    %c0_i32 = arith.constant 0 : i32
    return %arg2, %arg1 : i32, i32
  }
  func.func @transform_2(%arg0: i32, %arg1: i32, %arg2: i32) -> (i32, i32) {
    %c0_i32 = arith.constant 0 : i32
    %c0_i32_0 = arith.constant 0 : i32
    return %c0_i32, %arg1 : i32, i32
  }
  func.func @transform_3(%arg0: i32, %arg1: i32, %arg2: i32) -> (i32, i32) {
    %c0_i32 = arith.constant 0 : i32
    return %arg0, %arg1 : i32, i32
  }
}

</mosaic_0001>

<bundles_post_ra>
// kernel: baseline_gru_forward.4
= control target key start
LH: loop header
LB: loop body
LE: loop exit
PB: predicated region body
PF: predicated region fallthrough
CT: control target
= control target key end

     0   :  { %s616_s12 = smov 0   ;;  %s618_s13 = smov 0   ;;  %s733_s0 = inlined_call_operand.vmem [shape: f32[8,1024], index: 0, kind: input, shape index: {}]   ;;  %s734_s1 = inlined_call_operand.vmem [shape: f32[1024,128], index: 1, kind: input, shape index: {}]   ;;  %s735_s2 = inlined_call_operand.vmem [shape: f32[1,128], index: 2, kind: input, shape index: {}]   ;;  %s736_s3 = inlined_call_operand.vmem [shape: f32[8,128], index: 3, kind: output, shape index: {}]  }
   0x1   :  { %s620_s14 = smov 0  }
   0x2 LB: > { %s25_s15 = sadd.s32 1, %s589_s13  ;;  %p535_p0 = scmp.ge.s32.totalorder %s593_s14, 1  ;;  %s593_s14 = sphi %s620_s14, %s13_s14   ;;  %s589_s13 = sphi %s618_s13, %s738_s13   ;;  %s585_s12 = sphi %s616_s12, %s737_s12  }
   0x3   : > { %p26_p1 = scmp.ge.s32.totalorder %s25_s15, 2  ;;  %p189_p2 = scmp.lt.s32.totalorder %s593_s14, 3 }
   0x5   : > { %s740_s15 = smov (%p26_p1, %s25_s15), 0  ;;  %p190_p3 = pnand %p535_p0, %p189_p2 }
   0x6   : > { %s536_s16 = sshll.u32 (!%p190_p3), %s585_s12, 2  ;;  %s538_s17 = sshll.u32 (!%p190_p3), %s585_s12, 6 }
   0x7   : > { %193 = sbr.rel (%p190_p3) target bundleno = 204 (0xcc), region = 32  ;;  %p233_p4 = scmp.lt.s32.totalorder (!%p190_p3), %s536_s16, 7 }
   0x8   : > { %p241_p5 = scmp.lt.s32.totalorder (!%p190_p3), %s538_s17, 127  ;;  %p540_p6 = scmp.ne.s32.totalorder (!%p190_p3), %s585_s12, 0 }
   0xc   : > { %s742_s16 = smov (!%p233_p4, %s536_s16), 7  ;;  %s744_s17 = smov (!%p241_p5, %s538_s17), 127 }
   0xd   : > { %s537_s18 = sshll.u32 %s742_s16, 3  ;;  %s539_s22 = sshll.u32 %s744_s17, 3 }
   0xe   : > { %s641_s21 = scalar_lea.vmem %s733_s0, %s537_s18  ;;  %s646_s25 = scalar_lea.vmem %s734_s1, %s539_s22 }
   0xf   : > { %262 = sbr.rel (%p540_p6) target bundleno = 22 (0x16), region = 36 }
  0x14   : > { %v595_v0 = vmov 0.0  }
  0x15   : > { %263 = vst [vmem:[#allocation2] sm:$0xff] %v595_v0 }
  0x16 PF: > { %v316_v1 = vld [vmem:[%s646_s25 + $0x178] sm:$0xff]  ;;  %v315_v2 = vld [vmem:[%s646_s25 + $0x170] sm:$0xff]  ;;  %v314_v6 = vld [vmem:[%s646_s25 + $0x168] sm:$0xff]  ;;  %p541_p7 = scmp.ne.s32.totalorder %s585_s12, 1 }
  0x17   : > { %v332_v3 = vld [vmem:[%s646_s25 + $0x1f8] sm:$0xff]  ;;  %373 = vmatpush.msra.mxu2 %v316_v1  ;;  %v331_v7 = vld [vmem:[%s646_s25 + $0x1f0] sm:$0xff]  ;;  %v330_v10 = vld [vmem:[%s646_s25 + $0x1e8] sm:$0xff] }
  0x18   : > { %393 = vmatpush.msra.mxu3 %v332_v3  ;;  %v284_v4 = vld [vmem:[%s646_s25 + $0x78] sm:$0xff]  ;;  %v283_v8 = vld [vmem:[%s646_s25 + $0x70] sm:$0xff]  ;;  %v282_v11 = vld [vmem:[%s646_s25 + $0x68] sm:$0xff] }
  0x19   : > { %v300_v5 = vld [vmem:[%s646_s25 + $0xf8] sm:$0xff]  ;;  %333 = vmatpush.msra.mxu0 %v284_v4  ;;  %v299_v9 = vld [vmem:[%s646_s25 + $0xf0] sm:$0xff]  ;;  %374 = vmatpush.msra.mxu2 %v315_v2  ;;  %v313_v12 = vld [vmem:[%s646_s25 + $0x160] sm:$0xff] }
  0x1a   : > { %353 = vmatpush.msra.mxu1 %v300_v5  ;;  %394 = vmatpush.msra.mxu3 %v331_v7  ;;  %v298_v13 = vld [vmem:[%s646_s25 + $0xe8] sm:$0xff]  ;;  %v329_v14 = vld [vmem:[%s646_s25 + $0x1e0] sm:$0xff]  ;;  %v312_v17 = vld [vmem:[%s646_s25 + $0x158] sm:$0xff] }
  0x1b   : > { %334 = vmatpush.msra.mxu0 %v283_v8  ;;  %375 = vmatpush.msra.mxu2 %v314_v6  ;;  %v281_v15 = vld [vmem:[%s646_s25 + $0x60] sm:$0xff]  ;;  %v328_v18 = vld [vmem:[%s646_s25 + $0x1d8] sm:$0xff]  ;;  %v311_v21 = vld [vmem:[%s646_s25 + $0x150] sm:$0xff] }
  0x1c   : > { %354 = vmatpush.msra.mxu1 %v299_v9  ;;  %395 = vmatpush.msra.mxu3 %v330_v10  ;;  %v297_v16 = vld [vmem:[%s646_s25 + $0xe0] sm:$0xff]  ;;  %v280_v19 = vld [vmem:[%s646_s25 + $0x58] sm:$0xff]  ;;  %v327_v22 = vld [vmem:[%s646_s25 + $0x1d0] sm:$0xff] }
  0x1d   : > { %335 = vmatpush.msra.mxu0 %v282_v11  ;;  %376 = vmatpush.msra.mxu2 %v313_v12  ;;  %v296_v20 = vld [vmem:[%s646_s25 + $0xd8] sm:$0xff]  ;;  %v279_v23 = vld [vmem:[%s646_s25 + $0x50] sm:$0xff]  ;;  %v310_v25 = vld [vmem:[%s646_s25 + $0x148] sm:$0xff] }
  0x1e   : > { %355 = vmatpush.msra.mxu1 %v298_v13  ;;  %396 = vmatpush.msra.mxu3 %v329_v14  ;;  %v295_v24 = vld [vmem:[%s646_s25 + $0xd0] sm:$0xff]  ;;  %v326_v26 = vld [vmem:[%s646_s25 + $0x1c8] sm:$0xff]  ;;  %v309_v29 = vld [vmem:[%s646_s25 + $0x140] sm:$0xff] }
  0x1f   : > { %336 = vmatpush.msra.mxu0 %v281_v15  ;;  %377 = vmatpush.msra.mxu2 %v312_v17  ;;  %v278_v27 = vld [vmem:[%s646_s25 + $0x48] sm:$0xff]  ;;  %v325_v30 = vld [vmem:[%s646_s25 + $0x1c0] sm:$0xff]  ;;  %v308_v33 = vld [vmem:[%s646_s25 + $0x138] sm:$0xff] }
  0x20   : > { %356 = vmatpush.msra.mxu1 %v297_v16  ;;  %397 = vmatpush.msra.mxu3 %v328_v18  ;;  %v294_v28 = vld [vmem:[%s646_s25 + $0xc8] sm:$0xff]  ;;  %v277_v31 = vld [vmem:[%s646_s25 + $0x40] sm:$0xff]  ;;  %v324_v34 = vld [vmem:[%s646_s25 + $0x1b8] sm:$0xff] }
  0x21   : > { %337 = vmatpush.msra.mxu0 %v280_v19  ;;  %378 = vmatpush.msra.mxu2 %v311_v21  ;;  %v293_v32 = vld [vmem:[%s646_s25 + $0xc0] sm:$0xff]  ;;  %v276_v35 = vld [vmem:[%s646_s25 + $0x38] sm:$0xff]  ;;  %v307_v37 = vld [vmem:[%s646_s25 + $0x130] sm:$0xff] }
  0x22   : > { %357 = vmatpush.msra.mxu1 %v296_v20  ;;  %398 = vmatpush.msra.mxu3 %v327_v22  ;;  %v292_v36 = vld [vmem:[%s646_s25 + $0xb8] sm:$0xff]  ;;  %v323_v38 = vld [vmem:[%s646_s25 + $0x1b0] sm:$0xff]  ;;  %v306_v41 = vld [vmem:[%s646_s25 + $0x128] sm:$0xff] }
  0x23   : > { %338 = vmatpush.msra.mxu0 %v279_v23  ;;  %379 = vmatpush.msra.mxu2 %v310_v25  ;;  %v275_v39 = vld [vmem:[%s646_s25 + $0x30] sm:$0xff]  ;;  %v322_v42 = vld [vmem:[%s646_s25 + $0x1a8] sm:$0xff]  ;;  %v305_v45 = vld [vmem:[%s646_s25 + $0x120] sm:$0xff] }
  0x24   : > { %358 = vmatpush.msra.mxu1 %v295_v24  ;;  %399 = vmatpush.msra.mxu3 %v326_v26  ;;  %v291_v40 = vld [vmem:[%s646_s25 + $0xb0] sm:$0xff]  ;;  %v274_v43 = vld [vmem:[%s646_s25 + $0x28] sm:$0xff]  ;;  %v321_v46 = vld [vmem:[%s646_s25 + $0x1a0] sm:$0xff] }
  0x25   : > { %339 = vmatpush.msra.mxu0 %v278_v27  ;;  %380 = vmatpush.msra.mxu2 %v309_v29  ;;  %v290_v44 = vld [vmem:[%s646_s25 + $0xa8] sm:$0xff]  ;;  %v273_v47 = vld [vmem:[%s646_s25 + $0x20] sm:$0xff]  ;;  %v304_v49 = vld [vmem:[%s646_s25 + $0x118] sm:$0xff] }
  0x26   : > { %359 = vmatpush.msra.mxu1 %v294_v28  ;;  %400 = vmatpush.msra.mxu3 %v325_v30  ;;  %v289_v48 = vld [vmem:[%s646_s25 + $0xa0] sm:$0xff]  ;;  %v320_v50 = vld [vmem:[%s646_s25 + $0x198] sm:$0xff]  ;;  %v303_v53 = vld [vmem:[%s646_s25 + $0x110] sm:$0xff] }
  0x27   : > { %340 = vmatpush.msra.mxu0 %v277_v31  ;;  %381 = vmatpush.msra.mxu2 %v308_v33  ;;  %v272_v51 = vld [vmem:[%s646_s25 + $0x18] sm:$0xff]  ;;  %v319_v54 = vld [vmem:[%s646_s25 + $0x190] sm:$0xff]  ;;  %v302_v57 = vld [vmem:[%s646_s25 + $0x108] sm:$0xff] }
  0x28   : > { %360 = vmatpush.msra.mxu1 %v293_v32  ;;  %401 = vmatpush.msra.mxu3 %v324_v34  ;;  %v288_v52 = vld [vmem:[%s646_s25 + $0x98] sm:$0xff]  ;;  %v271_v55 = vld [vmem:[%s646_s25 + $0x10] sm:$0xff]  ;;  %v318_v58 = vld [vmem:[%s646_s25 + $0x188] sm:$0xff] }
  0x29   : > { %341 = vmatpush.msra.mxu0 %v276_v35  ;;  %382 = vmatpush.msra.mxu2 %v307_v37  ;;  %v287_v56 = vld [vmem:[%s646_s25 + $0x90] sm:$0xff]  ;;  %v270_v59 = vld [vmem:[%s646_s25 + $0x8] sm:$0xff]  ;;  %v301_v61 = vld [vmem:[%s646_s25 + $0x100] sm:$0xff] }
  0x2a   : > { %361 = vmatpush.msra.mxu1 %v292_v36  ;;  %402 = vmatpush.msra.mxu3 %v323_v38  ;;  %v286_v60 = vld [vmem:[%s646_s25 + $0x88] sm:$0xff]  ;;  %v317_v62 = vld [vmem:[%s646_s25 + $0x180] sm:$0xff]  ;;  %v267_v63 = vld [vmem:[%s641_s21 + $0x10] sm:$0xff] }
  0x2b   : > { %342 = vmatpush.msra.mxu0 %v275_v39  ;;  %383 = vmatpush.msra.mxu2 %v306_v41  ;;  %v268_v0 = vld [vmem:[%s641_s21 + $0x18] sm:$0xff]  ;;  %v269_v1 = vld [vmem:[%s646_s25] sm:$0xff]  ;;  %v266_v4 = vld [vmem:[%s641_s21 + $0x8] sm:$0xff] }
  0x2c   : > { %362 = vmatpush.msra.mxu1 %v291_v40  ;;  %403 = vmatpush.msra.mxu3 %v322_v42  ;;  %v285_v2 = vld [vmem:[%s646_s25 + $0x80] sm:$0xff] }
  0x2d   : > { %343 = vmatpush.msra.mxu0 %v274_v43  ;;  %384 = vmatpush.msra.mxu2 %v305_v45  ;;  %v265_v3 = vld [vmem:[%s641_s21] sm:$0xff] }
  0x2e   : > { %363 = vmatpush.msra.mxu1 %v290_v44  ;;  %404 = vmatpush.msra.mxu3 %v321_v46  ;;  %v264_v11 = vld [vmem:[#allocation2] sm:$0xff] }
  0x2f   : > { %344 = vmatpush.msra.mxu0 %v273_v47  ;;  %385 = vmatpush.msra.mxu2 %v304_v49 }
  0x30   : > { %364 = vmatpush.msra.mxu1 %v289_v48  ;;  %405 = vmatpush.msra.mxu3 %v320_v50 }
  0x31   : > { %345 = vmatpush.msra.mxu0 %v272_v51  ;;  %386 = vmatpush.msra.mxu2 %v303_v53 }
  0x32   : > { %365 = vmatpush.msra.mxu1 %v288_v52  ;;  %406 = vmatpush.msra.mxu3 %v319_v54 }
  0x33   : > { %346 = vmatpush.msra.mxu0 %v271_v55  ;;  %387 = vmatpush.msra.mxu2 %v302_v57 }
  0x34   : > { %366 = vmatpush.msra.mxu1 %v287_v56  ;;  %407 = vmatpush.msra.mxu3 %v318_v58 }
  0x35   : > { %347 = vmatpush.msra.mxu0 %v270_v59  ;;  %388 = vmatpush.msra.mxu2 %v301_v61 }
  0x36   : > { %367 = vmatpush.msra.mxu1 %v286_v60  ;;  %408 = vmatpush.msra.mxu3 %v317_v62 }
  0x37   : > { %389 = vmatmul.f32.vlgmr.msra.gmra.mxu2 %v267_v63  ;;  %409 = vmatmul.f32.vlgmr.msra.gmra.mxu3 %v268_v0 }
  0x38   : > { %348 = vmatpush.msra.mxu0 %v269_v1  ;;  %368 = vmatpush.msra.mxu1 %v285_v2 }
  0x39   : > { %349 = vmatmul.f32.vlgmr.msra.gmra.mxu0 %v265_v3  ;;  %369 = vmatmul.f32.vlgmr.msra.gmra.mxu1 %v266_v4 }
  0xb6   : > { %v350_v5 = vpop.f32.mrf.mxu0  ;;  %v370_v6 = vpop.f32.mrf.mxu1 }
  0xb7   : > { %v371_v7 = vadd.f32 %v370_v6, %v350_v5 }
  0xba   : > { %v390_v8 = vpop.f32.mrf.mxu2  ;;  %v410_v9 = vpop.f32.mrf.mxu3 }
  0xbb   : > { %v391_v10 = vadd.f32 %v390_v8, %v371_v7 }
  0xbd   : > { %v411_v12 = vadd.f32 %v410_v9, %v391_v10  ;;  %418 = sbr.rel (%p541_p7) target bundleno = 204 (0xcc), region = 40 }
  0xbf   : > { %v413_v13 = vadd.f32 %v411_v12, %v264_v11 }
  0xc1   : > { %414 = vst [vmem:[#allocation2] sm:$0xff] %v413_v13 }
  0xc2   : > { %v570_v15 = vld [vmem:[%s735_s2] ss:$0 sm:$0xff] }
  0xc8   : > { %v419_v14 = vld [vmem:[#allocation2] sm:$0xff] }
  0xc9   : > { %v424_v16 = vadd.f32 %v570_v15, %v419_v14 }
  0xcb   : > { %425 = vst [vmem:[%s736_s3] sm:$0xff] %v424_v16 }
  0xcc PF: > { %s13_s14 = sadd.s32 1, %s593_s14   ;;  %s737_s12 = smov %s589_s13 }
  0xcd   : > { %p10_p8 = scmp.ge.s32.totalorder %s13_s14, 4   ;;  %s738_s13 = smov %s740_s15 }
  0xcf   :  { %12 = sbr.rel (!%p10_p8) target bundleno = 2 (0x2), region = 76 }

// kernel: baseline_gru_forward.5
= control target key start
LH: loop header
LB: loop body
LE: loop exit
PB: predicated region body
PF: predicated region fallthrough
CT: control target
= control target key end

     0   :  { %s912_s12 = smov 0   ;;  %s914_s13 = smov 0   ;;  %s1179_s0 = inlined_call_operand.vmem [shape: f32[72,128], index: 0, kind: input, shape index: {}]   ;;  %s1180_s1 = inlined_call_operand.vmem [shape: f32[128,512], index: 1, kind: input, shape index: {}]   ;;  %s1181_s2 = inlined_call_operand.vmem [shape: f32[1,512], index: 2, kind: input, shape index: {}]   ;;  %s1182_s3 = inlined_call_operand.vmem [shape: f32[72,512], index: 3, kind: output, shape index: {}]  }
   0x1   :  { %s916_s14 = smov 0   ;;  %s918_s15 = smov 0  }
   0x2   :  { %s920_s16 = smov 0  }
   0x3 LB: > { %s28_s17 = sadd.s32 1, %s886_s15  ;;  %s762_s18 = sadd.s32 4294967295, %s890_s16   ;;  %s890_s16 = sphi %s920_s16, %s13_s16   ;;  %s886_s15 = sphi %s918_s15, %s1187_s15   ;;  %s882_s14 = sphi %s916_s14, %s1186_s14   ;;  %s878_s13 = sphi %s914_s13, %s1185_s13   ;;  %s874_s12 = sphi %s912_s12, %s1184_s12  }
   0x4   : > { %p30_p0 = scmp.ge.s32.totalorder %s28_s17, 2  ;;  %p76_p1 = scmp.ne.s32.totalorder %s878_s13, %s874_s12 }
   0x5   : > { %p77_p2 = scmp.eq.s32.totalorder %s890_s16, 0  ;;  %p134_p4 = scmp.eq.s32.totalorder %s762_s18, 1 }
   0x6   : > { %s1189_s17 = smov (%p30_p0, %s28_s17), 0  ;;  %s69_s20 = sadd.s32 1, %s878_s13 }
   0x7   : > { %p78_p3 = por %p77_p2, %p76_p1  ;;  %s65_s19 = ssub.s32 %s886_s15, %s1189_s17 }
   0x8   : > { %p67_p5 = scmp.eq.s32.totalorder %s65_s19, 0  ;;  %p947_p6 = por %p134_p4, %p76_p1 }
   0x9   : > { %p766_p7 = scmp.ge.s32.totalorder %s890_s16, 2 }
   0xa   : > { %s952_s22 = scalar_select %p67_p5, %s878_s13, %s69_s20  }
   0xb   : > { %168 = sbr.rel (%p766_p7) target bundleno = 52 (0x34), region = 20 }
  0x10   : > { %171 = sbr.rel (!%p78_p3) target bundleno = 52 (0x34), region = 24  ;;  %s173_s23 = sand.u32 (%p78_p3), 1, %s878_s13  }
  0x11   : > { %s777_s24 = sshll.u32 (%p78_p3), %s886_s15, 4  ;;  %s767_s25 = sshll.u32 (%p78_p3), %s173_s23, 8 }
  0x12   : > { %s960_s28 = scalar_lea.vmem (%p78_p3), %s1180_s1, %s777_s24  ;;  %s965_s29 = scalar_lea.vmem (%p78_p3), [#allocation3], %s767_s25 }
  0x13   : > { %v194_v0 = vld [vmem:[%s960_s28] sm:$0xff] (%p78_p3)  ;;  %v196_v1 = vld [vmem:[%s960_s28 + $0x8] sm:$0xff] (%p78_p3) }
  0x14   : > { %v198_v2 = vld [vmem:[%s960_s28 + $0x20] sm:$0xff] (%p78_p3)  ;;  %195 = vst [vmem:[%s965_s29] sm:$0xff] (%p78_p3), %v194_v0  ;;  %v200_v3 = vld [vmem:[%s960_s28 + $0x28] sm:$0xff] (%p78_p3) }
  0x15   : > { %197 = vst [vmem:[%s965_s29 + $0x8] sm:$0xff] %v196_v1  ;;  %v202_v4 = vld [vmem:[%s960_s28 + $0x40] sm:$0xff]  ;;  %v204_v5 = vld [vmem:[%s960_s28 + $0x48] sm:$0xff] }
  0x16   : > { %199 = vst [vmem:[%s965_s29 + $0x10] sm:$0xff] %v198_v2  ;;  %v206_v6 = vld [vmem:[%s960_s28 + $0x60] sm:$0xff]  ;;  %v208_v7 = vld [vmem:[%s960_s28 + $0x68] sm:$0xff] }
  0x17   : > { %201 = vst [vmem:[%s965_s29 + $0x18] sm:$0xff] %v200_v3  ;;  %v210_v8 = vld [vmem:[%s960_s28 + $0x80] sm:$0xff]  ;;  %v212_v9 = vld [vmem:[%s960_s28 + $0x88] sm:$0xff] }
  0x18   : > { %203 = vst [vmem:[%s965_s29 + $0x20] sm:$0xff] %v202_v4  ;;  %v214_v10 = vld [vmem:[%s960_s28 + $0xa0] sm:$0xff]  ;;  %v216_v11 = vld [vmem:[%s960_s28 + $0xa8] sm:$0xff] }
  0x19   : > { %205 = vst [vmem:[%s965_s29 + $0x28] sm:$0xff] %v204_v5  ;;  %v218_v12 = vld [vmem:[%s960_s28 + $0xc0] sm:$0xff]  ;;  %v220_v13 = vld [vmem:[%s960_s28 + $0xc8] sm:$0xff] }
  0x1a   : > { %207 = vst [vmem:[%s965_s29 + $0x30] sm:$0xff] %v206_v6  ;;  %v222_v14 = vld [vmem:[%s960_s28 + $0xe0] sm:$0xff]  ;;  %v224_v15 = vld [vmem:[%s960_s28 + $0xe8] sm:$0xff] }
  0x1b   : > { %209 = vst [vmem:[%s965_s29 + $0x38] sm:$0xff] %v208_v7  ;;  %v226_v16 = vld [vmem:[%s960_s28 + $0x100] sm:$0xff]  ;;  %v228_v17 = vld [vmem:[%s960_s28 + $0x108] sm:$0xff] }
  0x1c   : > { %211 = vst [vmem:[%s965_s29 + $0x40] sm:$0xff] %v210_v8  ;;  %v230_v18 = vld [vmem:[%s960_s28 + $0x120] sm:$0xff]  ;;  %v232_v19 = vld [vmem:[%s960_s28 + $0x128] sm:$0xff] }
  0x1d   : > { %213 = vst [vmem:[%s965_s29 + $0x48] sm:$0xff] %v212_v9  ;;  %v234_v20 = vld [vmem:[%s960_s28 + $0x140] sm:$0xff]  ;;  %v236_v21 = vld [vmem:[%s960_s28 + $0x148] sm:$0xff] }
  0x1e   : > { %215 = vst [vmem:[%s965_s29 + $0x50] sm:$0xff] %v214_v10  ;;  %v238_v22 = vld [vmem:[%s960_s28 + $0x160] sm:$0xff]  ;;  %v240_v23 = vld [vmem:[%s960_s28 + $0x168] sm:$0xff] }
  0x1f   : > { %217 = vst [vmem:[%s965_s29 + $0x58] sm:$0xff] %v216_v11  ;;  %v242_v24 = vld [vmem:[%s960_s28 + $0x180] sm:$0xff]  ;;  %v244_v25 = vld [vmem:[%s960_s28 + $0x188] sm:$0xff] }
  0x20   : > { %219 = vst [vmem:[%s965_s29 + $0x60] sm:$0xff] %v218_v12  ;;  %v246_v26 = vld [vmem:[%s960_s28 + $0x1a0] sm:$0xff]  ;;  %v248_v27 = vld [vmem:[%s960_s28 + $0x1a8] sm:$0xff] }
  0x21   : > { %221 = vst [vmem:[%s965_s29 + $0x68] sm:$0xff] %v220_v13  ;;  %v250_v28 = vld [vmem:[%s960_s28 + $0x1c0] sm:$0xff]  ;;  %v252_v29 = vld [vmem:[%s960_s28 + $0x1c8] sm:$0xff] }
  0x22   : > { %223 = vst [vmem:[%s965_s29 + $0x70] sm:$0xff] %v222_v14  ;;  %v254_v30 = vld [vmem:[%s960_s28 + $0x1e0] sm:$0xff]  ;;  %v256_v31 = vld [vmem:[%s960_s28 + $0x1e8] sm:$0xff] }
  0x23   : > { %225 = vst [vmem:[%s965_s29 + $0x78] sm:$0xff] %v224_v15 }
  0x24   : > { %227 = vst [vmem:[%s965_s29 + $0x80] sm:$0xff] %v226_v16 }
  0x25   : > { %229 = vst [vmem:[%s965_s29 + $0x88] sm:$0xff] %v228_v17 }
  0x26   : > { %231 = vst [vmem:[%s965_s29 + $0x90] sm:$0xff] %v230_v18 }
  0x27   : > { %233 = vst [vmem:[%s965_s29 + $0x98] sm:$0xff] %v232_v19 }
  0x28   : > { %235 = vst [vmem:[%s965_s29 + $0xa0] sm:$0xff] %v234_v20 }
  0x29   : > { %237 = vst [vmem:[%s965_s29 + $0xa8] sm:$0xff] %v236_v21 }
  0x2a   : > { %239 = vst [vmem:[%s965_s29 + $0xb0] sm:$0xff] %v238_v22 }
  0x2b   : > { %241 = vst [vmem:[%s965_s29 + $0xb8] sm:$0xff] %v240_v23 }
  0x2c   : > { %243 = vst [vmem:[%s965_s29 + $0xc0] sm:$0xff] %v242_v24 }
  0x2d   : > { %245 = vst [vmem:[%s965_s29 + $0xc8] sm:$0xff] %v244_v25 }
  0x2e   : > { %247 = vst [vmem:[%s965_s29 + $0xd0] sm:$0xff] %v246_v26 }
  0x2f   : > { %249 = vst [vmem:[%s965_s29 + $0xd8] sm:$0xff] %v248_v27 }
  0x30   : > { %251 = vst [vmem:[%s965_s29 + $0xe0] sm:$0xff] %v250_v28 }
  0x31   : > { %253 = vst [vmem:[%s965_s29 + $0xe8] sm:$0xff] %v252_v29 }
  0x32   : > { %255 = vst [vmem:[%s965_s29 + $0xf0] sm:$0xff] %v254_v30 }
  0x33   : > { %257 = vst [vmem:[%s965_s29 + $0xf8] sm:$0xff] %v256_v31 }
  0x34 PF: > { %p770_p8 = scmp.ge.s32.totalorder %s890_s16, 1  ;;  %p270_p9 = scmp.lt.s32.totalorder %s890_s16, 3 }
  0x36   : > { %p271_p10 = pnand %p770_p8, %p270_p9 }
  0x37   : > { %s277_s30 = sand.u32 (!%p271_p10), 1, %s874_s12   ;;  %s772_s6 = sshll.u32 (!%p271_p10), %s882_s14, 1 }
  0x38   : > { %274 = sbr.rel (%p271_p10) target bundleno = 268 (0x10c), region = 51  ;;  %s771_s4 = sshll.u32 (!%p271_p10), %s277_s30, 8 }
  0x39   : > { %s1033_s5 = scalar_lea.vmem (!%p271_p10), [#allocation3], %s771_s4  ;;  %p323_p11 = scmp.lt.s32.totalorder (!%p271_p10), %s772_s6, 3 }
  0x3a   : > { %s811_s10 = smul.u32 (!%p271_p10), 144, %s277_s30 }
  0x3c   : > { %s1100_s11 = scalar_lea.vmem (!%p271_p10), [#allocation4], %s811_s10 }
  0x3d   : > { %v408_v32 = vld [vmem:[%s1033_s5 + $0xf0] sm:$0xff]  ;;  %v406_v33 = vld [vmem:[%s1033_s5 + $0xe0] sm:$0xff]  ;;  %v409_v34 = vld [vmem:[%s1033_s5 + $0xf8] sm:$0xff]  ;;  %s1191_s6 = smov (!%p323_p11, %s772_s6), 3  ;;  %s778_s12 = sshll.u32 (%p947_p6), %s882_s14, 4 }
  0x3e   : > { %779 = vmatpush.msra.mxu2 %v408_v32  ;;  %410 = vmatpush.msra.mxu0 %v408_v32  ;;  %v404_v35 = vld [vmem:[%s1033_s5 + $0xd0] sm:$0xff]  ;;  %v407_v36 = vld [vmem:[%s1033_s5 + $0xe8] sm:$0xff]  ;;  %v405_v37 = vld [vmem:[%s1033_s5 + $0xd8] sm:$0xff]  ;;  %s325_s9 = scalar_lea.vmem %s1181_s2, %s1191_s6  ;;  %s1128_s19 = scalar_lea.vmem (%p947_p6), %s1182_s3, %s778_s12 }
  0x3f   : > { %454 = vmatpush.msra.mxu1 %v409_v34  ;;  %795 = vmatpush.msra.mxu3 %v409_v34  ;;  %v402_v38 = vld [vmem:[%s1033_s5 + $0xc0] sm:$0xff]  ;;  %v403_v39 = vld [vmem:[%s1033_s5 + $0xc8] sm:$0xff]  ;;  %v400_v40 = vld [vmem:[%s1033_s5 + $0xb0] sm:$0xff] }
  0x40   : > { %780 = vmatpush.msra.mxu2 %v406_v33  ;;  %411 = vmatpush.msra.mxu0 %v406_v33  ;;  %v401_v41 = vld [vmem:[%s1033_s5 + $0xb8] sm:$0xff]  ;;  %v398_v42 = vld [vmem:[%s1033_s5 + $0xa0] sm:$0xff]  ;;  %v399_v43 = vld [vmem:[%s1033_s5 + $0xa8] sm:$0xff] }
  0x41   : > { %455 = vmatpush.msra.mxu1 %v407_v36  ;;  %796 = vmatpush.msra.mxu3 %v407_v36  ;;  %v396_v44 = vld [vmem:[%s1033_s5 + $0x90] sm:$0xff]  ;;  %v397_v45 = vld [vmem:[%s1033_s5 + $0x98] sm:$0xff]  ;;  %v394_v46 = vld [vmem:[%s1033_s5 + $0x80] sm:$0xff] }
  0x42   : > { %781 = vmatpush.msra.mxu2 %v404_v35  ;;  %412 = vmatpush.msra.mxu0 %v404_v35  ;;  %v395_v47 = vld [vmem:[%s1033_s5 + $0x88] sm:$0xff]  ;;  %v392_v48 = vld [vmem:[%s1033_s5 + $0x70] sm:$0xff]  ;;  %v393_v49 = vld [vmem:[%s1033_s5 + $0x78] sm:$0xff] }
  0x43   : > { %456 = vmatpush.msra.mxu1 %v405_v37  ;;  %797 = vmatpush.msra.mxu3 %v405_v37  ;;  %v390_v50 = vld [vmem:[%s1033_s5 + $0x60] sm:$0xff]  ;;  %v391_v51 = vld [vmem:[%s1033_s5 + $0x68] sm:$0xff]  ;;  %v388_v52 = vld [vmem:[%s1033_s5 + $0x50] sm:$0xff] }
  0x44   : > { %782 = vmatpush.msra.mxu2 %v402_v38  ;;  %413 = vmatpush.msra.mxu0 %v402_v38  ;;  %v389_v53 = vld [vmem:[%s1033_s5 + $0x58] sm:$0xff]  ;;  %v386_v54 = vld [vmem:[%s1033_s5 + $0x40] sm:$0xff]  ;;  %v387_v55 = vld [vmem:[%s1033_s5 + $0x48] sm:$0xff] }
  0x45   : > { %457 = vmatpush.msra.mxu1 %v403_v39  ;;  %798 = vmatpush.msra.mxu3 %v403_v39  ;;  %v384_v56 = vld [vmem:[%s1033_s5 + $0x30] sm:$0xff]  ;;  %v385_v57 = vld [vmem:[%s1033_s5 + $0x38] sm:$0xff]  ;;  %v382_v58 = vld [vmem:[%s1033_s5 + $0x20] sm:$0xff] }
  0x46   : > { %783 = vmatpush.msra.mxu2 %v400_v40  ;;  %414 = vmatpush.msra.mxu0 %v400_v40  ;;  %v383_v59 = vld [vmem:[%s1033_s5 + $0x28] sm:$0xff]  ;;  %v380_v60 = vld [vmem:[%s1033_s5 + $0x10] sm:$0xff]  ;;  %v381_v61 = vld [vmem:[%s1033_s5 + $0x18] sm:$0xff] }
  0x47   : > { %458 = vmatpush.msra.mxu1 %v401_v41  ;;  %799 = vmatpush.msra.mxu3 %v401_v41  ;;  %v378_v62 = vld [vmem:[%s1033_s5] sm:$0xff]  ;;  %v379_v0 = vld [vmem:[%s1033_s5 + $0x8] sm:$0xff]  ;;  %v375_v4 = vld [vmem:[%s1179_s0 + $0x30] sm:$0xff] }
  0x48   : > { %784 = vmatpush.msra.mxu2 %v398_v42  ;;  %415 = vmatpush.msra.mxu0 %v398_v42  ;;  %v373_v63 = vld [vmem:[%s1179_s0 + $0x20] sm:$0xff]  ;;  %v374_v2 = vld [vmem:[%s1179_s0 + $0x28] sm:$0xff]  ;;  %v371_v5 = vld [vmem:[%s1179_s0 + $0x10] sm:$0xff] }
  0x49   : > { %459 = vmatpush.msra.mxu1 %v399_v43  ;;  %800 = vmatpush.msra.mxu3 %v399_v43  ;;  %v369_v1 = vld [vmem:[%s1179_s0] sm:$0xff]  ;;  %v370_v3 = vld [vmem:[%s1179_s0 + $0x8] sm:$0xff]  ;;  %v376_v6 = vld [vmem:[%s1179_s0 + $0x38] sm:$0xff] }
  0x4a   : > { %785 = vmatpush.msra.mxu2 %v396_v44  ;;  %416 = vmatpush.msra.mxu0 %v396_v44  ;;  %v372_v7 = vld [vmem:[%s1179_s0 + $0x18] sm:$0xff]  ;;  %v377_v8 = vld [vmem:[%s1179_s0 + $0x40] sm:$0xff] }
  0x4b   : > { %460 = vmatpush.msra.mxu1 %v397_v45  ;;  %801 = vmatpush.msra.mxu3 %v397_v45  ;;  %v555_v9 = vld [vmem:[%s325_s9] sm:$0x3] }
  0x4c   : > { %786 = vmatpush.msra.mxu2 %v394_v46  ;;  %417 = vmatpush.msra.mxu0 %v394_v46  ;;  %v558_v10 = vperm.slane %v555_v9, 1  ;;  %v557_v11 = vperm.slane %v555_v9, 0 }
  0x4d   : > { %461 = vmatpush.msra.mxu1 %v395_v47  ;;  %802 = vmatpush.msra.mxu3 %v395_v47 }
  0x4e   : > { %787 = vmatpush.msra.mxu2 %v392_v48  ;;  %418 = vmatpush.msra.mxu0 %v392_v48 }
  0x4f   : > { %462 = vmatpush.msra.mxu1 %v393_v49  ;;  %803 = vmatpush.msra.mxu3 %v393_v49 }
  0x50   : > { %788 = vmatpush.msra.mxu2 %v390_v50  ;;  %419 = vmatpush.msra.mxu0 %v390_v50 }
  0x51   : > { %463 = vmatpush.msra.mxu1 %v391_v51  ;;  %804 = vmatpush.msra.mxu3 %v391_v51 }
  0x52   : > { %789 = vmatpush.msra.mxu2 %v388_v52  ;;  %420 = vmatpush.msra.mxu0 %v388_v52 }
  0x53   : > { %464 = vmatpush.msra.mxu1 %v389_v53  ;;  %805 = vmatpush.msra.mxu3 %v389_v53 }
  0x54   : > { %790 = vmatpush.msra.mxu2 %v386_v54  ;;  %421 = vmatpush.msra.mxu0 %v386_v54 }
  0x55   : > { %465 = vmatpush.msra.mxu1 %v387_v55  ;;  %806 = vmatpush.msra.mxu3 %v387_v55 }
  0x56   : > { %791 = vmatpush.msra.mxu2 %v384_v56  ;;  %422 = vmatpush.msra.mxu0 %v384_v56 }
  0x57   : > { %466 = vmatpush.msra.mxu1 %v385_v57  ;;  %807 = vmatpush.msra.mxu3 %v385_v57 }
  0x58   : > { %792 = vmatpush.msra.mxu2 %v382_v58  ;;  %423 = vmatpush.msra.mxu0 %v382_v58 }
  0x59   : > { %467 = vmatpush.msra.mxu1 %v383_v59  ;;  %808 = vmatpush.msra.mxu3 %v383_v59 }
  0x5a   : > { %793 = vmatpush.msra.mxu2 %v380_v60  ;;  %424 = vmatpush.msra.mxu0 %v380_v60 }
  0x5b   : > { %468 = vmatpush.msra.mxu1 %v381_v61  ;;  %809 = vmatpush.msra.mxu3 %v381_v61 }
  0x5c   : > { %794 = vmatpush.msra.mxu2 %v378_v62  ;;  %425 = vmatpush.msra.mxu0 %v378_v62 }
  0x5d   : > { %438 = vmatmul.f32.vlgmr.msra.gmra.mxu2 %v373_v63  ;;  %469 = vmatpush.msra.mxu1 %v379_v0 }
  0x5e   : > { %470 = vmatmul.f32.vlgmr.msra.gmra.mxu1 %v369_v1  ;;  %810 = vmatpush.msra.mxu3 %v379_v0 }
  0x5f   : > { %485 = vmatmul.f32.vlgmr.msra.gmra.mxu3 %v374_v2  ;;  %426 = vmatmul.f32.vlgmr.msra.gmra.mxu0 %v369_v1 }
  0x65   : > { %441 = vmatmul.f32.gmra.mxu2 %v374_v2 }
  0x66   : > { %473 = vmatmul.f32.gmra.mxu1 %v370_v3 }
  0x67   : > { %488 = vmatmul.f32.gmra.mxu3 %v375_v4  ;;  %429 = vmatmul.f32.gmra.mxu0 %v370_v3 }
  0x6d   : > { %444 = vmatmul.f32.gmra.mxu2 %v375_v4 }
  0x6e   : > { %476 = vmatmul.f32.gmra.mxu1 %v371_v5 }
  0x6f   : > { %491 = vmatmul.f32.gmra.mxu3 %v376_v6  ;;  %432 = vmatmul.f32.gmra.mxu0 %v371_v5 }
  0x75   : > { %447 = vmatmul.f32.gmra.mxu2 %v376_v6 }
  0x76   : > { %479 = vmatmul.f32.gmra.mxu1 %v372_v7 }
  0x77   : > { %494 = vmatmul.f32.gmra.mxu3 %v377_v8  ;;  %435 = vmatmul.f32.gmra.mxu0 %v372_v7 }
  0x7d   : > { %450 = vmatmul.f32.gmra.mxu2 %v377_v8 }
  0x7e   : > { %482 = vmatmul.f32.gmra.mxu1 %v373_v63 }
  0xdb   : > { %v471_v12 = vpop.f32.mrf.mxu1 }
  0xdc   : > { %v562_v13 = vadd.f32 %v558_v10, %v471_v12  ;;  %v427_v14 = vpop.f32.mrf.mxu0 }
  0xdd   : > { %v561_v15 = vadd.f32 %v557_v11, %v427_v14 }
  0xde   : > { %580 = vst [vmem:[%s1100_s11 + $0x8] sm:$0xff] %v562_v13 }
  0xdf   : > { %579 = vst [vmem:[%s1100_s11] sm:$0xff] %v561_v15 }
  0xe0   : > { %v439_v16 = vpop.f32.mrf.mxu2 }
  0xe1   : > { %v569_v17 = vadd.f32 %v557_v11, %v439_v16 }
  0xe2   : > { %v486_v18 = vpop.f32.mrf.mxu3 }
  0xe3   : > { %587 = vst [vmem:[%s1100_s11 + $0x40] sm:$0xff] %v569_v17  ;;  %v474_v19 = vpop.f32.mrf.mxu1  ;;  %v572_v20 = vadd.f32 %v558_v10, %v486_v18 }
  0xe4   : > { %v564_v21 = vadd.f32 %v558_v10, %v474_v19  ;;  %v430_v22 = vpop.f32.mrf.mxu0 }
  0xe5   : > { %590 = vst [vmem:[%s1100_s11 + $0x58] sm:$0xff] %v572_v20  ;;  %v563_v23 = vadd.f32 %v557_v11, %v430_v22  ;;  %v624_v49 = vld [vmem:[%s1100_s11 + $0x8] sm:$0xff] (%p947_p6) }
  0xe6   : > { %582 = vst [vmem:[%s1100_s11 + $0x18] sm:$0xff] %v564_v21  ;;  %v622_v48 = vld [vmem:[%s1100_s11] sm:$0xff] (%p947_p6) }
  0xe7   : > { %581 = vst [vmem:[%s1100_s11 + $0x10] sm:$0xff] %v563_v23 }
  0xe8   : > { %v442_v24 = vpop.f32.mrf.mxu2  ;;  %623 = vst [vmem:[%s1128_s19] sm:$0xff] (%p947_p6), %v622_v48 }
  0xe9   : > { %v571_v25 = vadd.f32 %v557_v11, %v442_v24  ;;  %625 = vst [vmem:[%s1128_s19 + $0x8] sm:$0xff] (%p947_p6), %v624_v49 }
  0xea   : > { %v489_v26 = vpop.f32.mrf.mxu3  ;;  %v638_v56 = vld [vmem:[%s1100_s11 + $0x40] sm:$0xff] (%p947_p6) }
  0xeb   : > { %589 = vst [vmem:[%s1100_s11 + $0x50] sm:$0xff] %v571_v25  ;;  %v477_v27 = vpop.f32.mrf.mxu1  ;;  %v574_v28 = vadd.f32 %v558_v10, %v489_v26 }
  0xec   : > { %v566_v29 = vadd.f32 %v558_v10, %v477_v27  ;;  %v433_v30 = vpop.f32.mrf.mxu0  ;;  %639 = vst [vmem:[%s1128_s19 + $0x80] sm:$0xff] (%p947_p6), %v638_v56  ;;  %v644_v59 = vld [vmem:[%s1100_s11 + $0x58] sm:$0xff] (%p947_p6) }
  0xed   : > { %592 = vst [vmem:[%s1100_s11 + $0x68] sm:$0xff] %v574_v28  ;;  %v565_v31 = vadd.f32 %v557_v11, %v433_v30  ;;  %v628_v51 = vld [vmem:[%s1100_s11 + $0x18] sm:$0xff] (%p947_p6) }
  0xee   : > { %584 = vst [vmem:[%s1100_s11 + $0x28] sm:$0xff] %v566_v29  ;;  %v626_v50 = vld [vmem:[%s1100_s11 + $0x10] sm:$0xff] (%p947_p6) }
  0xef   : > { %583 = vst [vmem:[%s1100_s11 + $0x20] sm:$0xff] %v565_v31 }
  0xf0   : > { %v445_v32 = vpop.f32.mrf.mxu2  ;;  %627 = vst [vmem:[%s1128_s19 + $0x20] sm:$0xff] (%p947_p6), %v626_v50 }
  0xf1   : > { %v573_v33 = vadd.f32 %v557_v11, %v445_v32  ;;  %629 = vst [vmem:[%s1128_s19 + $0x28] sm:$0xff] (%p947_p6), %v628_v51 }
  0xf2   : > { %v492_v34 = vpop.f32.mrf.mxu3  ;;  %v642_v58 = vld [vmem:[%s1100_s11 + $0x50] sm:$0xff] (%p947_p6)  ;;  %645 = vst [vmem:[%s1128_s19 + $0xa8] sm:$0xff] (%p947_p6), %v644_v59 }
  0xf3   : > { %591 = vst [vmem:[%s1100_s11 + $0x60] sm:$0xff] %v573_v33  ;;  %v480_v35 = vpop.f32.mrf.mxu1  ;;  %v576_v36 = vadd.f32 %v558_v10, %v492_v34 }
  0xf4   : > { %v568_v37 = vadd.f32 %v558_v10, %v480_v35  ;;  %v436_v38 = vpop.f32.mrf.mxu0  ;;  %643 = vst [vmem:[%s1128_s19 + $0xa0] sm:$0xff] (%p947_p6), %v642_v58  ;;  %v648_v61 = vld [vmem:[%s1100_s11 + $0x68] sm:$0xff] (%p947_p6) }
  0xf5   : > { %594 = vst [vmem:[%s1100_s11 + $0x78] sm:$0xff] %v576_v36  ;;  %v567_v39 = vadd.f32 %v557_v11, %v436_v38  ;;  %v632_v53 = vld [vmem:[%s1100_s11 + $0x28] sm:$0xff] (%p947_p6) }
  0xf6   : > { %586 = vst [vmem:[%s1100_s11 + $0x38] sm:$0xff] %v568_v37  ;;  %v630_v52 = vld [vmem:[%s1100_s11 + $0x20] sm:$0xff] (%p947_p6) }
  0xf7   : > { %585 = vst [vmem:[%s1100_s11 + $0x30] sm:$0xff] %v567_v39 }
  0xf8   : > { %v448_v40 = vpop.f32.mrf.mxu2  ;;  %631 = vst [vmem:[%s1128_s19 + $0x40] sm:$0xff] (%p947_p6), %v630_v52 }
  0xf9   : > { %v575_v41 = vadd.f32 %v557_v11, %v448_v40  ;;  %633 = vst [vmem:[%s1128_s19 + $0x48] sm:$0xff] (%p947_p6), %v632_v53 }
  0xfa   : > { %v495_v42 = vpop.f32.mrf.mxu3  ;;  %v646_v60 = vld [vmem:[%s1100_s11 + $0x60] sm:$0xff] (%p947_p6)  ;;  %649 = vst [vmem:[%s1128_s19 + $0xc8] sm:$0xff] (%p947_p6), %v648_v61 }
  0xfb   : > { %593 = vst [vmem:[%s1100_s11 + $0x70] sm:$0xff] %v575_v41  ;;  %v483_v43 = vpop.f32.mrf.mxu1  ;;  %v578_v44 = vadd.f32 %v558_v10, %v495_v42 }
  0xfc   : > { %v570_v45 = vadd.f32 %v558_v10, %v483_v43  ;;  %647 = vst [vmem:[%s1128_s19 + $0xc0] sm:$0xff] (%p947_p6), %v646_v60  ;;  %v652_v63 = vld [vmem:[%s1100_s11 + $0x78] sm:$0xff] (%p947_p6) }
  0xfd   : > { %596 = vst [vmem:[%s1100_s11 + $0x88] sm:$0xff] %v578_v44  ;;  %v636_v55 = vld [vmem:[%s1100_s11 + $0x38] sm:$0xff] (%p947_p6) }
  0xfe   : > { %588 = vst [vmem:[%s1100_s11 + $0x48] sm:$0xff] %v570_v45  ;;  %v634_v54 = vld [vmem:[%s1100_s11 + $0x30] sm:$0xff] (%p947_p6) }
  0xff   : > { %603 = sbr.rel (!%p947_p6) target bundleno = 268 (0x10c), region = 67  ;;  %635 = vst [vmem:[%s1128_s19 + $0x60] sm:$0xff] (%p947_p6), %v634_v54 }
 0x100   : > { %v451_v46 = vpop.f32.mrf.mxu2  ;;  %637 = vst [vmem:[%s1128_s19 + $0x68] sm:$0xff] (%p947_p6), %v636_v55 }
 0x101   : > { %v577_v47 = vadd.f32 %v557_v11, %v451_v46  ;;  %653 = vst [vmem:[%s1128_s19 + $0xe8] sm:$0xff] (%p947_p6), %v652_v63 }
 0x102   : > { %v650_v62 = vld [vmem:[%s1100_s11 + $0x70] sm:$0xff] (%p947_p6) }
 0x103   : > { %595 = vst [vmem:[%s1100_s11 + $0x80] sm:$0xff] %v577_v47 }
 0x104   : > { %651 = vst [vmem:[%s1128_s19 + $0xe0] sm:$0xff] %v650_v62  ;;  %v656_v1 = vld [vmem:[%s1100_s11 + $0x88] sm:$0xff] }
 0x105   : > { %v640_v57 = vld [vmem:[%s1100_s11 + $0x48] sm:$0xff]  ;;  %657 = vst [vmem:[%s1128_s19 + $0x108] sm:$0xff] %v656_v1 }
 0x106   : > { %641 = vst [vmem:[%s1128_s19 + $0x88] sm:$0xff] %v640_v57 }
 0x10a   : > { %v654_v0 = vld [vmem:[%s1100_s11 + $0x80] sm:$0xff] }
 0x10b   : > { %655 = vst [vmem:[%s1128_s19 + $0x100] sm:$0xff] %v654_v0 }
 0x10c PF: > { %s13_s16 = sadd.s32 1, %s890_s16   ;;  %s1184_s12 = smov %s878_s13 }
 0x10d   : > { %p10_p12 = scmp.ge.s32.totalorder %s13_s16, 4   ;;  %s1185_s13 = smov %s952_s22 }
 0x10e   : > { %s1186_s14 = smov %s886_s15  ;;  %s1187_s15 = smov %s1189_s17 }
 0x10f   :  { %12 = sbr.rel (!%p10_p12) target bundleno = 3 (0x3), region = 127 }

// kernel: baseline_gru_forward.7
= control target key start
LH: loop header
LB: loop body
LE: loop exit
PB: predicated region body
PF: predicated region fallthrough
CT: control target
= control target key end

     0   :  { %s335_s1 = inlined_call_operand.vmem [shape: f32[128,128], index: 1, kind: input, shape index: {}]   ;;  %s336_s2 = inlined_call_operand.vmem [shape: f32[1,128], index: 2, kind: input, shape index: {}]   ;;  %s337_s0 = inlined_call_operand.vmem [shape: f32[72,128], index: 0, kind: input, shape index: {}]   ;;  %s338_s3 = inlined_call_operand.vmem [shape: f32[72,128], index: 3, kind: output, shape index: {}]  }
   0x1   :  { %v60_v0 = vld [vmem:[%s335_s1 + $0x78] sm:$0xff]  ;;  %v59_v1 = vld [vmem:[%s335_s1 + $0x70] sm:$0xff]  ;;  %v58_v2 = vld [vmem:[%s335_s1 + $0x68] sm:$0xff] }
   0x2   :  { %162 = vmatpush.msra.mxu2 %v60_v0  ;;  %163 = vmatpush.msra.mxu3 %v60_v0  ;;  %v57_v3 = vld [vmem:[%s335_s1 + $0x60] sm:$0xff]  ;;  %v56_v4 = vld [vmem:[%s335_s1 + $0x58] sm:$0xff]  ;;  %v55_v5 = vld [vmem:[%s335_s1 + $0x50] sm:$0xff] }
   0x3   :  { %161 = vmatpush.msra.mxu1 %v60_v0  ;;  %61 = vmatpush.msra.mxu0 %v60_v0  ;;  %v54_v6 = vld [vmem:[%s335_s1 + $0x48] sm:$0xff]  ;;  %v53_v7 = vld [vmem:[%s335_s1 + $0x40] sm:$0xff]  ;;  %v52_v8 = vld [vmem:[%s335_s1 + $0x38] sm:$0xff] }
   0x4   :  { %165 = vmatpush.msra.mxu2 %v59_v1  ;;  %166 = vmatpush.msra.mxu3 %v59_v1  ;;  %v51_v9 = vld [vmem:[%s335_s1 + $0x30] sm:$0xff]  ;;  %v50_v10 = vld [vmem:[%s335_s1 + $0x28] sm:$0xff]  ;;  %v49_v11 = vld [vmem:[%s335_s1 + $0x20] sm:$0xff] }
   0x5   :  { %164 = vmatpush.msra.mxu1 %v59_v1  ;;  %62 = vmatpush.msra.mxu0 %v59_v1  ;;  %v48_v12 = vld [vmem:[%s335_s1 + $0x18] sm:$0xff]  ;;  %v47_v13 = vld [vmem:[%s335_s1 + $0x10] sm:$0xff]  ;;  %v46_v14 = vld [vmem:[%s335_s1 + $0x8] sm:$0xff] }
   0x6   :  { %168 = vmatpush.msra.mxu2 %v58_v2  ;;  %169 = vmatpush.msra.mxu3 %v58_v2  ;;  %v45_v15 = vld [vmem:[%s335_s1] sm:$0xff]  ;;  %v39_v16 = vld [vmem:[%s337_s0 + $0x18] sm:$0xff]  ;;  %v42_v17 = vld [vmem:[%s337_s0 + $0x30] sm:$0xff] }
   0x7   :  { %167 = vmatpush.msra.mxu1 %v58_v2  ;;  %63 = vmatpush.msra.mxu0 %v58_v2  ;;  %v37_v18 = vld [vmem:[%s337_s0 + $0x8] sm:$0xff]  ;;  %v36_v19 = vld [vmem:[%s337_s0] sm:$0xff]  ;;  %v43_v21 = vld [vmem:[%s337_s0 + $0x38] sm:$0xff] }
   0x8   :  { %171 = vmatpush.msra.mxu2 %v57_v3  ;;  %172 = vmatpush.msra.mxu3 %v57_v3  ;;  %v40_v20 = vld [vmem:[%s337_s0 + $0x20] sm:$0xff]  ;;  %v38_v22 = vld [vmem:[%s337_s0 + $0x10] sm:$0xff]  ;;  %v41_v23 = vld [vmem:[%s337_s0 + $0x28] sm:$0xff] }
   0x9   :  { %170 = vmatpush.msra.mxu1 %v57_v3  ;;  %64 = vmatpush.msra.mxu0 %v57_v3  ;;  %v44_v24 = vld [vmem:[%s337_s0 + $0x40] sm:$0xff] }
   0xa   :  { %174 = vmatpush.msra.mxu2 %v56_v4  ;;  %175 = vmatpush.msra.mxu3 %v56_v4  ;;  %v209_v25 = vld [vmem:[%s336_s2] ss:$0 sm:$0xff] }
   0xb   :  { %173 = vmatpush.msra.mxu1 %v56_v4  ;;  %65 = vmatpush.msra.mxu0 %v56_v4 }
   0xc   :  { %177 = vmatpush.msra.mxu2 %v55_v5  ;;  %178 = vmatpush.msra.mxu3 %v55_v5 }
   0xd   :  { %176 = vmatpush.msra.mxu1 %v55_v5  ;;  %66 = vmatpush.msra.mxu0 %v55_v5 }
   0xe   :  { %180 = vmatpush.msra.mxu2 %v54_v6  ;;  %181 = vmatpush.msra.mxu3 %v54_v6 }
   0xf   :  { %179 = vmatpush.msra.mxu1 %v54_v6  ;;  %67 = vmatpush.msra.mxu0 %v54_v6 }
  0x10   :  { %183 = vmatpush.msra.mxu2 %v53_v7  ;;  %184 = vmatpush.msra.mxu3 %v53_v7 }
  0x11   :  { %182 = vmatpush.msra.mxu1 %v53_v7  ;;  %68 = vmatpush.msra.mxu0 %v53_v7 }
  0x12   :  { %186 = vmatpush.msra.mxu2 %v52_v8  ;;  %187 = vmatpush.msra.mxu3 %v52_v8 }
  0x13   :  { %185 = vmatpush.msra.mxu1 %v52_v8  ;;  %69 = vmatpush.msra.mxu0 %v52_v8 }
  0x14   :  { %189 = vmatpush.msra.mxu2 %v51_v9  ;;  %190 = vmatpush.msra.mxu3 %v51_v9 }
  0x15   :  { %188 = vmatpush.msra.mxu1 %v51_v9  ;;  %70 = vmatpush.msra.mxu0 %v51_v9 }
  0x16   :  { %192 = vmatpush.msra.mxu2 %v50_v10  ;;  %193 = vmatpush.msra.mxu3 %v50_v10 }
  0x17   :  { %191 = vmatpush.msra.mxu1 %v50_v10  ;;  %71 = vmatpush.msra.mxu0 %v50_v10 }
  0x18   :  { %195 = vmatpush.msra.mxu2 %v49_v11  ;;  %196 = vmatpush.msra.mxu3 %v49_v11 }
  0x19   :  { %194 = vmatpush.msra.mxu1 %v49_v11  ;;  %72 = vmatpush.msra.mxu0 %v49_v11 }
  0x1a   :  { %198 = vmatpush.msra.mxu2 %v48_v12  ;;  %199 = vmatpush.msra.mxu3 %v48_v12 }
  0x1b   :  { %197 = vmatpush.msra.mxu1 %v48_v12  ;;  %73 = vmatpush.msra.mxu0 %v48_v12 }
  0x1c   :  { %201 = vmatpush.msra.mxu2 %v47_v13  ;;  %202 = vmatpush.msra.mxu3 %v47_v13 }
  0x1d   :  { %200 = vmatpush.msra.mxu1 %v47_v13  ;;  %74 = vmatpush.msra.mxu0 %v47_v13 }
  0x1e   :  { %204 = vmatpush.msra.mxu2 %v46_v14  ;;  %205 = vmatpush.msra.mxu3 %v46_v14 }
  0x1f   :  { %203 = vmatpush.msra.mxu1 %v46_v14  ;;  %75 = vmatpush.msra.mxu0 %v46_v14 }
  0x20   :  { %207 = vmatpush.msra.mxu2 %v45_v15  ;;  %208 = vmatpush.msra.mxu3 %v45_v15 }
  0x21   :  { %86 = vmatmul.f32.vlgmr.msra.gmra.mxu2 %v39_v16  ;;  %95 = vmatmul.f32.vlgmr.msra.gmra.mxu3 %v42_v17 }
  0x22   :  { %206 = vmatpush.msra.mxu1 %v45_v15  ;;  %76 = vmatpush.msra.mxu0 %v45_v15 }
  0x23   :  { %80 = vmatmul.f32.vlgmr.msra.gmra.mxu1 %v37_v18  ;;  %77 = vmatmul.f32.vlgmr.msra.gmra.mxu0 %v36_v19 }
  0x29   :  { %89 = vmatmul.f32.gmra.mxu2 %v40_v20  ;;  %98 = vmatmul.f32.gmra.mxu3 %v43_v21 }
  0x2b   :  { %83 = vmatmul.f32.gmra.mxu1 %v38_v22 }
  0x31   :  { %92 = vmatmul.f32.gmra.mxu2 %v41_v23  ;;  %101 = vmatmul.f32.gmra.mxu3 %v44_v24 }
  0xa0   :  { %v81_v26 = vpop.f32.mrf.mxu1  ;;  %v78_v27 = vpop.f32.mrf.mxu0 }
  0xa1   :  { %v140_v28 = vadd.f32 %v209_v25, %v81_v26  ;;  %v139_v29 = vadd.f32 %v209_v25, %v78_v27 }
  0xa3   :  { %149 = vst [vmem:[%s338_s3 + $0x8] sm:$0xff] %v140_v28 }
  0xa4   :  { %v87_v30 = vpop.f32.mrf.mxu2  ;;  %v96_v31 = vpop.f32.mrf.mxu3  ;;  %148 = vst [vmem:[%s338_s3] sm:$0xff] %v139_v29 }
  0xa5   :  { %v142_v32 = vadd.f32 %v209_v25, %v87_v30  ;;  %v145_v33 = vadd.f32 %v209_v25, %v96_v31 }
  0xa7   :  { %151 = vst [vmem:[%s338_s3 + $0x18] sm:$0xff] %v142_v32 }
  0xa8   :  { %154 = vst [vmem:[%s338_s3 + $0x30] sm:$0xff] %v145_v33  ;;  %v84_v34 = vpop.f32.mrf.mxu1 }
  0xa9   :  { %v141_v35 = vadd.f32 %v209_v25, %v84_v34 }
  0xab   :  { %150 = vst [vmem:[%s338_s3 + $0x10] sm:$0xff] %v141_v35 }
  0xac   :  { %v90_v36 = vpop.f32.mrf.mxu2  ;;  %v99_v37 = vpop.f32.mrf.mxu3 }
  0xad   :  { %v143_v38 = vadd.f32 %v209_v25, %v90_v36  ;;  %v146_v39 = vadd.f32 %v209_v25, %v99_v37 }
  0xaf   :  { %152 = vst [vmem:[%s338_s3 + $0x20] sm:$0xff] %v143_v38 }
  0xb0   :  { %155 = vst [vmem:[%s338_s3 + $0x38] sm:$0xff] %v146_v39 }
  0xb4   :  { %v93_v40 = vpop.f32.mrf.mxu2  ;;  %v102_v41 = vpop.f32.mrf.mxu3 }
  0xb5   :  { %v144_v42 = vadd.f32 %v209_v25, %v93_v40  ;;  %v147_v43 = vadd.f32 %v209_v25, %v102_v41 }
  0xb7   :  { %153 = vst [vmem:[%s338_s3 + $0x28] sm:$0xff] %v144_v42 }
  0xb8   :  { %156 = vst [vmem:[%s338_s3 + $0x40] sm:$0xff] %v147_v43 }

// kernel: baseline_gru_forward.6
= control target key start
LH: loop header
LB: loop body
LE: loop exit
PB: predicated region body
PF: predicated region fallthrough
CT: control target
= control target key end

     0   :  { %v1292_v44 = vmov 0.0   ;;  %s2394_s1 = inlined_call_operand.vmem [shape: f32[128,384], index: 1, kind: input, shape index: {}]   ;;  %s2395_s2 = inlined_call_operand.vmem [shape: f32[1,128], index: 2, kind: input, shape index: {}]   ;;  %s2396_s0 = inlined_call_operand.vmem [shape: f32[9,8,384], index: 0, kind: input, shape index: {}]   ;;  %s2397_s3 = inlined_call_operand.vmem [shape: f32[9,8,128], index: 3, kind: output, shape index: {}]  }
   0x1   :  { %v1316_v0 = vld [vmem:[%s2394_s1 + $0x168] sm:$0xff]  ;;  %v1321_v1 = vld [vmem:[%s2394_s1 + $0x170] sm:$0xff]  ;;  %v1333_v3 = vld [vmem:[%s2394_s1 + $0x158] sm:$0xff] }
   0x2   :  { %v1326_v2 = vld [vmem:[%s2394_s1 + $0x150] sm:$0xff]  ;;  %75 = vmatpush.msra.mxu0 %v1316_v0  ;;  %95 = vmatpush.msra.mxu1 %v1321_v1  ;;  %v1338_v4 = vld [vmem:[%s2394_s1 + $0x138] sm:$0xff]  ;;  %v1343_v5 = vld [vmem:[%s2394_s1 + $0x140] sm:$0xff] }
   0x3   :  { %188 = vmatpush.msra.mxu3 %v1316_v0  ;;  %v1351_v6 = vld [vmem:[%s2394_s1 + $0x120] sm:$0xff]  ;;  %v1356_v7 = vld [vmem:[%s2394_s1 + $0x128] sm:$0xff]  ;;  %v1369_v9 = vld [vmem:[%s2394_s1 + $0x110] sm:$0xff] }
   0x4   :  { %76 = vmatpush.msra.mxu0 %v1326_v2  ;;  %96 = vmatpush.msra.mxu1 %v1333_v3  ;;  %v1364_v8 = vld [vmem:[%s2394_s1 + $0x108] sm:$0xff]  ;;  %v1377_v10 = vld [vmem:[%s2394_s1 + $0xf0] sm:$0xff]  ;;  %v1382_v11 = vld [vmem:[%s2394_s1 + $0xf8] sm:$0xff] }
   0x5   :  { %189 = vmatpush.msra.mxu3 %v1326_v2  ;;  %v1387_v12 = vld [vmem:[%s2394_s1 + $0x178] sm:$0xff]  ;;  %v1395_v13 = vld [vmem:[%s2394_s1 + $0x160] sm:$0xff]  ;;  %v1414_v16 = vld [vmem:[%s2394_s1 + $0x148] sm:$0xff] }
   0x6   :  { %77 = vmatpush.msra.mxu0 %v1338_v4  ;;  %97 = vmatpush.msra.mxu1 %v1343_v5  ;;  %v1400_v14 = vld [vmem:[%s2394_s1 + $0xd8] sm:$0xff]  ;;  %v1405_v15 = vld [vmem:[%s2394_s1 + $0xe0] sm:$0xff]  ;;  %v1424_v18 = vld [vmem:[%s2394_s1 + $0xc8] sm:$0xff] }
   0x7   :  { %190 = vmatpush.msra.mxu3 %v1338_v4  ;;  %115 = vmatpush.msra.mxu2 %v1387_v12  ;;  %v1419_v17 = vld [vmem:[%s2394_s1 + $0xc0] sm:$0xff]  ;;  %v1433_v19 = vld [vmem:[%s2394_s1 + $0x130] sm:$0xff]  ;;  %v1438_v20 = vld [vmem:[%s2394_s1 + $0xa8] sm:$0xff] }
   0x8   :  { %78 = vmatpush.msra.mxu0 %v1351_v6  ;;  %98 = vmatpush.msra.mxu1 %v1356_v7  ;;  %v1443_v21 = vld [vmem:[%s2394_s1 + $0xb0] sm:$0xff]  ;;  %v1452_v22 = vld [vmem:[%s2394_s1 + $0x118] sm:$0xff]  ;;  %v1471_v25 = vld [vmem:[%s2394_s1 + $0x100] sm:$0xff] }
   0x9   :  { %191 = vmatpush.msra.mxu3 %v1351_v6  ;;  %116 = vmatpush.msra.mxu2 %v1395_v13  ;;  %v1457_v23 = vld [vmem:[%s2394_s1 + $0x90] sm:$0xff]  ;;  %v1462_v24 = vld [vmem:[%s2394_s1 + $0x98] sm:$0xff]  ;;  %v1481_v27 = vld [vmem:[%s2394_s1 + $0x80] sm:$0xff] }
   0xa   :  { %79 = vmatpush.msra.mxu0 %v1364_v8  ;;  %99 = vmatpush.msra.mxu1 %v1369_v9  ;;  %v1476_v26 = vld [vmem:[%s2394_s1 + $0x78] sm:$0xff]  ;;  %v1490_v28 = vld [vmem:[%s2394_s1 + $0xe8] sm:$0xff]  ;;  %v1495_v29 = vld [vmem:[%s2394_s1 + $0x60] sm:$0xff] }
   0xb   :  { %192 = vmatpush.msra.mxu3 %v1364_v8  ;;  %117 = vmatpush.msra.mxu2 %v1414_v16  ;;  %v1500_v30 = vld [vmem:[%s2394_s1 + $0x68] sm:$0xff]  ;;  %v1509_v31 = vld [vmem:[%s2394_s1 + $0xd0] sm:$0xff]  ;;  %v1528_v34 = vld [vmem:[%s2394_s1 + $0xb8] sm:$0xff] }
   0xc   :  { %80 = vmatpush.msra.mxu0 %v1377_v10  ;;  %100 = vmatpush.msra.mxu1 %v1382_v11  ;;  %v1514_v32 = vld [vmem:[%s2394_s1 + $0x48] sm:$0xff]  ;;  %v1519_v33 = vld [vmem:[%s2394_s1 + $0x50] sm:$0xff]  ;;  %v1538_v36 = vld [vmem:[%s2394_s1 + $0x38] sm:$0xff] }
   0xd   :  { %193 = vmatpush.msra.mxu3 %v1377_v10  ;;  %118 = vmatpush.msra.mxu2 %v1433_v19  ;;  %v1533_v35 = vld [vmem:[%s2394_s1 + $0x30] sm:$0xff]  ;;  %v1547_v37 = vld [vmem:[%s2394_s1 + $0xa0] sm:$0xff]  ;;  %v1552_v38 = vld [vmem:[%s2394_s1 + $0x18] sm:$0xff] }
   0xe   :  { %81 = vmatpush.msra.mxu0 %v1400_v14  ;;  %101 = vmatpush.msra.mxu1 %v1405_v15  ;;  %2418 = vst [vmem:[#allocation3_spill] sm:$0xff] %v1552_v38  ;;  %v1557_v39 = vld [vmem:[%s2394_s1 + $0x20] sm:$0xff]  ;;  %v1566_v40 = vld [vmem:[%s2394_s1 + $0x88] sm:$0xff]  ;;  %v1586_v43 = vld [vmem:[%s2394_s1 + $0x70] sm:$0xff] }
   0xf   :  { %194 = vmatpush.msra.mxu3 %v1400_v14  ;;  %119 = vmatpush.msra.mxu2 %v1452_v22  ;;  %2419 = vst [vmem:[#allocation4_spill] sm:$0xff] %v1557_v39  ;;  %v1571_v41 = vld [vmem:[%s2394_s1] sm:$0xff]  ;;  %v1576_v42 = vld [vmem:[%s2394_s1 + $0x8] sm:$0xff]  ;;  %v1594_v45 = vld [vmem:[%s2394_s1 + $0x58] sm:$0xff] }
  0x10   :  { %82 = vmatpush.msra.mxu0 %v1419_v17  ;;  %102 = vmatpush.msra.mxu1 %v1424_v18  ;;  %2420 = vst [vmem:[#allocation5_spill] sm:$0xff] %v1571_v41  ;;  %v1601_v46 = vld [vmem:[%s2394_s1 + $0x40] sm:$0xff]  ;;  %v1610_v47 = vld [vmem:[%s2394_s1 + $0x28] sm:$0xff]  ;;  %v1619_v48 = vld [vmem:[%s2394_s1 + $0x10] sm:$0xff] }
  0x11   :  { %195 = vmatpush.msra.mxu3 %v1419_v17  ;;  %120 = vmatpush.msra.mxu2 %v1471_v25  ;;  %2421 = vst [vmem:[#allocation6_spill] sm:$0xff] %v1576_v42  ;;  %v72_v49 = vld [vmem:[%s2396_s0] sm:$0xff]  ;;  %v73_v50 = vld [vmem:[%s2396_s0 + $0x8] sm:$0xff] }
  0x12   :  { %83 = vmatpush.msra.mxu0 %v1438_v20  ;;  %103 = vmatpush.msra.mxu1 %v1443_v21  ;;  %2422 = vst [vmem:[#allocation7_spill] sm:$0xff] %v1610_v47 }
  0x13   :  { %196 = vmatpush.msra.mxu3 %v1438_v20  ;;  %121 = vmatpush.msra.mxu2 %v1490_v28  ;;  %2423 = vst [vmem:[#allocation8_spill] sm:$0xff] %v1619_v48 }
  0x14   :  { %84 = vmatpush.msra.mxu0 %v1457_v23  ;;  %104 = vmatpush.msra.mxu1 %v1462_v24 }
  0x15   :  { %197 = vmatpush.msra.mxu3 %v1457_v23  ;;  %122 = vmatpush.msra.mxu2 %v1509_v31 }
  0x16   :  { %85 = vmatpush.msra.mxu0 %v1476_v26  ;;  %105 = vmatpush.msra.mxu1 %v1481_v27 }
  0x17   :  { %198 = vmatpush.msra.mxu3 %v1476_v26  ;;  %123 = vmatpush.msra.mxu2 %v1528_v34 }
  0x18   :  { %86 = vmatpush.msra.mxu0 %v1495_v29  ;;  %106 = vmatpush.msra.mxu1 %v1500_v30 }
  0x19   :  { %199 = vmatpush.msra.mxu3 %v1495_v29  ;;  %124 = vmatpush.msra.mxu2 %v1547_v37 }
  0x1a   :  { %87 = vmatpush.msra.mxu0 %v1514_v32  ;;  %107 = vmatpush.msra.mxu1 %v1519_v33 }
  0x1b   :  { %200 = vmatpush.msra.mxu3 %v1514_v32  ;;  %125 = vmatpush.msra.mxu2 %v1566_v40 }
  0x1c   :  { %88 = vmatpush.msra.mxu0 %v1533_v35  ;;  %108 = vmatpush.msra.mxu1 %v1538_v36 }
  0x1d   :  { %201 = vmatpush.msra.mxu3 %v1533_v35  ;;  %126 = vmatpush.msra.mxu2 %v1586_v43 }
  0x1e   :  { %89 = vmatpush.msra.mxu0 %v1552_v38  ;;  %109 = vmatpush.msra.mxu1 %v1557_v39 }
  0x1f   :  { %202 = vmatpush.msra.mxu3 %v1552_v38  ;;  %127 = vmatpush.msra.mxu2 %v1594_v45 }
  0x20   :  { %90 = vmatpush.msra.mxu0 %v1571_v41  ;;  %110 = vmatpush.msra.mxu1 %v1576_v42 }
  0x21   :  { %91 = vmatmul.f32.vlgmr.msra.gmra.mxu0 %v1292_v44  ;;  %111 = vmatmul.f32.vlgmr.msra.gmra.mxu1 %v1292_v44 }
  0x22   :  { %208 = vmatpush.msrb.mxu0 %v1321_v1  ;;  %228 = vmatpush.msrb.mxu1 %v1387_v12 }
  0x23   :  { %203 = vmatpush.msra.mxu3 %v1571_v41  ;;  %128 = vmatpush.msra.mxu2 %v1601_v46 }
  0x24   :  { %209 = vmatpush.msrb.mxu0 %v1333_v3  ;;  %229 = vmatpush.msrb.mxu1 %v1395_v13 }
  0x25   :  { %322 = vmatpush.msrb.mxu3 %v1321_v1  ;;  %129 = vmatpush.msra.mxu2 %v1610_v47 }
  0x26   :  { %210 = vmatpush.msrb.mxu0 %v1343_v5  ;;  %230 = vmatpush.msrb.mxu1 %v1414_v16 }
  0x27   :  { %323 = vmatpush.msrb.mxu3 %v1333_v3  ;;  %130 = vmatpush.msra.mxu2 %v1619_v48 }
  0x28   :  { %211 = vmatpush.msrb.mxu0 %v1356_v7  ;;  %231 = vmatpush.msrb.mxu1 %v1433_v19 }
  0x29   :  { %324 = vmatpush.msrb.mxu3 %v1343_v5  ;;  %131 = vmatmul.f32.vlgmr.msra.gmra.mxu2 %v1292_v44 }
  0x2a   :  { %212 = vmatpush.msrb.mxu0 %v1369_v9  ;;  %232 = vmatpush.msrb.mxu1 %v1452_v22 }
  0x2b   :  { %302 = vmatpush.msrb.mxu2 %v1316_v0  ;;  %325 = vmatpush.msrb.mxu3 %v1356_v7 }
  0x2c   :  { %213 = vmatpush.msrb.mxu0 %v1382_v11  ;;  %233 = vmatpush.msrb.mxu1 %v1471_v25 }
  0x2d   :  { %303 = vmatpush.msrb.mxu2 %v1326_v2  ;;  %326 = vmatpush.msrb.mxu3 %v1369_v9 }
  0x2e   :  { %214 = vmatpush.msrb.mxu0 %v1405_v15  ;;  %234 = vmatpush.msrb.mxu1 %v1490_v28 }
  0x2f   :  { %304 = vmatpush.msrb.mxu2 %v1338_v4  ;;  %327 = vmatpush.msrb.mxu3 %v1382_v11 }
  0x30   :  { %215 = vmatpush.msrb.mxu0 %v1424_v18  ;;  %235 = vmatpush.msrb.mxu1 %v1509_v31 }
  0x31   :  { %305 = vmatpush.msrb.mxu2 %v1351_v6  ;;  %328 = vmatpush.msrb.mxu3 %v1405_v15 }
  0x32   :  { %216 = vmatpush.msrb.mxu0 %v1443_v21  ;;  %236 = vmatpush.msrb.mxu1 %v1528_v34 }
  0x33   :  { %306 = vmatpush.msrb.mxu2 %v1364_v8  ;;  %329 = vmatpush.msrb.mxu3 %v1424_v18 }
  0x34   :  { %217 = vmatpush.msrb.mxu0 %v1462_v24  ;;  %237 = vmatpush.msrb.mxu1 %v1547_v37 }
  0x35   :  { %307 = vmatpush.msrb.mxu2 %v1377_v10  ;;  %330 = vmatpush.msrb.mxu3 %v1443_v21 }
  0x36   :  { %218 = vmatpush.msrb.mxu0 %v1481_v27  ;;  %238 = vmatpush.msrb.mxu1 %v1566_v40 }
  0x37   :  { %308 = vmatpush.msrb.mxu2 %v1400_v14  ;;  %331 = vmatpush.msrb.mxu3 %v1462_v24 }
  0x38   :  { %219 = vmatpush.msrb.mxu0 %v1500_v30  ;;  %239 = vmatpush.msrb.mxu1 %v1586_v43 }
  0x39   :  { %309 = vmatpush.msrb.mxu2 %v1419_v17  ;;  %332 = vmatpush.msrb.mxu3 %v1481_v27 }
  0x3a   :  { %220 = vmatpush.msrb.mxu0 %v1519_v33  ;;  %240 = vmatpush.msrb.mxu1 %v1594_v45 }
  0x3b   :  { %310 = vmatpush.msrb.mxu2 %v1438_v20  ;;  %333 = vmatpush.msrb.mxu3 %v1500_v30 }
  0x3c   :  { %221 = vmatpush.msrb.mxu0 %v1538_v36  ;;  %241 = vmatpush.msrb.mxu1 %v1601_v46 }
  0x3d   :  { %311 = vmatpush.msrb.mxu2 %v1457_v23  ;;  %334 = vmatpush.msrb.mxu3 %v1519_v33 }
  0x3e   :  { %222 = vmatpush.msrb.mxu0 %v1557_v39  ;;  %242 = vmatpush.msrb.mxu1 %v1610_v47 }
  0x3f   :  { %312 = vmatpush.msrb.mxu2 %v1476_v26  ;;  %335 = vmatpush.msrb.mxu3 %v1538_v36 }
  0x40   :  { %223 = vmatpush.msrb.mxu0 %v1576_v42  ;;  %243 = vmatpush.msrb.mxu1 %v1619_v48 }
  0x41   :  { %313 = vmatpush.msrb.mxu2 %v1495_v29  ;;  %336 = vmatpush.msrb.mxu3 %v1557_v39 }
  0x42   :  { %342 = vmatpush.msra.mxu0 %v1387_v12  ;;  %416 = vmatpush.msra.mxu1 %v1316_v0 }
  0x43   :  { %314 = vmatpush.msrb.mxu2 %v1514_v32  ;;  %337 = vmatpush.msrb.mxu3 %v1576_v42 }
  0x44   :  { %343 = vmatpush.msra.mxu0 %v1395_v13  ;;  %417 = vmatpush.msra.mxu1 %v1326_v2 }
  0x45   :  { %315 = vmatpush.msrb.mxu2 %v1533_v35 }
  0x46   :  { %344 = vmatpush.msra.mxu0 %v1414_v16  ;;  %418 = vmatpush.msra.mxu1 %v1338_v4 }
  0x47   :  { %316 = vmatpush.msrb.mxu2 %v1552_v38 }
  0x48   :  { %345 = vmatpush.msra.mxu0 %v1433_v19  ;;  %419 = vmatpush.msra.mxu1 %v1351_v6 }
  0x49   :  { %317 = vmatpush.msrb.mxu2 %v1571_v41 }
  0x4a   :  { %346 = vmatpush.msra.mxu0 %v1452_v22  ;;  %420 = vmatpush.msra.mxu1 %v1364_v8 }
  0x4b   :  { %436 = vmatpush.msra.mxu2 %v1321_v1 }
  0x4c   :  { %347 = vmatpush.msra.mxu0 %v1471_v25  ;;  %421 = vmatpush.msra.mxu1 %v1377_v10 }
  0x4d   :  { %437 = vmatpush.msra.mxu2 %v1333_v3 }
  0x4e   :  { %348 = vmatpush.msra.mxu0 %v1490_v28  ;;  %422 = vmatpush.msra.mxu1 %v1400_v14 }
  0x4f   :  { %438 = vmatpush.msra.mxu2 %v1343_v5 }
  0x50   :  { %349 = vmatpush.msra.mxu0 %v1509_v31  ;;  %423 = vmatpush.msra.mxu1 %v1419_v17 }
  0x51   :  { %439 = vmatpush.msra.mxu2 %v1356_v7 }
  0x52   :  { %350 = vmatpush.msra.mxu0 %v1528_v34  ;;  %424 = vmatpush.msra.mxu1 %v1438_v20 }
  0x53   :  { %440 = vmatpush.msra.mxu2 %v1369_v9 }
  0x54   :  { %351 = vmatpush.msra.mxu0 %v1547_v37  ;;  %425 = vmatpush.msra.mxu1 %v1457_v23 }
  0x55   :  { %441 = vmatpush.msra.mxu2 %v1382_v11 }
  0x56   :  { %352 = vmatpush.msra.mxu0 %v1566_v40  ;;  %426 = vmatpush.msra.mxu1 %v1476_v26 }
  0x57   :  { %442 = vmatpush.msra.mxu2 %v1405_v15 }
  0x58   :  { %353 = vmatpush.msra.mxu0 %v1586_v43  ;;  %427 = vmatpush.msra.mxu1 %v1495_v29 }
  0x59   :  { %443 = vmatpush.msra.mxu2 %v1424_v18 }
  0x5a   :  { %354 = vmatpush.msra.mxu0 %v1594_v45  ;;  %428 = vmatpush.msra.mxu1 %v1514_v32 }
  0x5b   :  { %444 = vmatpush.msra.mxu2 %v1443_v21 }
  0x5c   :  { %355 = vmatpush.msra.mxu0 %v1601_v46  ;;  %429 = vmatpush.msra.mxu1 %v1533_v35 }
  0x5d   :  { %445 = vmatpush.msra.mxu2 %v1462_v24 }
  0x5e   :  { %356 = vmatpush.msra.mxu0 %v1610_v47  ;;  %430 = vmatpush.msra.mxu1 %v1552_v38 }
  0x5f   :  { %446 = vmatpush.msra.mxu2 %v1481_v27 }
  0x60   :  { %357 = vmatpush.msra.mxu0 %v1619_v48  ;;  %431 = vmatpush.msra.mxu1 %v1571_v41 }
  0x61   :  { %447 = vmatpush.msra.mxu2 %v1500_v30 }
  0x63   :  { %448 = vmatpush.msra.mxu2 %v1519_v33 }
  0x65   :  { %449 = vmatpush.msra.mxu2 %v1538_v36 }
  0x67   :  { %450 = vmatpush.msra.mxu2 %v1557_v39 }
  0x69   :  { %451 = vmatpush.msra.mxu2 %v1576_v42  ;;  %v1738_v42 = vld [vmem:[%s2395_s2] ss:$0 sm:$0xff] }
  0x9e   :  { %v92_v51 = vpop.f32.mrf.mxu0  ;;  %v112_v52 = vpop.f32.mrf.mxu1 }
  0x9f   :  { %v135_v53 = vadd.f32 %v92_v51, %v72_v49  ;;  %v155_v54 = vadd.f32 %v112_v52, %v73_v50 }
  0xa1   :  { %v1101_v55 = vmul.f32 -1.442695, %v135_v53  ;;  %v1102_v56 = vmul.f32 -1.442695, %v155_v54 }
  0xa3   :  { %1153 = vpow2.f32 %v1101_v55 }
  0xa4   :  { %1155 = vpow2.f32 %v1102_v56 }
  0xa9   :  { %v1154_v57 = vpop.eup %1153 }
  0xaa   :  { %v1156_v58 = vpop.eup %1155  ;;  %v139_v59 = vadd.f32 1.0, %v1154_v57 }
  0xab   :  { %v159_v60 = vadd.f32 1.0, %v1156_v58 }
  0xac   :  { %1157 = vrcp.f32 %v139_v59  ;;  %v132_v51 = vpop.f32.mrf.mxu2  ;;  %v151_v52 = vand.u32 2147483648, %v139_v59  ;;  %v149_v54 = vand.u32 2147483647, %v139_v59  ;;  %vm145_vm1 = vweird.f32 %v139_v59 }
  0xad   :  { %1159 = vrcp.f32 %v159_v60  ;;  %v175_v57 = vadd.f32 %v1738_v42, %v132_v51  ;;  %vm165_vm4 = vweird.f32 %v159_v60  ;;  %v169_v38 = vand.u32 2147483647, %v159_v60 }
  0xae   :  { %v152_v58 = vor.u32 1.1754944e-38, %v151_v52  ;;  %vm150_vm3 = vcmp.eq.f32.partialorder %v149_v54, 8.507059e+37 }
  0xaf   :  { %vm170_vm7 = vcmp.eq.f32.partialorder %v169_v38, 8.507059e+37  ;;  %v2424_v38 = vld [vmem:[#allocation3_spill] sm:$0xff] }
  0xb2   :  { %v1158_v61 = vpop.eup %1157 }
  0xb3   :  { %v1160_v62 = vpop.eup %1159  ;;  %v141_v63 = vmul.f32 %v1158_v61, %v139_v59  ;;  %vm146_vm0 = vweird.f32 %v1158_v61 }
  0xb4   :  { %v161_v44 = vmul.f32 %v1160_v62, %v159_v60  ;;  %vm147_vm2 = vmor %vm145_vm1, %vm146_vm0  ;;  %vm166_vm5 = vweird.f32 %v1160_v62 }
  0xb5   :  { %v142_v49 = vsub.f32 1.0, %v141_v63  ;;  %v74_v63 = vld [vmem:[%s2396_s0 + $0x10] sm:$0xff]  ;;  %vm167_vm6 = vmor %vm165_vm4, %vm166_vm5 }
  0xb6   :  { %v162_v50 = vsub.f32 1.0, %v161_v44 }
  0xb7   :  { %v143_v53 = vmul.f32 %v1158_v61, %v142_v49  ;;  %v171_v49 = vand.u32 2147483648, %v159_v60  ;;  %v2428_v60 = vld [vmem:[#allocation6_spill] sm:$0xff] }
  0xb8   :  { %v163_v55 = vmul.f32 %v1160_v62, %v162_v50 }
  0xb9   :  { %v144_v56 = vadd.f32 %v1158_v61, %v143_v53  ;;  %v172_v53 = vor.u32 1.1754944e-38, %v171_v49 }
  0xba   :  { %v164_v48 = vadd.f32 %v1160_v62, %v163_v55 }
  0xbb   :  { %v148_v41 = vsel %vm147_vm2, %v1158_v61, %v144_v56 }
  0xbc   :  { %v153_v44 = vsel %vm150_vm3, %v152_v58, %v148_v41  ;;  %v168_v59 = vsel %vm167_vm6, %v1160_v62, %v164_v48  ;;  %v2426_v41 = vld [vmem:[#allocation8_spill] sm:$0xff]  ;;  %v2427_v48 = vld [vmem:[#allocation5_spill] sm:$0xff]  ;;  %v1104_v62 = vld [vmem:[%s2396_s0 + $0x20] sm:$0xff] }
  0xbd   :  { %v176_v39 = vmul.f32 %v175_v57, %v153_v44  ;;  %v173_v51 = vsel %vm170_vm7, %v172_v53, %v168_v59  ;;  %v1103_v44 = vld [vmem:[%s2396_s0 + $0x18] sm:$0xff] }
  0xbe   :  { %v179_v61 = vsub.f32 1.0, %v173_v51  ;;  %v181_v55 = vmul.f32 0.0, %v173_v51 }
  0xbf   :  { %v177_v50 = vadd.f32 %v176_v39, %v74_v63  ;;  %v2425_v39 = vld [vmem:[#allocation4_spill] sm:$0xff] }
  0xc1   :  { %1161 = vtanh.f32 %v177_v50 }
  0xc7   :  { %v1162_v52 = vpop.eup %1161 }
  0xc8   :  { %v180_v54 = vmul.f32 %v1162_v52, %v179_v61 }
  0xca   :  { %v1744_v56 = vadd.f32 %v181_v55, %v180_v54 }
  0xcc   :  { %183 = vst [vmem:[%s2397_s3] sm:$0xff] %v1744_v56  ;;  %204 = vmatmul.f32.vlgmr.msra.gmra.mxu3 %v1744_v56  ;;  %224 = vmatmul.f32.vlgmr.msrb.gmra.mxu0 %v1744_v56 }
  0xcd   :  { %244 = vmatmul.f32.vlgmr.msrb.gmra.mxu1 %v1744_v56  ;;  %456 = vmatpush.msra.mxu3 %v1387_v12 }
  0xce   :  { %530 = vmatpush.msrb.mxu0 %v1316_v0  ;;  %550 = vmatpush.msrb.mxu1 %v1321_v1 }
  0xcf   :  { %457 = vmatpush.msra.mxu3 %v1395_v13 }
  0xd0   :  { %531 = vmatpush.msrb.mxu0 %v1326_v2  ;;  %551 = vmatpush.msrb.mxu1 %v1333_v3 }
  0xd1   :  { %458 = vmatpush.msra.mxu3 %v1414_v16 }
  0xd2   :  { %532 = vmatpush.msrb.mxu0 %v1338_v4  ;;  %552 = vmatpush.msrb.mxu1 %v1343_v5 }
  0xd3   :  { %459 = vmatpush.msra.mxu3 %v1433_v19 }
  0xd4   :  { %533 = vmatpush.msrb.mxu0 %v1351_v6  ;;  %553 = vmatpush.msrb.mxu1 %v1356_v7 }
  0xd5   :  { %460 = vmatpush.msra.mxu3 %v1452_v22 }
  0xd6   :  { %534 = vmatpush.msrb.mxu0 %v1364_v8  ;;  %554 = vmatpush.msrb.mxu1 %v1369_v9 }
  0xd7   :  { %461 = vmatpush.msra.mxu3 %v1471_v25 }
  0xd8   :  { %535 = vmatpush.msrb.mxu0 %v1377_v10  ;;  %555 = vmatpush.msrb.mxu1 %v1382_v11 }
  0xd9   :  { %462 = vmatpush.msra.mxu3 %v1490_v28 }
  0xda   :  { %536 = vmatpush.msrb.mxu0 %v1400_v14  ;;  %556 = vmatpush.msrb.mxu1 %v1405_v15 }
  0xdb   :  { %463 = vmatpush.msra.mxu3 %v1509_v31 }
  0xdc   :  { %537 = vmatpush.msrb.mxu0 %v1419_v17  ;;  %557 = vmatpush.msrb.mxu1 %v1424_v18 }
  0xdd   :  { %464 = vmatpush.msra.mxu3 %v1528_v34 }
  0xde   :  { %538 = vmatpush.msrb.mxu0 %v1438_v20  ;;  %558 = vmatpush.msrb.mxu1 %v1443_v21 }
  0xdf   :  { %465 = vmatpush.msra.mxu3 %v1547_v37 }
  0xe0   :  { %539 = vmatpush.msrb.mxu0 %v1457_v23  ;;  %559 = vmatpush.msrb.mxu1 %v1462_v24 }
  0xe1   :  { %466 = vmatpush.msra.mxu3 %v1566_v40 }
  0xe2   :  { %540 = vmatpush.msrb.mxu0 %v1476_v26  ;;  %560 = vmatpush.msrb.mxu1 %v1481_v27 }
  0xe3   :  { %467 = vmatpush.msra.mxu3 %v1586_v43 }
  0xe4   :  { %541 = vmatpush.msrb.mxu0 %v1495_v29  ;;  %561 = vmatpush.msrb.mxu1 %v1500_v30 }
  0xe5   :  { %468 = vmatpush.msra.mxu3 %v1594_v45 }
  0xe6   :  { %542 = vmatpush.msrb.mxu0 %v1514_v32  ;;  %562 = vmatpush.msrb.mxu1 %v1519_v33 }
  0xe7   :  { %469 = vmatpush.msra.mxu3 %v1601_v46 }
  0xe8   :  { %543 = vmatpush.msrb.mxu0 %v1533_v35  ;;  %563 = vmatpush.msrb.mxu1 %v1538_v36 }
  0xe9   :  { %470 = vmatpush.msra.mxu3 %v1610_v47 }
  0xea   :  { %544 = vmatpush.msrb.mxu0 %v2424_v38  ;;  %564 = vmatpush.msrb.mxu1 %v2425_v39 }
  0xeb   :  { %471 = vmatpush.msra.mxu3 %v2426_v41 }
  0xec   :  { %545 = vmatpush.msrb.mxu0 %v2427_v48  ;;  %565 = vmatpush.msrb.mxu1 %v2428_v60 }
 0x149   :  { %v225_v57 = vpop.f32.mrf.mxu0 }
 0x14a   :  { %v268_v58 = vadd.f32 %v1104_v62, %v225_v57 }
 0x14c   :  { %v1107_v63 = vmul.f32 -1.442695, %v268_v58 }
 0x14e   :  { %1163 = vpow2.f32 %v1107_v63 }
 0x14f   :  { %v205_v49 = vpop.f32.mrf.mxu3 }
 0x150   :  { %v248_v50 = vadd.f32 %v1103_v44, %v205_v49  ;;  %v245_v44 = vpop.f32.mrf.mxu1 }
 0x152   :  { %v1106_v59 = vmul.f32 -1.442695, %v248_v50 }
 0x154   :  { %v1164_v53 = vpop.eup %1163  ;;  %1165 = vpow2.f32 %v1106_v59  ;;  %v288_v59 = vadd.f32 %v1738_v42, %v245_v44 }
 0x155   :  { %v272_v51 = vadd.f32 1.0, %v1164_v53 }
 0x157   :  { %1167 = vrcp.f32 %v272_v51  ;;  %vm278_vm13 = vweird.f32 %v272_v51 }
 0x15a   :  { %v1166_v61 = vpop.eup %1165 }
 0x15b   :  { %v252_v52 = vadd.f32 1.0, %v1166_v61 }
 0x15d   :  { %1169 = vrcp.f32 %v252_v52  ;;  %v1168_v54 = vpop.eup %1167  ;;  %v264_v48 = vand.u32 2147483648, %v252_v52  ;;  %v262_v63 = vand.u32 2147483647, %v252_v52  ;;  %vm258_vm9 = vweird.f32 %v252_v52 }
 0x15e   :  { %v274_v55 = vmul.f32 %v1168_v54, %v272_v51  ;;  %vm279_vm12 = vweird.f32 %v1168_v54 }
 0x15f   :  { %v265_v50 = vor.u32 1.1754944e-38, %v264_v48  ;;  %vm263_vm11 = vcmp.eq.f32.partialorder %v262_v63, 8.507059e+37  ;;  %vm280_vm14 = vmor %vm278_vm13, %vm279_vm12 }
 0x160   :  { %v275_v57 = vsub.f32 1.0, %v274_v55  ;;  %v1105_v55 = vld [vmem:[%s2396_s0 + $0x28] sm:$0xff] }
 0x162   :  { %v276_v39 = vmul.f32 %v1168_v54, %v275_v57  ;;  %v282_v57 = vand.u32 2147483647, %v272_v51 }
 0x163   :  { %v1170_v60 = vpop.eup %1169 }
 0x164   :  { %v254_v62 = vmul.f32 %v1170_v60, %v252_v52  ;;  %vm259_vm8 = vweird.f32 %v1170_v60  ;;  %v277_v61 = vadd.f32 %v1168_v54, %v276_v39  ;;  %vm283_vm15 = vcmp.eq.f32.partialorder %v282_v57, 8.507059e+37 }
 0x165   :  { %vm260_vm10 = vmor %vm258_vm9, %vm259_vm8 }
 0x166   :  { %v255_v58 = vsub.f32 1.0, %v254_v62  ;;  %v284_v62 = vand.u32 2147483648, %v272_v51  ;;  %v281_v52 = vsel %vm280_vm14, %v1168_v54, %v277_v61  ;;  %v2432_v51 = vld [vmem:[#allocation8_spill] sm:$0xff]  ;;  %v2433_v54 = vld [vmem:[#allocation5_spill] sm:$0xff] }
 0x168   :  { %v256_v41 = vmul.f32 %v1170_v60, %v255_v58  ;;  %v285_v47 = vor.u32 1.1754944e-38, %v284_v62 }
 0x16a   :  { %v257_v49 = vadd.f32 %v1170_v60, %v256_v41  ;;  %v286_v48 = vsel %vm283_vm15, %v285_v47, %v281_v52  ;;  %v2429_v47 = vld [vmem:[#allocation7_spill] sm:$0xff] }
 0x16b   :  { %v294_v44 = vmul.f32 %v286_v48, %v1744_v56  ;;  %v2430_v56 = vld [vmem:[#allocation3_spill] sm:$0xff] }
 0x16c   :  { %v261_v53 = vsel %vm260_vm10, %v1170_v60, %v257_v49  ;;  %v292_v60 = vsub.f32 1.0, %v286_v48 }
 0x16d   :  { %v266_v38 = vsel %vm263_vm11, %v265_v50, %v261_v53  ;;  %v2434_v50 = vld [vmem:[#allocation6_spill] sm:$0xff] }
 0x16e   :  { %v289_v58 = vmul.f32 %v288_v59, %v266_v38  ;;  %v2431_v38 = vld [vmem:[#allocation4_spill] sm:$0xff]  ;;  %v1109_v59 = vld [vmem:[%s2396_s0 + $0x30] sm:$0xff]  ;;  %v1110_v53 = vld [vmem:[%s2396_s0 + $0x38] sm:$0xff] }
 0x170   :  { %v290_v41 = vadd.f32 %v1105_v55, %v289_v58 }
 0x172   :  { %1171 = vtanh.f32 %v290_v41 }
 0x178   :  { %v1172_v63 = vpop.eup %1171 }
 0x179   :  { %v293_v39 = vmul.f32 %v1172_v63, %v292_v60 }
 0x17b   :  { %v1812_v49 = vadd.f32 %v294_v44, %v293_v39 }
 0x17d   :  { %1108 = vst [vmem:[%s2397_s3 + $0x8] sm:$0xff] %v1812_v49  ;;  %318 = vmatmul.f32.vlgmr.msrb.gmra.mxu2 %v1812_v49  ;;  %338 = vmatmul.f32.vlgmr.msrb.gmra.mxu3 %v1812_v49 }
 0x17e   :  { %358 = vmatmul.f32.vlgmr.msra.gmra.mxu0 %v1812_v49  ;;  %570 = vmatpush.msrb.mxu2 %v1387_v12 }
 0x17f   :  { %644 = vmatpush.msrb.mxu3 %v1316_v0  ;;  %664 = vmatpush.msra.mxu0 %v1321_v1 }
 0x180   :  { %571 = vmatpush.msrb.mxu2 %v1395_v13 }
 0x181   :  { %645 = vmatpush.msrb.mxu3 %v1326_v2  ;;  %665 = vmatpush.msra.mxu0 %v1333_v3 }
 0x182   :  { %572 = vmatpush.msrb.mxu2 %v1414_v16 }
 0x183   :  { %646 = vmatpush.msrb.mxu3 %v1338_v4  ;;  %666 = vmatpush.msra.mxu0 %v1343_v5 }
 0x184   :  { %573 = vmatpush.msrb.mxu2 %v1433_v19 }
 0x185   :  { %647 = vmatpush.msrb.mxu3 %v1351_v6  ;;  %667 = vmatpush.msra.mxu0 %v1356_v7 }
 0x186   :  { %574 = vmatpush.msrb.mxu2 %v1452_v22 }
 0x187   :  { %648 = vmatpush.msrb.mxu3 %v1364_v8  ;;  %668 = vmatpush.msra.mxu0 %v1369_v9 }
 0x188   :  { %575 = vmatpush.msrb.mxu2 %v1471_v25 }
 0x189   :  { %649 = vmatpush.msrb.mxu3 %v1377_v10  ;;  %669 = vmatpush.msra.mxu0 %v1382_v11 }
 0x18a   :  { %576 = vmatpush.msrb.mxu2 %v1490_v28 }
 0x18b   :  { %650 = vmatpush.msrb.mxu3 %v1400_v14  ;;  %670 = vmatpush.msra.mxu0 %v1405_v15 }
 0x18c   :  { %577 = vmatpush.msrb.mxu2 %v1509_v31 }
 0x18d   :  { %651 = vmatpush.msrb.mxu3 %v1419_v17  ;;  %671 = vmatpush.msra.mxu0 %v1424_v18 }
 0x18e   :  { %578 = vmatpush.msrb.mxu2 %v1528_v34 }
 0x18f   :  { %652 = vmatpush.msrb.mxu3 %v1438_v20  ;;  %672 = vmatpush.msra.mxu0 %v1443_v21 }
 0x190   :  { %579 = vmatpush.msrb.mxu2 %v1547_v37 }
 0x191   :  { %653 = vmatpush.msrb.mxu3 %v1457_v23  ;;  %673 = vmatpush.msra.mxu0 %v1462_v24 }
 0x192   :  { %580 = vmatpush.msrb.mxu2 %v1566_v40 }
 0x193   :  { %654 = vmatpush.msrb.mxu3 %v1476_v26  ;;  %674 = vmatpush.msra.mxu0 %v1481_v27 }
 0x194   :  { %581 = vmatpush.msrb.mxu2 %v1586_v43 }
 0x195   :  { %655 = vmatpush.msrb.mxu3 %v1495_v29  ;;  %675 = vmatpush.msra.mxu0 %v1500_v30 }
 0x196   :  { %582 = vmatpush.msrb.mxu2 %v1594_v45 }
 0x197   :  { %656 = vmatpush.msrb.mxu3 %v1514_v32  ;;  %676 = vmatpush.msra.mxu0 %v1519_v33 }
 0x198   :  { %583 = vmatpush.msrb.mxu2 %v1601_v46 }
 0x199   :  { %657 = vmatpush.msrb.mxu3 %v1533_v35  ;;  %677 = vmatpush.msra.mxu0 %v1538_v36 }
 0x19a   :  { %584 = vmatpush.msrb.mxu2 %v2429_v47 }
 0x19b   :  { %658 = vmatpush.msrb.mxu3 %v2430_v56  ;;  %678 = vmatpush.msra.mxu0 %v2431_v38 }
 0x19c   :  { %585 = vmatpush.msrb.mxu2 %v2432_v51 }
 0x19d   :  { %659 = vmatpush.msrb.mxu3 %v2433_v54  ;;  %679 = vmatpush.msra.mxu0 %v2434_v50 }
 0x200   :  { %v319_v61 = vpop.f32.mrf.mxu2  ;;  %v339_v55 = vpop.f32.mrf.mxu3 }
 0x201   :  { %v362_v62 = vadd.f32 %v1109_v59, %v319_v61  ;;  %v382_v58 = vadd.f32 %v1110_v53, %v339_v55  ;;  %v359_v53 = vpop.f32.mrf.mxu0 }
 0x203   :  { %v1112_v57 = vmul.f32 -1.442695, %v362_v62  ;;  %v1113_v41 = vmul.f32 -1.442695, %v382_v58  ;;  %v402_v58 = vadd.f32 %v1738_v42, %v359_v53 }
 0x205   :  { %1173 = vpow2.f32 %v1112_v57 }
 0x206   :  { %1175 = vpow2.f32 %v1113_v41 }
 0x20b   :  { %v1174_v52 = vpop.eup %1173 }
 0x20c   :  { %v1176_v48 = vpop.eup %1175  ;;  %v366_v60 = vadd.f32 1.0, %v1174_v52 }
 0x20d   :  { %v386_v63 = vadd.f32 1.0, %v1176_v48 }
 0x20e   :  { %1177 = vrcp.f32 %v366_v60  ;;  %v378_v38 = vand.u32 2147483648, %v366_v60  ;;  %v376_v59 = vand.u32 2147483647, %v366_v60  ;;  %vm372_vm1 = vweird.f32 %v366_v60 }
 0x20f   :  { %1179 = vrcp.f32 %v386_v63  ;;  %vm392_vm5 = vweird.f32 %v386_v63  ;;  %v396_v48 = vand.u32 2147483647, %v386_v63 }
 0x210   :  { %v379_v62 = vor.u32 1.1754944e-38, %v378_v38  ;;  %vm377_vm3 = vcmp.eq.f32.partialorder %v376_v59, 8.507059e+37 }
 0x211   :  { %vm397_vm7 = vcmp.eq.f32.partialorder %v396_v48, 8.507059e+37  ;;  %v1990_v48 = vld [vmem:[%s2394_s1 + $0x158] sm:$0xff] }
 0x214   :  { %v1178_v39 = vpop.eup %1177 }
 0x215   :  { %v1180_v44 = vpop.eup %1179  ;;  %v368_v50 = vmul.f32 %v1178_v39, %v366_v60  ;;  %vm373_vm0 = vweird.f32 %v1178_v39 }
 0x216   :  { %v388_v54 = vmul.f32 %v1180_v44, %v386_v63  ;;  %vm374_vm2 = vmor %vm372_vm1, %vm373_vm0  ;;  %vm393_vm4 = vweird.f32 %v1180_v44 }
 0x217   :  { %v369_v51 = vsub.f32 1.0, %v368_v50  ;;  %v398_v50 = vand.u32 2147483648, %v386_v63  ;;  %vm394_vm6 = vmor %vm392_vm5, %vm393_vm4 }
 0x218   :  { %v389_v56 = vsub.f32 1.0, %v388_v54  ;;  %v1111_v54 = vld [vmem:[%s2396_s0 + $0x40] sm:$0xff] }
 0x219   :  { %v370_v47 = vmul.f32 %v1178_v39, %v369_v51  ;;  %v399_v60 = vor.u32 1.1754944e-38, %v398_v50  ;;  %v1984_v50 = vld [vmem:[%s2394_s1 + $0x150] sm:$0xff] }
 0x21a   :  { %v390_v61 = vmul.f32 %v1180_v44, %v389_v56 }
 0x21b   :  { %v371_v55 = vadd.f32 %v1178_v39, %v370_v47 }
 0x21c   :  { %v391_v52 = vadd.f32 %v1180_v44, %v390_v61 }
 0x21d   :  { %v375_v57 = vsel %vm374_vm2, %v1178_v39, %v371_v55 }
 0x21e   :  { %v380_v41 = vsel %vm377_vm3, %v379_v62, %v375_v57  ;;  %v395_v56 = vsel %vm394_vm6, %v1180_v44, %v391_v52  ;;  %v1966_v52 = vld [vmem:[%s2394_s1 + $0x168] sm:$0xff] }
 0x21f   :  { %v403_v51 = vmul.f32 %v402_v58, %v380_v41  ;;  %v400_v38 = vsel %vm397_vm7, %v399_v60, %v395_v56  ;;  %v1960_v41 = vld [vmem:[%s2394_s1 + $0x178] sm:$0xff]  ;;  %v2008_v60 = vld [vmem:[%s2394_s1 + $0x140] sm:$0xff] }
 0x220   :  { %v406_v39 = vsub.f32 1.0, %v400_v38  ;;  %v408_v61 = vmul.f32 %v400_v38, %v1812_v49  ;;  %v2002_v56 = vld [vmem:[%s2394_s1 + $0x138] sm:$0xff]  ;;  %v2014_v38 = vld [vmem:[%s2394_s1 + $0x130] sm:$0xff] }
 0x221   :  { %v404_v47 = vadd.f32 %v1111_v54, %v403_v51  ;;  %v1972_v54 = vld [vmem:[%s2394_s1 + $0x170] sm:$0xff]  ;;  %v1978_v51 = vld [vmem:[%s2394_s1 + $0x160] sm:$0xff] }
 0x223   :  { %1181 = vtanh.f32 %v404_v47  ;;  %v1996_v47 = vld [vmem:[%s2394_s1 + $0x148] sm:$0xff] }
 0x229   :  { %v1182_v59 = vpop.eup %1181 }
 0x22a   :  { %v407_v53 = vmul.f32 %v1182_v59, %v406_v39  ;;  %v2020_v39 = vld [vmem:[%s2394_s1 + $0x120] sm:$0xff]  ;;  %v2026_v59 = vld [vmem:[%s2394_s1 + $0x128] sm:$0xff] }
 0x22c   :  { %v1880_v55 = vadd.f32 %v408_v61, %v407_v53  ;;  %v2032_v53 = vld [vmem:[%s2394_s1 + $0x118] sm:$0xff]  ;;  %v2038_v61 = vld [vmem:[%s2394_s1 + $0x108] sm:$0xff] }
 0x22e   :  { %1114 = vst [vmem:[%s2397_s3 + $0x10] sm:$0xff] %v1880_v55  ;;  %432 = vmatmul.f32.vlgmr.msra.gmra.mxu1 %v1880_v55  ;;  %452 = vmatmul.f32.vlgmr.msra.gmra.mxu2 %v1880_v55 }
 0x22f   :  { %472 = vmatmul.f32.vlgmr.msra.gmra.mxu3 %v1880_v55  ;;  %684 = vmatpush.msra.mxu1 %v1387_v12 }
 0x230   :  { %758 = vmatpush.msra.mxu2 %v1316_v0  ;;  %778 = vmatpush.msra.mxu3 %v1321_v1  ;;  %v2435_v0 = vld [vmem:[#allocation7_spill] sm:$0xff] }
 0x231   :  { %685 = vmatpush.msra.mxu1 %v1395_v13  ;;  %v2436_v1 = vld [vmem:[#allocation3_spill] sm:$0xff] }
 0x232   :  { %759 = vmatpush.msra.mxu2 %v1326_v2  ;;  %779 = vmatpush.msra.mxu3 %v1333_v3  ;;  %v2437_v2 = vld [vmem:[#allocation4_spill] sm:$0xff] }
 0x233   :  { %686 = vmatpush.msra.mxu1 %v1414_v16  ;;  %v2438_v3 = vld [vmem:[#allocation8_spill] sm:$0xff] }
 0x234   :  { %760 = vmatpush.msra.mxu2 %v1338_v4  ;;  %780 = vmatpush.msra.mxu3 %v1343_v5  ;;  %v2439_v4 = vld [vmem:[#allocation5_spill] sm:$0xff]  ;;  %v2440_v5 = vld [vmem:[#allocation6_spill] sm:$0xff] }
 0x235   :  { %687 = vmatpush.msra.mxu1 %v1433_v19 }
 0x236   :  { %761 = vmatpush.msra.mxu2 %v1351_v6  ;;  %781 = vmatpush.msra.mxu3 %v1356_v7  ;;  %v1115_v6 = vld [vmem:[%s2396_s0 + $0x48] sm:$0xff] }
 0x237   :  { %688 = vmatpush.msra.mxu1 %v1452_v22 }
 0x238   :  { %762 = vmatpush.msra.mxu2 %v1364_v8  ;;  %782 = vmatpush.msra.mxu3 %v1369_v9 }
 0x239   :  { %689 = vmatpush.msra.mxu1 %v1471_v25 }
 0x23a   :  { %763 = vmatpush.msra.mxu2 %v1377_v10  ;;  %783 = vmatpush.msra.mxu3 %v1382_v11  ;;  %v1116_v10 = vld [vmem:[%s2396_s0 + $0x50] sm:$0xff] }
 0x23b   :  { %690 = vmatpush.msra.mxu1 %v1490_v28 }
 0x23c   :  { %764 = vmatpush.msra.mxu2 %v1400_v14  ;;  %784 = vmatpush.msra.mxu3 %v1405_v15 }
 0x23d   :  { %691 = vmatpush.msra.mxu1 %v1509_v31 }
 0x23e   :  { %765 = vmatpush.msra.mxu2 %v1419_v17  ;;  %785 = vmatpush.msra.mxu3 %v1424_v18 }
 0x23f   :  { %692 = vmatpush.msra.mxu1 %v1528_v34 }
 0x240   :  { %766 = vmatpush.msra.mxu2 %v1438_v20  ;;  %786 = vmatpush.msra.mxu3 %v1443_v21 }
 0x241   :  { %693 = vmatpush.msra.mxu1 %v1547_v37 }
 0x242   :  { %767 = vmatpush.msra.mxu2 %v1457_v23  ;;  %787 = vmatpush.msra.mxu3 %v1462_v24 }
 0x243   :  { %694 = vmatpush.msra.mxu1 %v1566_v40 }
 0x244   :  { %768 = vmatpush.msra.mxu2 %v1476_v26  ;;  %788 = vmatpush.msra.mxu3 %v1481_v27 }
 0x245   :  { %695 = vmatpush.msra.mxu1 %v1586_v43 }
 0x246   :  { %769 = vmatpush.msra.mxu2 %v1495_v29  ;;  %789 = vmatpush.msra.mxu3 %v1500_v30 }
 0x247   :  { %696 = vmatpush.msra.mxu1 %v1594_v45 }
 0x248   :  { %770 = vmatpush.msra.mxu2 %v1514_v32  ;;  %790 = vmatpush.msra.mxu3 %v1519_v33  ;;  %v1117_v32 = vld [vmem:[%s2396_s0 + $0x58] sm:$0xff] }
 0x249   :  { %697 = vmatpush.msra.mxu1 %v1601_v46 }
 0x24a   :  { %771 = vmatpush.msra.mxu2 %v1533_v35  ;;  %791 = vmatpush.msra.mxu3 %v1538_v36 }
 0x24b   :  { %698 = vmatpush.msra.mxu1 %v2435_v0  ;;  %v2050_v0 = vld [vmem:[%s2394_s1 + $0x100] sm:$0xff] }
 0x24c   :  { %772 = vmatpush.msra.mxu2 %v2436_v1  ;;  %792 = vmatpush.msra.mxu3 %v2437_v2  ;;  %v2056_v1 = vld [vmem:[%s2394_s1 + $0xf0] sm:$0xff]  ;;  %v2062_v2 = vld [vmem:[%s2394_s1 + $0xf8] sm:$0xff] }
 0x24d   :  { %699 = vmatpush.msra.mxu1 %v2438_v3  ;;  %v2068_v3 = vld [vmem:[%s2394_s1 + $0xe8] sm:$0xff] }
 0x24e   :  { %773 = vmatpush.msra.mxu2 %v2439_v4  ;;  %793 = vmatpush.msra.mxu3 %v2440_v5  ;;  %v2074_v4 = vld [vmem:[%s2394_s1 + $0xd8] sm:$0xff]  ;;  %v2080_v5 = vld [vmem:[%s2394_s1 + $0xe0] sm:$0xff] }
 0x2ab   :  { %v433_v7 = vpop.f32.mrf.mxu1 }
 0x2ac   :  { %v476_v8 = vadd.f32 %v1115_v6, %v433_v7  ;;  %v2086_v6 = vld [vmem:[%s2394_s1 + $0xd0] sm:$0xff]  ;;  %v2092_v7 = vld [vmem:[%s2394_s1 + $0xc0] sm:$0xff] }
 0x2ae   :  { %v1118_v9 = vmul.f32 -1.442695, %v476_v8  ;;  %v2098_v8 = vld [vmem:[%s2394_s1 + $0xc8] sm:$0xff] }
 0x2b0   :  { %1183 = vpow2.f32 %v1118_v9  ;;  %v2104_v9 = vld [vmem:[%s2394_s1 + $0xb8] sm:$0xff] }
 0x2b1   :  { %v453_v11 = vpop.f32.mrf.mxu2 }
 0x2b2   :  { %v496_v12 = vadd.f32 %v1116_v10, %v453_v11  ;;  %v473_v25 = vpop.f32.mrf.mxu3  ;;  %v2110_v10 = vld [vmem:[%s2394_s1 + $0xa8] sm:$0xff]  ;;  %v2116_v11 = vld [vmem:[%s2394_s1 + $0xb0] sm:$0xff] }
 0x2b3   :  { %v516_v31 = vadd.f32 %v1738_v42, %v473_v25  ;;  %v2200_v25 = vld [vmem:[%s2394_s1 + $0x30] sm:$0xff] }
 0x2b4   :  { %v1119_v13 = vmul.f32 -1.442695, %v496_v12  ;;  %v2122_v12 = vld [vmem:[%s2394_s1 + $0xa0] sm:$0xff] }
 0x2b6   :  { %v1184_v14 = vpop.eup %1183  ;;  %1185 = vpow2.f32 %v1119_v13  ;;  %v2128_v13 = vld [vmem:[%s2394_s1 + $0x90] sm:$0xff] }
 0x2b7   :  { %v480_v15 = vadd.f32 1.0, %v1184_v14  ;;  %v2134_v14 = vld [vmem:[%s2394_s1 + $0x98] sm:$0xff] }
 0x2b9   :  { %1187 = vrcp.f32 %v480_v15  ;;  %v492_v21 = vand.u32 2147483648, %v480_v15  ;;  %v490_v23 = vand.u32 2147483647, %v480_v15  ;;  %vm486_vm9 = vweird.f32 %v480_v15 }
 0x2bb   :  { %v493_v28 = vor.u32 1.1754944e-38, %v492_v21  ;;  %vm491_vm11 = vcmp.eq.f32.partialorder %v490_v23, 8.507059e+37  ;;  %v2176_v21 = vld [vmem:[%s2394_s1 + $0x58] sm:$0xff]  ;;  %v2188_v23 = vld [vmem:[%s2394_s1 + $0x50] sm:$0xff] }
 0x2bc   :  { %v1186_v16 = vpop.eup %1185 }
 0x2bd   :  { %v500_v17 = vadd.f32 1.0, %v1186_v16  ;;  %v2146_v16 = vld [vmem:[%s2394_s1 + $0x78] sm:$0xff] }
 0x2bf   :  { %v1188_v18 = vpop.eup %1187  ;;  %1189 = vrcp.f32 %v500_v17  ;;  %v512_v35 = vand.u32 2147483648, %v500_v17  ;;  %v510_v37 = vand.u32 2147483647, %v500_v17  ;;  %vm506_vm13 = vweird.f32 %v500_v17 }
 0x2c0   :  { %v482_v19 = vmul.f32 %v1188_v18, %v480_v15  ;;  %vm487_vm8 = vweird.f32 %v1188_v18  ;;  %v2140_v15 = vld [vmem:[%s2394_s1 + $0x88] sm:$0xff] }
 0x2c1   :  { %vm488_vm10 = vmor %vm486_vm9, %vm487_vm8  ;;  %v513_v45 = vor.u32 1.1754944e-38, %v512_v35  ;;  %vm511_vm15 = vcmp.eq.f32.partialorder %v510_v37, 8.507059e+37 }
 0x2c2   :  { %v483_v20 = vsub.f32 1.0, %v482_v19  ;;  %v2164_v19 = vld [vmem:[%s2394_s1 + $0x60] sm:$0xff] }
 0x2c4   :  { %v484_v22 = vmul.f32 %v1188_v18, %v483_v20  ;;  %v2170_v20 = vld [vmem:[%s2394_s1 + $0x68] sm:$0xff] }
 0x2c5   :  { %v1190_v24 = vpop.eup %1189 }
 0x2c6   :  { %v502_v26 = vmul.f32 %v1190_v24, %v500_v17  ;;  %v485_v27 = vadd.f32 %v1188_v18, %v484_v22  ;;  %vm507_vm12 = vweird.f32 %v1190_v24  ;;  %v2152_v17 = vld [vmem:[%s2394_s1 + $0x80] sm:$0xff]  ;;  %v2182_v22 = vld [vmem:[%s2394_s1 + $0x48] sm:$0xff] }
 0x2c7   :  { %vm508_vm14 = vmor %vm506_vm13, %vm507_vm12 }
 0x2c8   :  { %v503_v29 = vsub.f32 1.0, %v502_v26  ;;  %v489_v30 = vsel %vm488_vm10, %v1188_v18, %v485_v27  ;;  %v2158_v18 = vld [vmem:[%s2394_s1 + $0x70] sm:$0xff]  ;;  %v2206_v26 = vld [vmem:[%s2394_s1 + $0x38] sm:$0xff]  ;;  %v2212_v27 = vld [vmem:[%s2394_s1 + $0x28] sm:$0xff] }
 0x2c9   :  { %v494_v33 = vsel %vm491_vm11, %v493_v28, %v489_v30  ;;  %2441 = vst [vmem:[#allocation7_spill] sm:$0xff] %v2212_v27  ;;  %v2218_v28 = vld [vmem:[%s2394_s1 + $0x18] sm:$0xff]  ;;  %v2230_v30 = vld [vmem:[%s2394_s1 + $0x10] sm:$0xff] }
 0x2ca   :  { %v504_v34 = vmul.f32 %v1190_v24, %v503_v29  ;;  %v517_v36 = vmul.f32 %v516_v31, %v494_v33  ;;  %2442 = vst [vmem:[#allocation3_spill] sm:$0xff] %v2218_v28  ;;  %v2224_v29 = vld [vmem:[%s2394_s1 + $0x20] sm:$0xff] }
 0x2cb   :  { %2443 = vst [vmem:[#allocation4_spill] sm:$0xff] %v2224_v29  ;;  %v2236_v31 = vld [vmem:[%s2394_s1] sm:$0xff] }
 0x2cc   :  { %v505_v40 = vadd.f32 %v1190_v24, %v504_v34  ;;  %v518_v43 = vadd.f32 %v1117_v32, %v517_v36  ;;  %2444 = vst [vmem:[#allocation8_spill] sm:$0xff] %v2230_v30  ;;  %v2242_v32 = vld [vmem:[%s2394_s1 + $0x8] sm:$0xff]  ;;  %v1121_v33 = vld [vmem:[%s2396_s0 + $0x60] sm:$0xff] }
 0x2cd   :  { %2445 = vst [vmem:[#allocation5_spill] sm:$0xff] %v2236_v31  ;;  %v1122_v34 = vld [vmem:[%s2396_s0 + $0x68] sm:$0xff] }
 0x2ce   :  { %v509_v46 = vsel %vm508_vm14, %v1190_v24, %v505_v40  ;;  %1191 = vtanh.f32 %v518_v43  ;;  %v2194_v24 = vld [vmem:[%s2394_s1 + $0x40] sm:$0xff]  ;;  %2446 = vst [vmem:[#allocation6_spill] sm:$0xff] %v2242_v32 }
 0x2cf   :  { %v514_v49 = vsel %vm511_vm15, %v513_v45, %v509_v46 }
 0x2d0   :  { %v520_v63 = vsub.f32 1.0, %v514_v49  ;;  %v522_v58 = vmul.f32 %v514_v49, %v1880_v55  ;;  %v2044_v55 = vld [vmem:[%s2394_s1 + $0x110] sm:$0xff] }
 0x2d4   :  { %v1192_v44 = vpop.eup %1191 }
 0x2d5   :  { %v521_v62 = vmul.f32 %v1192_v44, %v520_v63 }
 0x2d7   :  { %v1948_v57 = vadd.f32 %v522_v58, %v521_v62 }
 0x2d9   :  { %1120 = vst [vmem:[%s2397_s3 + $0x18] sm:$0xff] %v1948_v57  ;;  %546 = vmatmul.f32.vlgmr.msrb.gmra.mxu0 %v1948_v57  ;;  %566 = vmatmul.f32.vlgmr.msrb.gmra.mxu1 %v1948_v57 }
 0x2da   :  { %586 = vmatmul.f32.vlgmr.msrb.gmra.mxu2 %v1948_v57  ;;  %798 = vmatpush.msrb.mxu0 %v1960_v41 }
 0x2db   :  { %872 = vmatpush.msrb.mxu1 %v1966_v52  ;;  %892 = vmatpush.msrb.mxu2 %v1972_v54 }
 0x2dc   :  { %799 = vmatpush.msrb.mxu0 %v1978_v51 }
 0x2dd   :  { %873 = vmatpush.msrb.mxu1 %v1984_v50  ;;  %893 = vmatpush.msrb.mxu2 %v1990_v48 }
 0x2de   :  { %800 = vmatpush.msrb.mxu0 %v1996_v47 }
 0x2df   :  { %874 = vmatpush.msrb.mxu1 %v2002_v56  ;;  %894 = vmatpush.msrb.mxu2 %v2008_v60 }
 0x2e0   :  { %801 = vmatpush.msrb.mxu0 %v2014_v38 }
 0x2e1   :  { %875 = vmatpush.msrb.mxu1 %v2020_v39  ;;  %895 = vmatpush.msrb.mxu2 %v2026_v59 }
 0x2e2   :  { %802 = vmatpush.msrb.mxu0 %v2032_v53 }
 0x2e3   :  { %876 = vmatpush.msrb.mxu1 %v2038_v61  ;;  %896 = vmatpush.msrb.mxu2 %v2044_v55 }
 0x2e4   :  { %803 = vmatpush.msrb.mxu0 %v2050_v0 }
 0x2e5   :  { %877 = vmatpush.msrb.mxu1 %v2056_v1  ;;  %897 = vmatpush.msrb.mxu2 %v2062_v2 }
 0x2e6   :  { %804 = vmatpush.msrb.mxu0 %v2068_v3 }
 0x2e7   :  { %878 = vmatpush.msrb.mxu1 %v2074_v4  ;;  %898 = vmatpush.msrb.mxu2 %v2080_v5 }
 0x2e8   :  { %805 = vmatpush.msrb.mxu0 %v2086_v6 }
 0x2e9   :  { %879 = vmatpush.msrb.mxu1 %v2092_v7  ;;  %899 = vmatpush.msrb.mxu2 %v2098_v8 }
 0x2ea   :  { %806 = vmatpush.msrb.mxu0 %v2104_v9 }
 0x2eb   :  { %880 = vmatpush.msrb.mxu1 %v2110_v10  ;;  %900 = vmatpush.msrb.mxu2 %v2116_v11 }
 0x2ec   :  { %807 = vmatpush.msrb.mxu0 %v2122_v12 }
 0x2ed   :  { %881 = vmatpush.msrb.mxu1 %v2128_v13  ;;  %901 = vmatpush.msrb.mxu2 %v2134_v14 }
 0x2ee   :  { %808 = vmatpush.msrb.mxu0 %v2140_v15 }
 0x2ef   :  { %882 = vmatpush.msrb.mxu1 %v2146_v16  ;;  %902 = vmatpush.msrb.mxu2 %v2152_v17 }
 0x2f0   :  { %809 = vmatpush.msrb.mxu0 %v2158_v18 }
 0x2f1   :  { %883 = vmatpush.msrb.mxu1 %v2164_v19  ;;  %903 = vmatpush.msrb.mxu2 %v2170_v20 }
 0x2f2   :  { %810 = vmatpush.msrb.mxu0 %v2176_v21 }
 0x2f3   :  { %884 = vmatpush.msrb.mxu1 %v2182_v22  ;;  %904 = vmatpush.msrb.mxu2 %v2188_v23 }
 0x2f4   :  { %811 = vmatpush.msrb.mxu0 %v2194_v24 }
 0x2f5   :  { %885 = vmatpush.msrb.mxu1 %v2200_v25  ;;  %905 = vmatpush.msrb.mxu2 %v2206_v26 }
 0x2f6   :  { %812 = vmatpush.msrb.mxu0 %v2212_v27 }
 0x2f7   :  { %886 = vmatpush.msrb.mxu1 %v2218_v28  ;;  %906 = vmatpush.msrb.mxu2 %v2224_v29 }
 0x2f8   :  { %813 = vmatpush.msrb.mxu0 %v2230_v30 }
 0x2f9   :  { %887 = vmatpush.msrb.mxu1 %v2236_v31  ;;  %907 = vmatpush.msrb.mxu2 %v2242_v32 }
 0x356   :  { %v547_v35 = vpop.f32.mrf.mxu0  ;;  %v567_v36 = vpop.f32.mrf.mxu1 }
 0x357   :  { %v590_v37 = vadd.f32 %v1121_v33, %v547_v35  ;;  %v610_v40 = vadd.f32 %v1122_v34, %v567_v36 }
 0x359   :  { %v1124_v43 = vmul.f32 -1.442695, %v590_v37  ;;  %v1125_v45 = vmul.f32 -1.442695, %v610_v40 }
 0x35b   :  { %1193 = vpow2.f32 %v1124_v43 }
 0x35c   :  { %1195 = vpow2.f32 %v1125_v45 }
 0x35d   :  { %v587_v35 = vpop.f32.mrf.mxu2 }
 0x35e   :  { %v630_v43 = vadd.f32 %v1738_v42, %v587_v35 }
 0x361   :  { %v1194_v46 = vpop.eup %1193 }
 0x362   :  { %v1196_v49 = vpop.eup %1195  ;;  %v594_v63 = vadd.f32 1.0, %v1194_v46 }
 0x363   :  { %v614_v44 = vadd.f32 1.0, %v1196_v49 }
 0x364   :  { %1197 = vrcp.f32 %v594_v63  ;;  %v606_v28 = vand.u32 2147483648, %v594_v63  ;;  %v604_v33 = vand.u32 2147483647, %v594_v63  ;;  %vm600_vm1 = vweird.f32 %v594_v63 }
 0x365   :  { %1199 = vrcp.f32 %v614_v44  ;;  %vm620_vm5 = vweird.f32 %v614_v44 }
 0x366   :  { %v607_v37 = vor.u32 1.1754944e-38, %v606_v28  ;;  %vm605_vm3 = vcmp.eq.f32.partialorder %v604_v33, 8.507059e+37 }
 0x36a   :  { %v1198_v62 = vpop.eup %1197 }
 0x36b   :  { %v1200_v58 = vpop.eup %1199  ;;  %v596_v32 = vmul.f32 %v1198_v62, %v594_v63  ;;  %vm601_vm0 = vweird.f32 %v1198_v62 }
 0x36c   :  { %v616_v31 = vmul.f32 %v1200_v58, %v614_v44  ;;  %vm602_vm2 = vmor %vm600_vm1, %vm601_vm0  ;;  %vm621_vm4 = vweird.f32 %v1200_v58 }
 0x36d   :  { %v597_v30 = vsub.f32 1.0, %v596_v32  ;;  %vm622_vm6 = vmor %vm620_vm5, %vm621_vm4 }
 0x36e   :  { %v617_v29 = vsub.f32 1.0, %v616_v31  ;;  %v1123_v31 = vld [vmem:[%s2396_s0 + $0x70] sm:$0xff] }
 0x36f   :  { %v598_v27 = vmul.f32 %v1198_v62, %v597_v30  ;;  %v626_v30 = vand.u32 2147483648, %v614_v44 }
 0x370   :  { %v618_v34 = vmul.f32 %v1200_v58, %v617_v29  ;;  %v624_v29 = vand.u32 2147483647, %v614_v44 }
 0x371   :  { %v599_v36 = vadd.f32 %v1198_v62, %v598_v27  ;;  %v627_v63 = vor.u32 1.1754944e-38, %v626_v30 }
 0x372   :  { %v619_v45 = vadd.f32 %v1200_v58, %v618_v34  ;;  %vm625_vm7 = vcmp.eq.f32.partialorder %v624_v29, 8.507059e+37 }
 0x373   :  { %v603_v40 = vsel %vm602_vm2, %v1198_v62, %v599_v36  ;;  %v2322_v36 = vld [vmem:[%s2395_s2] ss:$0 sm:$0xff] }
 0x374   :  { %v608_v32 = vsel %vm605_vm3, %v607_v37, %v603_v40  ;;  %v623_v49 = vsel %vm622_vm6, %v1200_v58, %v619_v45 }
 0x375   :  { %v631_v46 = vmul.f32 %v630_v43, %v608_v32  ;;  %v628_v28 = vsel %vm625_vm7, %v627_v63, %v623_v49 }
 0x376   :  { %v634_v62 = vsub.f32 1.0, %v628_v28  ;;  %v636_v34 = vmul.f32 %v628_v28, %v1948_v57  ;;  %v2447_v57 = vld [vmem:[#allocation7_spill] sm:$0xff] }
 0x377   :  { %v632_v27 = vadd.f32 %v1123_v31, %v631_v46  ;;  %v1129_v31 = vld [vmem:[%s2396_s0 + $0x88] sm:$0xff] }
 0x379   :  { %1201 = vtanh.f32 %v632_v27 }
 0x37f   :  { %v1202_v42 = vpop.eup %1201 }
 0x380   :  { %v635_v33 = vmul.f32 %v1202_v42, %v634_v62 }
 0x382   :  { %v2256_v35 = vadd.f32 %v636_v34, %v635_v33 }
 0x384   :  { %1126 = vst [vmem:[%s2397_s3 + $0x20] sm:$0xff] %v2256_v35  ;;  %660 = vmatmul.f32.vlgmr.msrb.gmra.mxu3 %v2256_v35  ;;  %680 = vmatmul.f32.vlgmr.msra.gmra.mxu0 %v2256_v35 }
 0x385   :  { %700 = vmatmul.f32.vlgmr.msra.gmra.mxu1 %v2256_v35  ;;  %912 = vmatpush.msrb.mxu3 %v1960_v41 }
 0x386   :  { %986 = vmatpush.msra.mxu0 %v1966_v52  ;;  %1006 = vmatpush.msra.mxu1 %v1972_v54  ;;  %v2448_v52 = vld [vmem:[#allocation3_spill] sm:$0xff]  ;;  %v2449_v54 = vld [vmem:[#allocation4_spill] sm:$0xff] }
 0x387   :  { %913 = vmatpush.msrb.mxu3 %v1978_v51 }
 0x388   :  { %987 = vmatpush.msra.mxu0 %v1984_v50  ;;  %1007 = vmatpush.msra.mxu1 %v1990_v48  ;;  %v2450_v50 = vld [vmem:[#allocation8_spill] sm:$0xff]  ;;  %v2451_v48 = vld [vmem:[#allocation5_spill] sm:$0xff] }
 0x389   :  { %914 = vmatpush.msrb.mxu3 %v1996_v47 }
 0x38a   :  { %988 = vmatpush.msra.mxu0 %v2002_v56  ;;  %1008 = vmatpush.msra.mxu1 %v2008_v60  ;;  %v2452_v56 = vld [vmem:[#allocation6_spill] sm:$0xff]  ;;  %v1128_v60 = vld [vmem:[%s2396_s0 + $0x80] sm:$0xff] }
 0x38b   :  { %915 = vmatpush.msrb.mxu3 %v2014_v38 }
 0x38c   :  { %989 = vmatpush.msra.mxu0 %v2020_v39  ;;  %1009 = vmatpush.msra.mxu1 %v2026_v59 }
 0x38d   :  { %916 = vmatpush.msrb.mxu3 %v2032_v53 }
 0x38e   :  { %990 = vmatpush.msra.mxu0 %v2038_v61  ;;  %1010 = vmatpush.msra.mxu1 %v2044_v55  ;;  %v1127_v55 = vld [vmem:[%s2396_s0 + $0x78] sm:$0xff] }
 0x38f   :  { %917 = vmatpush.msrb.mxu3 %v2050_v0 }
 0x390   :  { %991 = vmatpush.msra.mxu0 %v2056_v1  ;;  %1011 = vmatpush.msra.mxu1 %v2062_v2 }
 0x391   :  { %918 = vmatpush.msrb.mxu3 %v2068_v3 }
 0x392   :  { %992 = vmatpush.msra.mxu0 %v2074_v4  ;;  %1012 = vmatpush.msra.mxu1 %v2080_v5 }
 0x393   :  { %919 = vmatpush.msrb.mxu3 %v2086_v6 }
 0x394   :  { %993 = vmatpush.msra.mxu0 %v2092_v7  ;;  %1013 = vmatpush.msra.mxu1 %v2098_v8 }
 0x395   :  { %920 = vmatpush.msrb.mxu3 %v2104_v9 }
 0x396   :  { %994 = vmatpush.msra.mxu0 %v2110_v10  ;;  %1014 = vmatpush.msra.mxu1 %v2116_v11 }
 0x397   :  { %921 = vmatpush.msrb.mxu3 %v2122_v12 }
 0x398   :  { %995 = vmatpush.msra.mxu0 %v2128_v13  ;;  %1015 = vmatpush.msra.mxu1 %v2134_v14 }
 0x399   :  { %922 = vmatpush.msrb.mxu3 %v2140_v15 }
 0x39a   :  { %996 = vmatpush.msra.mxu0 %v2146_v16  ;;  %1016 = vmatpush.msra.mxu1 %v2152_v17 }
 0x39b   :  { %923 = vmatpush.msrb.mxu3 %v2158_v18 }
 0x39c   :  { %997 = vmatpush.msra.mxu0 %v2164_v19  ;;  %1017 = vmatpush.msra.mxu1 %v2170_v20 }
 0x39d   :  { %924 = vmatpush.msrb.mxu3 %v2176_v21 }
 0x39e   :  { %998 = vmatpush.msra.mxu0 %v2182_v22  ;;  %1018 = vmatpush.msra.mxu1 %v2188_v23 }
 0x39f   :  { %925 = vmatpush.msrb.mxu3 %v2194_v24 }
 0x3a0   :  { %999 = vmatpush.msra.mxu0 %v2200_v25  ;;  %1019 = vmatpush.msra.mxu1 %v2206_v26 }
 0x3a1   :  { %926 = vmatpush.msrb.mxu3 %v2447_v57 }
 0x3a2   :  { %1000 = vmatpush.msra.mxu0 %v2448_v52  ;;  %1020 = vmatpush.msra.mxu1 %v2449_v54 }
 0x3a3   :  { %927 = vmatpush.msrb.mxu3 %v2450_v50 }
 0x3a4   :  { %1001 = vmatpush.msra.mxu0 %v2451_v48  ;;  %1021 = vmatpush.msra.mxu1 %v2452_v56 }
 0x401   :  { %v681_v39 = vpop.f32.mrf.mxu0 }
 0x402   :  { %v724_v59 = vadd.f32 %v1128_v60, %v681_v39  ;;  %v701_v26 = vpop.f32.mrf.mxu1 }
 0x403   :  { %v744_v37 = vadd.f32 %v2322_v36, %v701_v26 }
 0x404   :  { %v1131_v61 = vmul.f32 -1.442695, %v724_v59 }
 0x406   :  { %1203 = vpow2.f32 %v1131_v61 }
 0x407   :  { %v661_v1 = vpop.f32.mrf.mxu3 }
 0x408   :  { %v704_v2 = vadd.f32 %v1127_v55, %v661_v1 }
 0x40a   :  { %v1130_v4 = vmul.f32 -1.442695, %v704_v2 }
 0x40c   :  { %v1204_v5 = vpop.eup %1203  ;;  %1205 = vpow2.f32 %v1130_v4 }
 0x40d   :  { %v728_v7 = vadd.f32 1.0, %v1204_v5  ;;  %v1135_v5 = vld [vmem:[%s2396_s0 + $0xa0] sm:$0xff] }
 0x40f   :  { %1207 = vrcp.f32 %v728_v7  ;;  %v740_v32 = vand.u32 2147483648, %v728_v7  ;;  %vm734_vm13 = vweird.f32 %v728_v7  ;;  %v738_v46 = vand.u32 2147483647, %v728_v7 }
 0x411   :  { %v741_v49 = vor.u32 1.1754944e-38, %v740_v32  ;;  %vm739_vm15 = vcmp.eq.f32.partialorder %v738_v46, 8.507059e+37 }
 0x412   :  { %v1206_v8 = vpop.eup %1205 }
 0x413   :  { %v708_v10 = vadd.f32 1.0, %v1206_v8 }
 0x415   :  { %1209 = vrcp.f32 %v708_v10  ;;  %v1208_v11 = vpop.eup %1207  ;;  %v720_v20 = vand.u32 2147483648, %v708_v10  ;;  %v718_v23 = vand.u32 2147483647, %v708_v10  ;;  %vm714_vm9 = vweird.f32 %v708_v10 }
 0x416   :  { %v730_v13 = vmul.f32 %v1208_v11, %v728_v7  ;;  %vm735_vm12 = vweird.f32 %v1208_v11 }
 0x417   :  { %v721_v58 = vor.u32 1.1754944e-38, %v720_v20  ;;  %vm719_vm11 = vcmp.eq.f32.partialorder %v718_v23, 8.507059e+37  ;;  %vm736_vm14 = vmor %vm734_vm13, %vm735_vm12 }
 0x418   :  { %v731_v17 = vsub.f32 1.0, %v730_v13 }
 0x41a   :  { %v732_v25 = vmul.f32 %v1208_v11, %v731_v17 }
 0x41b   :  { %v1210_v14 = vpop.eup %1209 }
 0x41c   :  { %v710_v16 = vmul.f32 %v1210_v14, %v708_v10  ;;  %vm715_vm8 = vweird.f32 %v1210_v14  ;;  %v733_v43 = vadd.f32 %v1208_v11, %v732_v25  ;;  %v1139_v25 = vld [vmem:[%s2396_s0 + $0xa8] sm:$0xff] }
 0x41d   :  { %vm716_vm10 = vmor %vm714_vm9, %vm715_vm8 }
 0x41e   :  { %v711_v19 = vsub.f32 1.0, %v710_v16  ;;  %v737_v27 = vsel %vm736_vm14, %v1208_v11, %v733_v43 }
 0x41f   :  { %v742_v63 = vsel %vm739_vm15, %v741_v49, %v737_v27 }
 0x420   :  { %v712_v22 = vmul.f32 %v1210_v14, %v711_v19  ;;  %v748_v28 = vsub.f32 1.0, %v742_v63  ;;  %v750_v33 = vmul.f32 %v742_v63, %v2256_v35 }
 0x422   :  { %v713_v44 = vadd.f32 %v1210_v14, %v712_v22 }
 0x424   :  { %v717_v40 = vsel %vm716_vm10, %v1210_v14, %v713_v44 }
 0x425   :  { %v722_v45 = vsel %vm719_vm11, %v721_v58, %v717_v40 }
 0x426   :  { %v745_v30 = vmul.f32 %v744_v37, %v722_v45  ;;  %v1140_v37 = vld [vmem:[%s2396_s0 + $0xb0] sm:$0xff] }
 0x428   :  { %v746_v29 = vadd.f32 %v1129_v31, %v745_v30 }
 0x42a   :  { %1211 = vtanh.f32 %v746_v29 }
 0x430   :  { %v1212_v62 = vpop.eup %1211 }
 0x431   :  { %v749_v42 = vmul.f32 %v1212_v62, %v748_v28 }
 0x433   :  { %v2329_v34 = vadd.f32 %v750_v33, %v749_v42 }
 0x435   :  { %1132 = vst [vmem:[%s2397_s3 + $0x28] sm:$0xff] %v2329_v34  ;;  %774 = vmatmul.f32.vlgmr.msra.gmra.mxu2 %v2329_v34  ;;  %794 = vmatmul.f32.vlgmr.msra.gmra.mxu3 %v2329_v34 }
 0x436   :  { %814 = vmatmul.f32.vlgmr.msrb.gmra.mxu0 %v2329_v34  ;;  %1026 = vmatpush.msra.mxu2 %v1960_v41  ;;  %v1133_v41 = vld [vmem:[%s2396_s0 + $0x90] sm:$0xff] }
 0x438   :  { %1027 = vmatpush.msra.mxu2 %v1978_v51  ;;  %v1134_v51 = vld [vmem:[%s2396_s0 + $0x98] sm:$0xff] }
 0x43a   :  { %1028 = vmatpush.msra.mxu2 %v1996_v47 }
 0x43c   :  { %1029 = vmatpush.msra.mxu2 %v2014_v38 }
 0x43e   :  { %1030 = vmatpush.msra.mxu2 %v2032_v53 }
 0x440   :  { %1031 = vmatpush.msra.mxu2 %v2050_v0 }
 0x442   :  { %1032 = vmatpush.msra.mxu2 %v2068_v3 }
 0x444   :  { %1033 = vmatpush.msra.mxu2 %v2086_v6 }
 0x446   :  { %1034 = vmatpush.msra.mxu2 %v2104_v9 }
 0x448   :  { %1035 = vmatpush.msra.mxu2 %v2122_v12 }
 0x44a   :  { %1036 = vmatpush.msra.mxu2 %v2140_v15 }
 0x44c   :  { %1037 = vmatpush.msra.mxu2 %v2158_v18 }
 0x44e   :  { %1038 = vmatpush.msra.mxu2 %v2176_v21 }
 0x450   :  { %1039 = vmatpush.msra.mxu2 %v2194_v24 }
 0x452   :  { %1040 = vmatpush.msra.mxu2 %v2447_v57 }
 0x454   :  { %1041 = vmatpush.msra.mxu2 %v2450_v50 }
 0x4b3   :  { %v815_v60 = vpop.f32.mrf.mxu0 }
 0x4b4   :  { %v858_v55 = vadd.f32 %v2322_v36, %v815_v60  ;;  %v1145_v60 = vld [vmem:[%s2396_s0 + $0xc0] sm:$0xff] }
 0x4b8   :  { %v775_v47 = vpop.f32.mrf.mxu2  ;;  %v795_v38 = vpop.f32.mrf.mxu3 }
 0x4b9   :  { %v818_v53 = vadd.f32 %v1133_v41, %v775_v47  ;;  %v838_v0 = vadd.f32 %v1134_v51, %v795_v38 }
 0x4bb   :  { %v1136_v3 = vmul.f32 -1.442695, %v818_v53  ;;  %v1137_v6 = vmul.f32 -1.442695, %v838_v0  ;;  %v1141_v0 = vld [vmem:[%s2396_s0 + $0xb8] sm:$0xff] }
 0x4bd   :  { %1213 = vpow2.f32 %v1136_v3 }
 0x4be   :  { %1215 = vpow2.f32 %v1137_v6 }
 0x4c3   :  { %v1214_v9 = vpop.eup %1213 }
 0x4c4   :  { %v1216_v12 = vpop.eup %1215  ;;  %v822_v15 = vadd.f32 1.0, %v1214_v9 }
 0x4c5   :  { %v842_v18 = vadd.f32 1.0, %v1216_v12 }
 0x4c6   :  { %1217 = vrcp.f32 %v822_v15  ;;  %v834_v54 = vand.u32 2147483648, %v822_v15  ;;  %v832_v56 = vand.u32 2147483647, %v822_v15  ;;  %vm828_vm1 = vweird.f32 %v822_v15 }
 0x4c7   :  { %1219 = vrcp.f32 %v842_v18  ;;  %v854_v8 = vand.u32 2147483648, %v842_v18  ;;  %vm848_vm5 = vweird.f32 %v842_v18  ;;  %v852_v10 = vand.u32 2147483647, %v842_v18 }
 0x4c8   :  { %v835_v61 = vor.u32 1.1754944e-38, %v834_v54  ;;  %vm833_vm3 = vcmp.eq.f32.partialorder %v832_v56, 8.507059e+37 }
 0x4c9   :  { %v855_v14 = vor.u32 1.1754944e-38, %v854_v8  ;;  %vm853_vm7 = vcmp.eq.f32.partialorder %v852_v10, 8.507059e+37 }
 0x4cc   :  { %v1218_v21 = vpop.eup %1217 }
 0x4cd   :  { %v1220_v24 = vpop.eup %1219  ;;  %v824_v35 = vmul.f32 %v1218_v21, %v822_v15  ;;  %vm829_vm0 = vweird.f32 %v1218_v21 }
 0x4ce   :  { %v844_v57 = vmul.f32 %v1220_v24, %v842_v18  ;;  %vm830_vm2 = vmor %vm828_vm1, %vm829_vm0  ;;  %vm849_vm4 = vweird.f32 %v1220_v24 }
 0x4cf   :  { %v825_v52 = vsub.f32 1.0, %v824_v35  ;;  %vm850_vm6 = vmor %vm848_vm5, %vm849_vm4 }
 0x4d0   :  { %v845_v50 = vsub.f32 1.0, %v844_v57 }
 0x4d1   :  { %v826_v48 = vmul.f32 %v1218_v21, %v825_v52 }
 0x4d2   :  { %v846_v39 = vmul.f32 %v1220_v24, %v845_v50 }
 0x4d3   :  { %v827_v59 = vadd.f32 %v1218_v21, %v826_v48 }
 0x4d4   :  { %v847_v4 = vadd.f32 %v1220_v24, %v846_v39  ;;  %v1146_v39 = vld [vmem:[%s2396_s0 + $0xc8] sm:$0xff] }
 0x4d5   :  { %v831_v1 = vsel %vm830_vm2, %v1218_v21, %v827_v59 }
 0x4d6   :  { %v836_v2 = vsel %vm833_vm3, %v835_v61, %v831_v1  ;;  %v851_v13 = vsel %vm850_vm6, %v1220_v24, %v847_v4 }
 0x4d7   :  { %v859_v7 = vmul.f32 %v858_v55, %v836_v2  ;;  %v856_v16 = vsel %vm853_vm7, %v855_v14, %v851_v13 }
 0x4d8   :  { %v862_v17 = vsub.f32 1.0, %v856_v16  ;;  %v864_v22 = vmul.f32 %v856_v16, %v2329_v34 }
 0x4d9   :  { %v860_v11 = vadd.f32 %v1135_v5, %v859_v7 }
 0x4db   :  { %1221 = vtanh.f32 %v860_v11 }
 0x4e1   :  { %v1222_v19 = vpop.eup %1221 }
 0x4e2   :  { %v863_v20 = vmul.f32 %v1222_v19, %v862_v17 }
 0x4e4   :  { %v865_v23 = vadd.f32 %v864_v22, %v863_v20 }
 0x4e6   :  { %1138 = vst [vmem:[%s2397_s3 + $0x30] sm:$0xff] %v865_v23  ;;  %888 = vmatmul.f32.vlgmr.msrb.gmra.mxu1 %v865_v23  ;;  %908 = vmatmul.f32.vlgmr.msrb.gmra.mxu2 %v865_v23 }
 0x4e7   :  { %928 = vmatmul.f32.vlgmr.msrb.gmra.mxu3 %v865_v23 }
 0x563   :  { %v889_v26 = vpop.f32.mrf.mxu1 }
 0x564   :  { %v932_v44 = vadd.f32 %v1139_v25, %v889_v26 }
 0x566   :  { %v1142_v58 = vmul.f32 -1.442695, %v932_v44 }
 0x568   :  { %1223 = vpow2.f32 %v1142_v58 }
 0x569   :  { %v909_v40 = vpop.f32.mrf.mxu2 }
 0x56a   :  { %v952_v43 = vadd.f32 %v1140_v37, %v909_v40  ;;  %v929_v33 = vpop.f32.mrf.mxu3 }
 0x56b   :  { %v972_v53 = vadd.f32 %v2322_v36, %v929_v33 }
 0x56c   :  { %v1143_v45 = vmul.f32 -1.442695, %v952_v43 }
 0x56e   :  { %v1224_v31 = vpop.eup %1223  ;;  %1225 = vpow2.f32 %v1143_v45  ;;  %v1147_v45 = vld [vmem:[%s2396_s0 + $0xd0] sm:$0xff] }
 0x56f   :  { %v936_v32 = vadd.f32 1.0, %v1224_v31 }
 0x571   :  { %1227 = vrcp.f32 %v936_v32  ;;  %v948_v63 = vand.u32 2147483648, %v936_v32  ;;  %v946_v62 = vand.u32 2147483647, %v936_v32  ;;  %vm942_vm9 = vweird.f32 %v936_v32 }
 0x573   :  { %v949_v51 = vor.u32 1.1754944e-38, %v948_v63  ;;  %vm947_vm11 = vcmp.eq.f32.partialorder %v946_v62, 8.507059e+37 }
 0x574   :  { %v1226_v30 = vpop.eup %1225 }
 0x575   :  { %v956_v46 = vadd.f32 1.0, %v1226_v30 }
 0x577   :  { %v1228_v29 = vpop.eup %1227  ;;  %1229 = vrcp.f32 %v956_v46  ;;  %v968_v9 = vand.u32 2147483648, %v956_v46  ;;  %v966_v15 = vand.u32 2147483647, %v956_v46  ;;  %vm962_vm13 = vweird.f32 %v956_v46 }
 0x578   :  { %v938_v27 = vmul.f32 %v1228_v29, %v936_v32  ;;  %vm943_vm8 = vweird.f32 %v1228_v29 }
 0x579   :  { %vm944_vm10 = vmor %vm942_vm9, %vm943_vm8  ;;  %v969_v24 = vor.u32 1.1754944e-38, %v968_v9  ;;  %vm967_vm15 = vcmp.eq.f32.partialorder %v966_v15, 8.507059e+37 }
 0x57a   :  { %v939_v49 = vsub.f32 1.0, %v938_v27 }
 0x57c   :  { %v940_v28 = vmul.f32 %v1228_v29, %v939_v49 }
 0x57d   :  { %v1230_v42 = vpop.eup %1229 }
 0x57e   :  { %v958_v34 = vmul.f32 %v1230_v42, %v956_v46  ;;  %v941_v41 = vadd.f32 %v1228_v29, %v940_v28  ;;  %vm963_vm12 = vweird.f32 %v1230_v42 }
 0x57f   :  { %vm964_vm14 = vmor %vm962_vm13, %vm963_vm12 }
 0x580   :  { %v959_v47 = vsub.f32 1.0, %v958_v34  ;;  %v945_v38 = vsel %vm944_vm10, %v1228_v29, %v941_v41 }
 0x581   :  { %v950_v3 = vsel %vm947_vm11, %v949_v51, %v945_v38 }
 0x582   :  { %v960_v6 = vmul.f32 %v1230_v42, %v959_v47  ;;  %v973_v12 = vmul.f32 %v972_v53, %v950_v3 }
 0x584   :  { %v961_v18 = vadd.f32 %v1230_v42, %v960_v6  ;;  %v974_v21 = vadd.f32 %v1141_v0, %v973_v12 }
 0x586   :  { %v965_v35 = vsel %vm964_vm14, %v1230_v42, %v961_v18  ;;  %1231 = vtanh.f32 %v974_v21 }
 0x587   :  { %v970_v57 = vsel %vm967_vm15, %v969_v24, %v965_v35 }
 0x588   :  { %v976_v52 = vsub.f32 1.0, %v970_v57  ;;  %v978_v48 = vmul.f32 %v970_v57, %v865_v23 }
 0x58c   :  { %v1232_v54 = vpop.eup %1231 }
 0x58d   :  { %v977_v50 = vmul.f32 %v1232_v54, %v976_v52 }
 0x58f   :  { %v979_v56 = vadd.f32 %v978_v48, %v977_v50 }
 0x591   :  { %1144 = vst [vmem:[%s2397_s3 + $0x38] sm:$0xff] %v979_v56  ;;  %1002 = vmatmul.f32.vlgmr.msra.gmra.mxu0 %v979_v56  ;;  %1022 = vmatmul.f32.vlgmr.msra.gmra.mxu1 %v979_v56 }
 0x592   :  { %1042 = vmatmul.f32.vlgmr.msra.gmra.mxu2 %v979_v56 }
 0x60e   :  { %v1003_v59 = vpop.f32.mrf.mxu0  ;;  %v1023_v61 = vpop.f32.mrf.mxu1 }
 0x60f   :  { %v1046_v55 = vadd.f32 %v1145_v60, %v1003_v59  ;;  %v1066_v1 = vadd.f32 %v1146_v39, %v1023_v61 }
 0x611   :  { %v1148_v2 = vmul.f32 -1.442695, %v1046_v55  ;;  %v1149_v4 = vmul.f32 -1.442695, %v1066_v1 }
 0x613   :  { %1233 = vpow2.f32 %v1148_v2 }
 0x614   :  { %1235 = vpow2.f32 %v1149_v4 }
 0x615   :  { %v1043_v26 = vpop.f32.mrf.mxu2 }
 0x616   :  { %v1086_v40 = vadd.f32 %v2322_v36, %v1043_v26 }
 0x619   :  { %v1234_v5 = vpop.eup %1233 }
 0x61a   :  { %v1236_v7 = vpop.eup %1235  ;;  %v1050_v8 = vadd.f32 1.0, %v1234_v5 }
 0x61b   :  { %v1070_v10 = vadd.f32 1.0, %v1236_v7 }
 0x61c   :  { %1237 = vrcp.f32 %v1050_v8  ;;  %v1062_v20 = vand.u32 2147483648, %v1050_v8  ;;  %v1060_v23 = vand.u32 2147483647, %v1050_v8  ;;  %vm1056_vm1 = vweird.f32 %v1050_v8 }
 0x61d   :  { %1239 = vrcp.f32 %v1070_v10  ;;  %v1082_v32 = vand.u32 2147483648, %v1070_v10  ;;  %vm1076_vm5 = vweird.f32 %v1070_v10  ;;  %v1080_v46 = vand.u32 2147483647, %v1070_v10 }
 0x61e   :  { %v1063_v58 = vor.u32 1.1754944e-38, %v1062_v20  ;;  %vm1061_vm3 = vcmp.eq.f32.partialorder %v1060_v23, 8.507059e+37 }
 0x61f   :  { %v1083_v49 = vor.u32 1.1754944e-38, %v1082_v32  ;;  %vm1081_vm7 = vcmp.eq.f32.partialorder %v1080_v46, 8.507059e+37 }
 0x622   :  { %v1238_v11 = vpop.eup %1237 }
 0x623   :  { %v1240_v13 = vpop.eup %1239  ;;  %v1052_v14 = vmul.f32 %v1238_v11, %v1050_v8  ;;  %vm1057_vm0 = vweird.f32 %v1238_v11 }
 0x624   :  { %v1072_v16 = vmul.f32 %v1240_v13, %v1070_v10  ;;  %vm1058_vm2 = vmor %vm1056_vm1, %vm1057_vm0  ;;  %vm1077_vm4 = vweird.f32 %v1240_v13 }
 0x625   :  { %v1053_v17 = vsub.f32 1.0, %v1052_v14  ;;  %vm1078_vm6 = vmor %vm1076_vm5, %vm1077_vm4 }
 0x626   :  { %v1073_v19 = vsub.f32 1.0, %v1072_v16 }
 0x627   :  { %v1054_v22 = vmul.f32 %v1238_v11, %v1053_v17 }
 0x628   :  { %v1074_v25 = vmul.f32 %v1240_v13, %v1073_v19 }
 0x629   :  { %v1055_v44 = vadd.f32 %v1238_v11, %v1054_v22 }
 0x62a   :  { %v1075_v43 = vadd.f32 %v1240_v13, %v1074_v25 }
 0x62b   :  { %v1059_v37 = vsel %vm1058_vm2, %v1238_v11, %v1055_v44 }
 0x62c   :  { %v1064_v31 = vsel %vm1061_vm3, %v1063_v58, %v1059_v37  ;;  %v1079_v27 = vsel %vm1078_vm6, %v1240_v13, %v1075_v43 }
 0x62d   :  { %v1087_v30 = vmul.f32 %v1086_v40, %v1064_v31  ;;  %v1084_v63 = vsel %vm1081_vm7, %v1083_v49, %v1079_v27 }
 0x62e   :  { %v1090_v28 = vsub.f32 1.0, %v1084_v63  ;;  %v1092_v42 = vmul.f32 %v1084_v63, %v979_v56 }
 0x62f   :  { %v1088_v29 = vadd.f32 %v1147_v45, %v1087_v30 }
 0x631   :  { %1241 = vtanh.f32 %v1088_v29 }
 0x637   :  { %v1242_v36 = vpop.eup %1241 }
 0x638   :  { %v1091_v62 = vmul.f32 %v1242_v36, %v1090_v28 }
 0x63a   :  { %v1093_v33 = vadd.f32 %v1092_v42, %v1091_v62 }
 0x63c   :  { %1150 = vst [vmem:[%s2397_s3 + $0x40] sm:$0xff] %v1093_v33 }

</bundles_post_ra>
